<compile_context>
chip_gen: v5e
topology: v5e:2x2
jax: 0.10.0
libtpu: 0.0.40
codegen_flags: <defaults>
</compile_context>

<pallas_src>
import functools

import jax
import jax.numpy as jnp
from jax.experimental import pallas as pl
from jax.experimental.pallas import tpu as pltpu


_VMEM_LIMIT = 32 * 1024 * 1024   # safe on v5e/v6e/v7x at these block sizes


def _round_up(x, m):
    return ((x + m - 1) // m) * m


def _choose_tk(k_pad, cap=1024):
    """K tile: largest multiple of 256 <= cap dividing k_pad (full-depth MXU
    pushes, no extra K padding); fall back to 512 with a cdiv grid."""
    best = 0
    d = 256
    while d <= min(cap, k_pad):
        if k_pad % d == 0:
            best = d
        d += 256
    return best if best else min(512, k_pad)


def _choose_tn(N, M):
    """Row tile: <= 512 (256 for wide M), floor 128, and aim for >=2 row tiles
    (v7x megacore) when N is large enough."""
    base = 256 if M >= 1024 else 512
    half = _round_up(max((N + 1) // 2, 8), 8)
    tn = min(base, max(128, half), _round_up(N, 8))
    return max(tn, 8)


def _group_tn(rows, cap=512):
    """Largest multiple of 8 <= cap dividing `rows` (row tiles aligned to a
    per-image group so the fused row-max never mixes batch elements)."""
    best = 8
    d = 8
    while d <= min(cap, rows):
        if rows % d == 0:
            best = d
        d += 8
    return best


# ---------------------------------------------------------------------------
# Pallas kernels
# ---------------------------------------------------------------------------

def _gemm_bias_kernel(x_ref, w_ref, b_ref, o_ref, acc_ref):
    """out = x @ w + b, K-tiled with a VMEM f32 accumulator."""
    k = pl.program_id(1)

    @pl.when(k == 0)
    def _init():
        acc_ref[...] = jnp.zeros_like(acc_ref)

    acc_ref[...] += jnp.dot(x_ref[...], w_ref[...],
                            preferred_element_type=jnp.float32)

    @pl.when(k == pl.num_programs(1) - 1)
    def _fin():
        o_ref[...] = (acc_ref[...] + b_ref[...]).astype(o_ref.dtype)


def _gemm_bias_gdn_kernel(x_ref, w_ref, b_ref, g_ref, bt_ref, o_ref, acc_ref):
    """out = GDN(x @ w + b); GDN fused into the finalize epilogue.

    The GDN normalizer matmul uses bf16 operands (f32 accumulation): g_ref is
    bf16 and y^2 is cast to bf16 before the dot (perf fix).
    """
    k = pl.program_id(1)

    @pl.when(k == 0)
    def _init():
        acc_ref[...] = jnp.zeros_like(acc_ref)

    acc_ref[...] += jnp.dot(x_ref[...], w_ref[...],
                            preferred_element_type=jnp.float32)

    @pl.when(k == pl.num_programs(1) - 1)
    def _fin():
        y = acc_ref[...] + b_ref[...]
        # GDN: y / sqrt(beta + y^2 @ gamma^T); padded channels use gamma=0,
        # beta=1 so they stay exactly 0 (no inf/nan).
        norm = jnp.dot((y * y).astype(jnp.bfloat16), g_ref[...],
                       preferred_element_type=jnp.float32) + bt_ref[...]
        o_ref[...] = (y * jax.lax.rsqrt(norm)).astype(o_ref.dtype)


def _gemm_bias_rowmax_kernel(x_ref, w_ref, b_ref, o_ref, mx_ref, acc_ref):
    """out = x @ w + b plus a per-row-tile channel max (fused spatial max)."""
    k = pl.program_id(1)

    @pl.when(k == 0)
    def _init():
        acc_ref[...] = jnp.zeros_like(acc_ref)

    acc_ref[...] += jnp.dot(x_ref[...], w_ref[...],
                            preferred_element_type=jnp.float32)

    @pl.when(k == pl.num_programs(1) - 1)
    def _fin():
        y = acc_ref[...] + b_ref[...]
        o_ref[...] = y.astype(o_ref.dtype)
        mx_ref[...] = jnp.max(y, axis=0, keepdims=True)[None]   # (1, 1, M)


def pallas_gemm_fused(cols, w_mat, bias, gamma_t=None, beta=None,
                      out_dtype=jnp.bfloat16, emit_rowmax=False,
                      rows_per_group=None):
    """cols (N,K) @ w_mat (K,M) + bias(M), optional fused GDN epilogue or a
    fused per-row-tile channel max.  M must be a multiple of 128 (lane-dense
    stores).  Operands go to bf16 on the MXU, accumulation is f32.
    """
    N, K = cols.shape
    K2, M = w_mat.shape
    assert K == K2 and M % 128 == 0

    cols = cols.astype(jnp.bfloat16)
    w_mat = w_mat.astype(jnp.bfloat16)

    K_pad = _round_up(K, 256)
    TK = _choose_tk(K_pad)
    K_pad = _round_up(K_pad, TK)
    if K_pad != K:
        cols = jnp.pad(cols, ((0, 0), (0, K_pad - K)))
        w_mat = jnp.pad(w_mat, ((0, K_pad - K), (0, 0)))

    if emit_rowmax:
        assert rows_per_group is not None
        assert rows_per_group % 8 == 0 and N % rows_per_group == 0
        TN = _group_tn(rows_per_group)
        N_pad = N
    else:
        TN = _choose_tn(N, M)
        N_pad = _round_up(N, TN)
        if N_pad != N:
            # TODO(synk): mask the tail tile in-kernel instead of this pad copy.
            cols = jnp.pad(cols, ((0, N_pad - N), (0, 0)))

    grid = (N_pad // TN, K_pad // TK)
    bias2 = bias.reshape(1, M).astype(jnp.float32)

    base_in = [
        pl.BlockSpec((TN, TK), lambda i, k: (i, k)),
        pl.BlockSpec((TK, M), lambda i, k: (k, 0)),
        pl.BlockSpec((1, M), lambda i, k: (0, 0)),
    ]
    y_spec = pl.BlockSpec((TN, M), lambda i, k: (i, 0))
    scratch = [pltpu.VMEM((TN, M), jnp.float32)]
    cparams = pltpu.CompilerParams(
        dimension_semantics=("parallel", "arbitrary"),
        vmem_limit_bytes=_VMEM_LIMIT)

    if gamma_t is not None:
        out = pl.pallas_call(
            _gemm_bias_gdn_kernel,
            out_shape=jax.ShapeDtypeStruct((N_pad, M), out_dtype),
            grid=grid,
            in_specs=base_in + [
                pl.BlockSpec((M, M), lambda i, k: (0, 0)),
                pl.BlockSpec((1, M), lambda i, k: (0, 0)),
            ],
            out_specs=y_spec,
            scratch_shapes=scratch,
            compiler_params=cparams,
        )(cols, w_mat, bias2,
          gamma_t.astype(jnp.bfloat16),                    # bf16 MXU operand
          beta.reshape(1, M).astype(jnp.float32))
        return out[:N] if N_pad != N else out

    if emit_rowmax:
        n_tiles = N_pad // TN
        y, mx = pl.pallas_call(
            _gemm_bias_rowmax_kernel,
            out_shape=(jax.ShapeDtypeStruct((N_pad, M), out_dtype),
                       jax.ShapeDtypeStruct((n_tiles, 1, M), jnp.float32)),
            grid=grid,
            in_specs=base_in,
            out_specs=(y_spec,
                       pl.BlockSpec((1, 1, M), lambda i, k: (i, 0, 0))),
            scratch_shapes=scratch,
            compiler_params=cparams,
        )(cols, w_mat, bias2)
        return y, mx[:, 0, :]

    out = pl.pallas_call(
        _gemm_bias_kernel,
        out_shape=jax.ShapeDtypeStruct((N_pad, M), out_dtype),
        grid=grid,
        in_specs=base_in,
        out_specs=y_spec,
        scratch_shapes=scratch,
        compiler_params=cparams,
    )(cols, w_mat, bias2)
    return out[:N] if N_pad != N else out


def _mask_kernel(x_ref, m_ref, o_ref):
    o_ref[...] = (x_ref[...].astype(jnp.float32) * m_ref[...]).astype(o_ref.dtype)


def pallas_mask(x_flat, mask, out_dtype=jnp.bfloat16):
    """x_flat (N, Cpad) * mask (Cpad,) broadcast over rows, row-tiled, bf16 out."""
    N, C = x_flat.shape
    TN = min(256, _round_up(N, 8))
    N_pad = _round_up(N, TN)
    if N_pad != N:
        x_flat = jnp.pad(x_flat, ((0, N_pad - N), (0, 0)))
    out = pl.pallas_call(
        _mask_kernel,
        out_shape=jax.ShapeDtypeStruct((N_pad, C), out_dtype),
        grid=(N_pad // TN,),
        in_specs=[pl.BlockSpec((TN, C), lambda i: (i, 0)),
                  pl.BlockSpec((1, C), lambda i: (0, 0))],
        out_specs=pl.BlockSpec((TN, C), lambda i: (i, 0)),
        compiler_params=pltpu.CompilerParams(
            dimension_semantics=("parallel",),
            vmem_limit_bytes=_VMEM_LIMIT),
    )(x_flat, mask.reshape(1, C).astype(jnp.float32))
    return out[:N] if N_pad != N else out


# ---------------------------------------------------------------------------
# JAX glue: im2col lowering of conv / unified sub-pixel conv-transpose
# ---------------------------------------------------------------------------

def _im2col(x_nhwc, kh, kw, stride, pad_lo, pad_hi):
    B, H, W, C = x_nhwc.shape
    if pad_lo or pad_hi:
        x_nhwc = jnp.pad(x_nhwc,
                         ((0, 0), (pad_lo, pad_hi), (pad_lo, pad_hi), (0, 0)))
    Hp, Wp = H + pad_lo + pad_hi, W + pad_lo + pad_hi
    Ho = (Hp - kh) // stride + 1
    Wo = (Wp - kw) // stride + 1
    cols = []
    for i in range(kh):
        for j in range(kw):
            cols.append(x_nhwc[:, i:i + stride * Ho:stride,
                               j:j + stride * Wo:stride, :])
    cols = jnp.concatenate(cols, axis=-1)                   # (B, Ho, Wo, kh*kw*C)
    return cols.reshape(B * Ho * Wo, kh * kw * C), (B, Ho, Wo)


def conv2d_fused(x_nhwc, cin, weight_oihw, bias, stride, padding,
                 gamma=None, beta=None, out_dtype=jnp.bfloat16,
                 emit_rowmax=False):
    """Conv2d (+ optional fused GDN, or fused per-image channel max).

    x may be channel-padded; first `cin` channels are real.
    """
    Cout, Cin, kh, kw = weight_oihw.shape
    assert Cin == cin
    x = x_nhwc[..., :cin].astype(jnp.bfloat16)
    cols, (B, Ho, Wo) = _im2col(x, kh, kw, stride, padding, padding)

    Cout_pad = _round_up(Cout, 128)
    w_mat = jnp.transpose(weight_oihw, (2, 3, 1, 0)).reshape(kh * kw * Cin, Cout)
    w_mat = jnp.pad(w_mat, ((0, 0), (0, Cout_pad - Cout)))
    if bias is None:
        bias = jnp.zeros((Cout,), jnp.float32)
    b_pad = jnp.pad(bias, (0, Cout_pad - Cout))

    if gamma is not None:
        g_t = jnp.pad(gamma.T, ((0, Cout_pad - Cout), (0, Cout_pad - Cout)))
        bt_pad = jnp.pad(beta, (0, Cout_pad - Cout), constant_values=1.0)
        y = pallas_gemm_fused(cols, w_mat, b_pad, gamma_t=g_t, beta=bt_pad,
                              out_dtype=out_dtype)
        return y.reshape(B, Ho, Wo, Cout_pad), Cout_pad

    if emit_rowmax:
        y, rowmax = pallas_gemm_fused(cols, w_mat, b_pad, out_dtype=out_dtype,
                                      emit_rowmax=True, rows_per_group=Ho * Wo)
        return y.reshape(B, Ho, Wo, Cout_pad), Cout_pad, rowmax

    y = pallas_gemm_fused(cols, w_mat, b_pad, out_dtype=out_dtype)
    return y.reshape(B, Ho, Wo, Cout_pad), Cout_pad


def conv_transpose2d_unified(z_nhwc, cin, weight_iohw, bias):
    """ConvTranspose2d(k=5, stride=2, padding=2, output_padding=1) as ONE GEMM.

    All 4 sub-pixel output phases (dy, dx) share the same 3x3 window of the
    1-padded input zp[m:m+3, n:n+3]; slice i of the window maps to kernel tap
    4-2i (even phase) / 5-2i (odd phase; tap 5 is out of range -> zero weight).
    The 4 per-phase kernels are concatenated along the output-channel (lane)
    dim so M = 4*Cout_pad and the whole decoder is a single pallas_call.
    """
    Cin_w, Cout, kh, kw = weight_iohw.shape
    assert Cin_w == cin and kh == 5 and kw == 5
    B, Hin, Win, _ = z_nhwc.shape
    z = z_nhwc[..., :cin].astype(jnp.bfloat16)
    zp = jnp.pad(z, ((0, 0), (1, 1), (1, 1), (0, 0)))

    Cout_pad = _round_up(Cout, 128)

    phase_mats = []
    for dy in (0, 1):
        for dx in (0, 1):
            blocks = []
            for i in range(3):
                ti = 4 - 2 * i if dy == 0 else 5 - 2 * i
                for j in range(3):
                    tj = 4 - 2 * j if dx == 0 else 5 - 2 * j
                    if 0 <= ti <= 4 and 0 <= tj <= 4:
                        blk = weight_iohw[:, :, ti, tj]          # (Cin, Cout)
                    else:
                        blk = jnp.zeros((cin, Cout), weight_iohw.dtype)
                    blocks.append(blk)
            w_mat = jnp.concatenate(blocks, axis=0)              # (9*Cin, Cout)
            w_mat = jnp.pad(w_mat, ((0, 0), (0, Cout_pad - Cout)))
            phase_mats.append(w_mat)
    w_all = jnp.concatenate(phase_mats, axis=1)                  # (9*Cin, 4*Cout_pad)
    b_all = jnp.tile(jnp.pad(bias, (0, Cout_pad - Cout)), 4)     # (4*Cout_pad,)

    cols, _ = _im2col(zp, 3, 3, 1, 0, 0)                         # (B*Hin*Win, 9*Cin)
    y = pallas_gemm_fused(cols, w_all, b_all, out_dtype=jnp.float32)

    y = y.reshape(B, Hin, Win, 4, Cout_pad)[..., :Cout]
    y = y.reshape(B, Hin, Win, 2, 2, Cout)
    y = jnp.transpose(y, (0, 1, 3, 2, 4, 5)).reshape(B, 2 * Hin, 2 * Win, Cout)
    return y


# ---------------------------------------------------------------------------
# Forward pass (matches SparseAutoencoder6.forward semantics)
# ---------------------------------------------------------------------------

def forward(x_nchw, params, return_mask=False):
    p = params
    C = x_nchw.shape[1]
    Cp = p["proj_w"].shape[0]                                     # 32 * C

    x = jnp.transpose(x_nchw, (0, 2, 3, 1))                       # NCHW -> NHWC

    # encode: conv + GDN fused in the GEMM epilogue, activations bf16/lane-dense
    x, _ = conv2d_fused(x, C, p["conv1_w"], p["conv1_b"], 2, 2,
                        p["gdn1_gamma"], p["gdn1_beta"])
    x, _ = conv2d_fused(x, C, p["conv2_w"], p["conv2_b"], 1, 2,
                        p["gdn2_gamma"], p["gdn2_beta"])
    x, _ = conv2d_fused(x, C, p["conv3_w"], p["conv3_b"], 1, 2,
                        p["gdn3_gamma"], p["gdn3_beta"])
    # project (bias=False) with the per-image channel max fused into the finalize
    x, cp_pad, rowmax = conv2d_fused(x, C, p["proj_w"], None, 1, 2,
                                     emit_rowmax=True)

    B, Ho, Wo, _ = x.shape

    # k-sparse masking: top-200 channels by per-channel spatial max.  The
    # module's x_mask[:, ind, ...] = 1.0 UNIONs kept channels over the batch.
    maxvals = rowmax.reshape(B, -1, cp_pad).max(axis=1)[:, :Cp]   # f32
    # TODO(synk): top_k index selection has no Pallas primitive; done in JAX.
    _, ind = jax.lax.top_k(maxvals, 200)
    mask = jnp.zeros((Cp,), jnp.float32).at[ind.reshape(-1)].set(1.0)
    mask_p = jnp.pad(mask, (0, cp_pad - Cp))

    z_flat = pallas_mask(x.reshape(B * Ho * Wo, cp_pad), mask_p)  # bf16
    z = z_flat[:, :Cp].reshape(B, Ho, Wo, Cp)

    # decode: unified sub-pixel conv-transpose (single GEMM, M = 4*Cout_pad)
    xhat = conv_transpose2d_unified(z, Cp, p["deconv1_w"], p["deconv1_b"])

    z_out = jnp.transpose(z, (0, 3, 1, 2)).astype(jnp.float32)    # NHWC -> NCHW
    xhat_out = jnp.transpose(xhat, (0, 3, 1, 2)).astype(jnp.float32)
    if return_mask:
        return z_out, xhat_out, mask
    return z_out, xhat_out


# ---------------------------------------------------------------------------
# Pure-JAX f32 reference (numeric validation of conv/GDN/proj/deconv)
# ---------------------------------------------------------------------------

def reference_forward(x_nchw, params, mask=None):
    p = params
    HIGH = jax.lax.Precision.HIGHEST

    def conv(x, w, b, s, pad):
        y = jax.lax.conv_general_dilated(
            x, w, (s, s), [(pad, pad), (pad, pad)],
            dimension_numbers=("NCHW", "OIHW", "NCHW"), precision=HIGH)
        if b is not None:
            y = y + b.reshape(1, -1, 1, 1)
        return y

    def gdn(x, gamma, beta):
        norm = jnp.einsum("ij,bjhw->bihw", gamma, x * x, precision=HIGH)
        return x * jax.lax.rsqrt(norm + beta.reshape(1, -1, 1, 1))

    x = gdn(conv(x_nchw, p["conv1_w"], p["conv1_b"], 2, 2),
            p["gdn1_gamma"], p["gdn1_beta"])
    x = gdn(conv(x, p["conv2_w"], p["conv2_b"], 1, 2),
            p["gdn2_gamma"], p["gdn2_beta"])
    x = gdn(conv(x, p["conv3_w"], p["conv3_b"], 1, 2),
            p["gdn3_gamma"], p["gdn3_beta"])
    x = conv(x, p["proj_w"], None, 1, 2)

    B, Cp, Ho, Wo = x.shape
    if mask is None:
        maxvals = jnp.max(x.reshape(B, Cp, Ho * Wo), axis=2)
        _, ind = jax.lax.top_k(maxvals, 200)
        mask = jnp.zeros((Cp,), x.dtype).at[ind.reshape(-1)].set(1.0)
    z = x * mask.reshape(1, Cp, 1, 1)

    # ConvTranspose2d(k=5, s=2, p=2, op=1) == lhs-dilated conv with flipped,
    # in/out-swapped weights and asymmetric padding (2, 3).
    w = p["deconv1_w"]                                            # (Cin, Cout, 5, 5)
    w_conv = jnp.transpose(w[:, :, ::-1, ::-1], (1, 0, 2, 3))     # (Cout, Cin, 5, 5)
    xhat = jax.lax.conv_general_dilated(
        z, w_conv, (1, 1), [(2, 3), (2, 3)], lhs_dilation=(2, 2),
        dimension_numbers=("NCHW", "OIHW", "NCHW"), precision=HIGH)
    xhat = xhat + p["deconv1_b"].reshape(1, -1, 1, 1)
    return z, xhat


# ---------------------------------------------------------------------------
# Deterministic parameter initialization (shapes from the module __init__)
# ---------------------------------------------------------------------------

def init_params(key, input_channels):
    C = input_channels
    Cp = 32 * C
    ks = jax.random.split(key, 9)

    def w(k, shape, scale=0.05):
        return scale * jax.random.normal(k, shape, jnp.float32)

    eye = jnp.eye(C, dtype=jnp.float32)
    return {
        "conv1_w": w(ks[0], (C, C, 5, 5)),          # Conv2d(C, C, 5, s=2, p=2)
        "conv1_b": w(ks[1], (C,), 0.01),
        "conv2_w": w(ks[2], (C, C, 5, 5)),          # Conv2d(C, C, 5, s=1, p=2)
        "conv2_b": w(ks[3], (C,), 0.01),
        "conv3_w": w(ks[4], (C, C, 5, 5)),          # Conv2d(C, C, 5, s=1, p=2)
        "conv3_b": w(ks[5], (C,), 0.01),
        "proj_w": w(ks[6], (Cp, C, 5, 5)),          # Conv2d(C, 32C, 5, p=2, bias=False)
        "deconv1_w": w(ks[7], (Cp, C, 5, 5)),       # ConvTranspose2d weight (in, out, kh, kw)
        "deconv1_b": w(ks[8], (C,), 0.01),
        "gdn1_gamma": 0.1 * eye, "gdn1_beta": jnp.ones((C,), jnp.float32),
        "gdn2_gamma": 0.1 * eye, "gdn2_beta": jnp.ones((C,), jnp.float32),
        "gdn3_gamma": 0.1 * eye, "gdn3_beta": jnp.ones((C,), jnp.float32),
    }


if __name__ == "__main__":
    # input_channels=8 so that 32*C = 256 >= 200 (the hardcoded top-k in forward).
    C, B, H, W = 8, 2, 16, 16
    key = jax.random.PRNGKey(0)
    kx, kp = jax.random.split(key)
    x = jax.random.normal(kx, (B, C, H, W), jnp.float32)
    params = init_params(kp, C)

    fwd = jax.jit(functools.partial(forward, return_mask=True))
    z, xhat, mask = jax.block_until_ready(fwd(x, params))

    assert z.shape == (B, 32 * C, H // 2, W // 2), z.shape
    assert xhat.shape == (B, C, H, W), xhat.shape
    assert bool(jnp.isfinite(z).all()) and bool(jnp.isfinite(xhat).all())

    # Numeric check vs the pure-JAX f32 reference.  The kernel's mask is reused
    # in the reference so a bf16 near-tie in the top-200 boundary cannot flip
    # channel selection; conv/GDN/proj/deconv numerics are fully validated.
    z_ref, xhat_ref = reference_forward(x, params, mask=mask)

    def rel(a, b):
        return float(jnp.max(jnp.abs(a - b)) / (jnp.max(jnp.abs(b)) + 1e-6))

    assert rel(z, z_ref) < 0.08, ("z mismatch", rel(z, z_ref))
    assert rel(xhat, xhat_ref) < 0.08, ("xhat mismatch", rel(xhat, xhat_ref))

    print("KERNEL_OK")
</pallas_src>

<mosaic_0001>
module attributes {stable_mosaic.version = 11 : i64} {
  func.func @_gemm_bias_gdn_kernel(%arg0: i32, %arg1: i32, %arg2: memref<128x256xbf16, #tpu.memory_space<vmem>>, %arg3: memref<256x128xbf16, #tpu.memory_space<vmem>>, %arg4: memref<1x128xf32, #tpu.memory_space<vmem>>, %arg5: memref<128x128xbf16, #tpu.memory_space<vmem>>, %arg6: memref<1x128xf32, #tpu.memory_space<vmem>>, %arg7: memref<128x128xbf16, #tpu.memory_space<vmem>>, %arg8: memref<128x128xf32, #tpu.memory_space<vmem>>) attributes {dimension_semantics = [#tpu.dimension_semantics<parallel>, #tpu.dimension_semantics<arbitrary>], iteration_bounds = array<i64: 1, 1>, scalar_prefetch = 0 : i64, scratch_operands = 1 : i64, tpu.core_type = #tpu.core_type<tc>, window_params = [{transform_indices = @transform_0, window_bounds = array<i64: 128, 256>}, {transform_indices = @transform_1, window_bounds = array<i64: 256, 128>}, {pipeline_mode = #tpu.pipeline_mode<synchronous>, transform_indices = @transform_2, window_bounds = array<i64: 1, 128>}, {pipeline_mode = #tpu.pipeline_mode<synchronous>, transform_indices = @transform_3, window_bounds = array<i64: 128, 128>}, {pipeline_mode = #tpu.pipeline_mode<synchronous>, transform_indices = @transform_4, window_bounds = array<i64: 1, 128>}, {transform_indices = @transform_5, window_bounds = array<i64: 128, 128>}]} {
    %c0_i32 = arith.constant 0 : i32
    %0 = arith.cmpi eq, %arg1, %c0_i32 : i32
    %1 = arith.extui %0 : i1 to i32
    %c0_i32_0 = arith.constant 0 : i32
    %2 = arith.cmpi ne, %1, %c0_i32_0 : i32
    scf.if %2 {
      %cst_10 = arith.constant 0.000000e+00 : f32
      %12 = vector.broadcast %cst_10 : f32 to vector<128x128xf32>
      %c0_11 = arith.constant 0 : index
      %c0_12 = arith.constant 0 : index
      %13 = vector.load %arg8[%c0_11, %c0_12] : memref<128x128xf32, #tpu.memory_space<vmem>>, vector<128x128xf32>
      tpu.vector_store %arg8[%c0_11, %c0_12], %12 {strides = array<i32>} : memref<128x128xf32, #tpu.memory_space<vmem>>, vector<128x128xf32>,
    } else {
    }
    %c0 = arith.constant 0 : index
    %c0_1 = arith.constant 0 : index
    %3 = vector.load %arg8[%c0, %c0_1] : memref<128x128xf32, #tpu.memory_space<vmem>>, vector<128x128xf32>
    %c0_2 = arith.constant 0 : index
    %c0_3 = arith.constant 0 : index
    %4 = vector.load %arg2[%c0_2, %c0_3] : memref<128x256xbf16, #tpu.memory_space<vmem>>, vector<128x256xbf16>
    %c0_4 = arith.constant 0 : index
    %c0_5 = arith.constant 0 : index
    %5 = vector.load %arg3[%c0_4, %c0_5] : memref<256x128xbf16, #tpu.memory_space<vmem>>, vector<256x128xbf16>
    %cst = arith.constant dense<0.000000e+00> : vector<128x128xf32>
    %6 = tpu.matmul %4, %5, %cst {dimension_numbers = #tpu.dot_dimension_numbers<[1], [0], [0], [1], [0, 0, 1, 1], [], []>} : vector<128x256xbf16>, vector<256x128xbf16>, vector<128x128xf32> -> vector<128x128xf32>
    %7 = arith.addf %3, %6 : vector<128x128xf32>
    %c0_6 = arith.constant 0 : index
    %c0_7 = arith.constant 0 : index
    %8 = vector.load %arg8[%c0_6, %c0_7] : memref<128x128xf32, #tpu.memory_space<vmem>>, vector<128x128xf32>
    tpu.vector_store %arg8[%c0_6, %c0_7], %7 {strides = array<i32>} : memref<128x128xf32, #tpu.memory_space<vmem>>, vector<128x128xf32>,
    %c0_i32_8 = arith.constant 0 : i32
    %9 = arith.cmpi eq, %arg1, %c0_i32_8 : i32
    %10 = arith.extui %9 : i1 to i32
    %c0_i32_9 = arith.constant 0 : i32
    %11 = arith.cmpi ne, %10, %c0_i32_9 : i32
    scf.if %11 {
      %c0_10 = arith.constant 0 : index
      %c0_11 = arith.constant 0 : index
      %12 = vector.load %arg8[%c0_10, %c0_11] : memref<128x128xf32, #tpu.memory_space<vmem>>, vector<128x128xf32>
      %c0_12 = arith.constant 0 : index
      %c0_13 = arith.constant 0 : index
      %13 = vector.load %arg4[%c0_12, %c0_13] : memref<1x128xf32, #tpu.memory_space<vmem>>, vector<1x128xf32>
      %14 = vector.broadcast %13 : vector<1x128xf32> to vector<128x128xf32>
      %15 = arith.addf %12, %14 : vector<128x128xf32>
      %16 = arith.mulf %15, %15 : vector<128x128xf32>
      %17 = arith.truncf %16 : vector<128x128xf32> to vector<128x128xbf16>
      %c0_14 = arith.constant 0 : index
      %c0_15 = arith.constant 0 : index
      %18 = vector.load %arg5[%c0_14, %c0_15] : memref<128x128xbf16, #tpu.memory_space<vmem>>, vector<128x128xbf16>
      %cst_16 = arith.constant dense<0.000000e+00> : vector<128x128xf32>
      %19 = tpu.matmul %17, %18, %cst_16 {dimension_numbers = #tpu.dot_dimension_numbers<[1], [0], [0], [1], [0, 0, 1, 1], [], []>} : vector<128x128xbf16>, vector<128x128xbf16>, vector<128x128xf32> -> vector<128x128xf32>
      %c0_17 = arith.constant 0 : index
      %c0_18 = arith.constant 0 : index
      %20 = vector.load %arg6[%c0_17, %c0_18] : memref<1x128xf32, #tpu.memory_space<vmem>>, vector<1x128xf32>
      %21 = vector.broadcast %20 : vector<1x128xf32> to vector<128x128xf32>
      %22 = arith.addf %19, %21 : vector<128x128xf32>
      %23 = math.rsqrt %22 : vector<128x128xf32>
      %24 = arith.mulf %15, %23 : vector<128x128xf32>
      %25 = arith.truncf %24 : vector<128x128xf32> to vector<128x128xbf16>
      %c0_19 = arith.constant 0 : index
      %c0_20 = arith.constant 0 : index
      %26 = vector.load %arg7[%c0_19, %c0_20] : memref<128x128xbf16, #tpu.memory_space<vmem>>, vector<128x128xbf16>
      tpu.vector_store %arg7[%c0_19, %c0_20], %25 {strides = array<i32>} : memref<128x128xbf16, #tpu.memory_space<vmem>>, vector<128x128xbf16>,
    } else {
    }
    return
  }
  func.func @transform_0(%arg0: i32, %arg1: i32) -> (i32, i32) {
    %c0_i32 = arith.constant 0 : i32
    return %arg0, %arg1 : i32, i32
  }
  func.func @transform_1(%arg0: i32, %arg1: i32) -> (i32, i32) {
    %c0_i32 = arith.constant 0 : i32
    %c0_i32_0 = arith.constant 0 : i32
    return %arg1, %c0_i32 : i32, i32
  }
  func.func @transform_2(%arg0: i32, %arg1: i32) -> (i32, i32) {
    %c0_i32 = arith.constant 0 : i32
    %c0_i32_0 = arith.constant 0 : i32
    %c0_i32_1 = arith.constant 0 : i32
    return %c0_i32, %c0_i32_0 : i32, i32
  }
  func.func @transform_3(%arg0: i32, %arg1: i32) -> (i32, i32) {
    %c0_i32 = arith.constant 0 : i32
    %c0_i32_0 = arith.constant 0 : i32
    %c0_i32_1 = arith.constant 0 : i32
    return %c0_i32, %c0_i32_0 : i32, i32
  }
  func.func @transform_4(%arg0: i32, %arg1: i32) -> (i32, i32) {
    %c0_i32 = arith.constant 0 : i32
    %c0_i32_0 = arith.constant 0 : i32
    %c0_i32_1 = arith.constant 0 : i32
    return %c0_i32, %c0_i32_0 : i32, i32
  }
  func.func @transform_5(%arg0: i32, %arg1: i32) -> (i32, i32) {
    %c0_i32 = arith.constant 0 : i32
    %c0_i32_0 = arith.constant 0 : i32
    return %arg0, %c0_i32 : i32, i32
  }
}

module attributes {stable_mosaic.version = 11 : i64} {
  func.func @_gemm_bias_rowmax_kernel(%arg0: i32, %arg1: i32, %arg2: memref<64x256xbf16, #tpu.memory_space<vmem>>, %arg3: memref<256x256xbf16, #tpu.memory_space<vmem>>, %arg4: memref<1x256xf32, #tpu.memory_space<vmem>>, %arg5: memref<64x256xbf16, #tpu.memory_space<vmem>>, %arg6: memref<1x1x256xf32, #tpu.memory_space<vmem>>, %arg7: memref<64x256xf32, #tpu.memory_space<vmem>>) attributes {dimension_semantics = [#tpu.dimension_semantics<parallel>, #tpu.dimension_semantics<arbitrary>], iteration_bounds = array<i64: 2, 1>, scalar_prefetch = 0 : i64, scratch_operands = 1 : i64, tpu.core_type = #tpu.core_type<tc>, window_params = [{transform_indices = @transform_0, window_bounds = array<i64: 64, 256>}, {transform_indices = @transform_1, window_bounds = array<i64: 256, 256>}, {pipeline_mode = #tpu.pipeline_mode<synchronous>, transform_indices = @transform_2, window_bounds = array<i64: 1, 256>}, {transform_indices = @transform_3, window_bounds = array<i64: 64, 256>}, {transform_indices = @transform_4, window_bounds = array<i64: 1, 1, 256>}]} {
    %c0_i32 = arith.constant 0 : i32
    %0 = arith.cmpi eq, %arg1, %c0_i32 : i32
    %1 = arith.extui %0 : i1 to i32
    %c0_i32_0 = arith.constant 0 : i32
    %2 = arith.cmpi ne, %1, %c0_i32_0 : i32
    scf.if %2 {
      %cst_10 = arith.constant 0.000000e+00 : f32
      %12 = vector.broadcast %cst_10 : f32 to vector<64x256xf32>
      %c0_11 = arith.constant 0 : index
      %c0_12 = arith.constant 0 : index
      %13 = vector.load %arg7[%c0_11, %c0_12] : memref<64x256xf32, #tpu.memory_space<vmem>>, vector<64x256xf32>
      tpu.vector_store %arg7[%c0_11, %c0_12], %12 {strides = array<i32>} : memref<64x256xf32, #tpu.memory_space<vmem>>, vector<64x256xf32>,
    } else {
    }
    %c0 = arith.constant 0 : index
    %c0_1 = arith.constant 0 : index
    %3 = vector.load %arg7[%c0, %c0_1] : memref<64x256xf32, #tpu.memory_space<vmem>>, vector<64x256xf32>
    %c0_2 = arith.constant 0 : index
    %c0_3 = arith.constant 0 : index
    %4 = vector.load %arg2[%c0_2, %c0_3] : memref<64x256xbf16, #tpu.memory_space<vmem>>, vector<64x256xbf16>
    %c0_4 = arith.constant 0 : index
    %c0_5 = arith.constant 0 : index
    %5 = vector.load %arg3[%c0_4, %c0_5] : memref<256x256xbf16, #tpu.memory_space<vmem>>, vector<256x256xbf16>
    %cst = arith.constant dense<0.000000e+00> : vector<64x256xf32>
    %6 = tpu.matmul %4, %5, %cst {dimension_numbers = #tpu.dot_dimension_numbers<[1], [0], [0], [1], [0, 0, 1, 1], [], []>} : vector<64x256xbf16>, vector<256x256xbf16>, vector<64x256xf32> -> vector<64x256xf32>
    %7 = arith.addf %3, %6 : vector<64x256xf32>
    %c0_6 = arith.constant 0 : index
    %c0_7 = arith.constant 0 : index
    %8 = vector.load %arg7[%c0_6, %c0_7] : memref<64x256xf32, #tpu.memory_space<vmem>>, vector<64x256xf32>
    tpu.vector_store %arg7[%c0_6, %c0_7], %7 {strides = array<i32>} : memref<64x256xf32, #tpu.memory_space<vmem>>, vector<64x256xf32>,
    %c0_i32_8 = arith.constant 0 : i32
    %9 = arith.cmpi eq, %arg1, %c0_i32_8 : i32
    %10 = arith.extui %9 : i1 to i32
    %c0_i32_9 = arith.constant 0 : i32
    %11 = arith.cmpi ne, %10, %c0_i32_9 : i32
    scf.if %11 {
      %c0_10 = arith.constant 0 : index
      %c0_11 = arith.constant 0 : index
      %12 = vector.load %arg7[%c0_10, %c0_11] : memref<64x256xf32, #tpu.memory_space<vmem>>, vector<64x256xf32>
      %c0_12 = arith.constant 0 : index
      %c0_13 = arith.constant 0 : index
      %13 = vector.load %arg4[%c0_12, %c0_13] : memref<1x256xf32, #tpu.memory_space<vmem>>, vector<1x256xf32>
      %14 = vector.broadcast %13 : vector<1x256xf32> to vector<64x256xf32>
      %15 = arith.addf %12, %14 : vector<64x256xf32>
      %16 = arith.truncf %15 : vector<64x256xf32> to vector<64x256xbf16>
      %c0_14 = arith.constant 0 : index
      %c0_15 = arith.constant 0 : index
      %17 = vector.load %arg5[%c0_14, %c0_15] : memref<64x256xbf16, #tpu.memory_space<vmem>>, vector<64x256xbf16>
      tpu.vector_store %arg5[%c0_14, %c0_15], %16 {strides = array<i32>} : memref<64x256xbf16, #tpu.memory_space<vmem>>, vector<64x256xbf16>,
      %cst_16 = arith.constant dense<0xFF800000> : vector<256xf32>
      %18 = vector.multi_reduction <maximumf>, %15, %cst_16 [0] : vector<64x256xf32> to vector<256xf32>
      %19 = vector.shape_cast %18 : vector<256xf32> to vector<1x256xf32>
      %20 = vector.shape_cast %19 : vector<1x256xf32> to vector<1x1x256xf32>
      %c0_17 = arith.constant 0 : index
      %c0_18 = arith.constant 0 : index
      %c0_19 = arith.constant 0 : index
      %21 = vector.load %arg6[%c0_17, %c0_18, %c0_19] : memref<1x1x256xf32, #tpu.memory_space<vmem>>, vector<1x1x256xf32>
      tpu.vector_store %arg6[%c0_17, %c0_18, %c0_19], %20 {strides = array<i32>} : memref<1x1x256xf32, #tpu.memory_space<vmem>>, vector<1x1x256xf32>,
    } else {
    }
    return
  }
  func.func @transform_0(%arg0: i32, %arg1: i32) -> (i32, i32) {
    %c0_i32 = arith.constant 0 : i32
    return %arg0, %arg1 : i32, i32
  }
  func.func @transform_1(%arg0: i32, %arg1: i32) -> (i32, i32) {
    %c0_i32 = arith.constant 0 : i32
    %c0_i32_0 = arith.constant 0 : i32
    return %arg1, %c0_i32 : i32, i32
  }
  func.func @transform_2(%arg0: i32, %arg1: i32) -> (i32, i32) {
    %c0_i32 = arith.constant 0 : i32
    %c0_i32_0 = arith.constant 0 : i32
    %c0_i32_1 = arith.constant 0 : i32
    return %c0_i32, %c0_i32_0 : i32, i32
  }
  func.func @transform_3(%arg0: i32, %arg1: i32) -> (i32, i32) {
    %c0_i32 = arith.constant 0 : i32
    %c0_i32_0 = arith.constant 0 : i32
    return %arg0, %c0_i32 : i32, i32
  }
  func.func @transform_4(%arg0: i32, %arg1: i32) -> (i32, i32, i32) {
    %c0_i32 = arith.constant 0 : i32
    %c0_i32_0 = arith.constant 0 : i32
    %c0_i32_1 = arith.constant 0 : i32
    return %arg0, %c0_i32, %c0_i32_0 : i32, i32, i32
  }
}

module attributes {stable_mosaic.version = 11 : i64} {
  func.func @_mask_kernel(%arg0: i32, %arg1: memref<128x256xbf16, #tpu.memory_space<vmem>>, %arg2: memref<1x256xf32, #tpu.memory_space<vmem>>, %arg3: memref<128x256xbf16, #tpu.memory_space<vmem>>) attributes {dimension_semantics = [#tpu.dimension_semantics<parallel>], iteration_bounds = array<i64: 1>, scalar_prefetch = 0 : i64, scratch_operands = 0 : i64, tpu.core_type = #tpu.core_type<tc>, window_params = [{transform_indices = @transform_0, window_bounds = array<i64: 128, 256>}, {pipeline_mode = #tpu.pipeline_mode<synchronous>, transform_indices = @transform_1, window_bounds = array<i64: 1, 256>}, {transform_indices = @transform_2, window_bounds = array<i64: 128, 256>}]} {
    %c0 = arith.constant 0 : index
    %c0_0 = arith.constant 0 : index
    %0 = vector.load %arg1[%c0, %c0_0] : memref<128x256xbf16, #tpu.memory_space<vmem>>, vector<128x256xbf16>
    %1 = arith.extf %0 : vector<128x256xbf16> to vector<128x256xf32>
    %c0_1 = arith.constant 0 : index
    %c0_2 = arith.constant 0 : index
    %2 = vector.load %arg2[%c0_1, %c0_2] : memref<1x256xf32, #tpu.memory_space<vmem>>, vector<1x256xf32>
    %3 = vector.broadcast %2 : vector<1x256xf32> to vector<128x256xf32>
    %4 = arith.mulf %1, %3 : vector<128x256xf32>
    %5 = arith.truncf %4 : vector<128x256xf32> to vector<128x256xbf16>
    %c0_3 = arith.constant 0 : index
    %c0_4 = arith.constant 0 : index
    %6 = vector.load %arg3[%c0_3, %c0_4] : memref<128x256xbf16, #tpu.memory_space<vmem>>, vector<128x256xbf16>
    tpu.vector_store %arg3[%c0_3, %c0_4], %5 {strides = array<i32>} : memref<128x256xbf16, #tpu.memory_space<vmem>>, vector<128x256xbf16>,
    return
  }
  func.func @transform_0(%arg0: i32) -> (i32, i32) {
    %c0_i32 = arith.constant 0 : i32
    %c0_i32_0 = arith.constant 0 : i32
    return %arg0, %c0_i32 : i32, i32
  }
  func.func @transform_1(%arg0: i32) -> (i32, i32) {
    %c0_i32 = arith.constant 0 : i32
    %c0_i32_0 = arith.constant 0 : i32
    %c0_i32_1 = arith.constant 0 : i32
    return %c0_i32, %c0_i32_0 : i32, i32
  }
  func.func @transform_2(%arg0: i32) -> (i32, i32) {
    %c0_i32 = arith.constant 0 : i32
    %c0_i32_0 = arith.constant 0 : i32
    return %arg0, %c0_i32 : i32, i32
  }
}

module attributes {stable_mosaic.version = 11 : i64} {
  func.func @_gemm_bias_kernel(%arg0: i32, %arg1: i32, %arg2: memref<128x768xbf16, #tpu.memory_space<vmem>>, %arg3: memref<768x512xbf16, #tpu.memory_space<vmem>>, %arg4: memref<1x512xf32, #tpu.memory_space<vmem>>, %arg5: memref<128x512xf32, #tpu.memory_space<vmem>>, %arg6: memref<128x512xf32, #tpu.memory_space<vmem>>) attributes {dimension_semantics = [#tpu.dimension_semantics<parallel>, #tpu.dimension_semantics<arbitrary>], iteration_bounds = array<i64: 1, 3>, scalar_prefetch = 0 : i64, scratch_operands = 1 : i64, tpu.core_type = #tpu.core_type<tc>, window_params = [{transform_indices = @transform_0, window_bounds = array<i64: 128, 768>}, {transform_indices = @transform_1, window_bounds = array<i64: 768, 512>}, {pipeline_mode = #tpu.pipeline_mode<synchronous>, transform_indices = @transform_2, window_bounds = array<i64: 1, 512>}, {transform_indices = @transform_3, window_bounds = array<i64: 128, 512>}]} {
    %c0_i32 = arith.constant 0 : i32
    %0 = arith.cmpi eq, %arg1, %c0_i32 : i32
    %1 = arith.extui %0 : i1 to i32
    %c0_i32_0 = arith.constant 0 : i32
    %2 = arith.cmpi ne, %1, %c0_i32_0 : i32
    scf.if %2 {
      %cst_9 = arith.constant 0.000000e+00 : f32
      %12 = vector.broadcast %cst_9 : f32 to vector<128x512xf32>
      %c0_10 = arith.constant 0 : index
      %c0_11 = arith.constant 0 : index
      %13 = vector.load %arg6[%c0_10, %c0_11] : memref<128x512xf32, #tpu.memory_space<vmem>>, vector<128x512xf32>
      tpu.vector_store %arg6[%c0_10, %c0_11], %12 {strides = array<i32>} : memref<128x512xf32, #tpu.memory_space<vmem>>, vector<128x512xf32>,
    } else {
    }
    %c0 = arith.constant 0 : index
    %c0_1 = arith.constant 0 : index
    %3 = vector.load %arg6[%c0, %c0_1] : memref<128x512xf32, #tpu.memory_space<vmem>>, vector<128x512xf32>
    %c0_2 = arith.constant 0 : index
    %c0_3 = arith.constant 0 : index
    %4 = vector.load %arg2[%c0_2, %c0_3] : memref<128x768xbf16, #tpu.memory_space<vmem>>, vector<128x768xbf16>
    %c0_4 = arith.constant 0 : index
    %c0_5 = arith.constant 0 : index
    %5 = vector.load %arg3[%c0_4, %c0_5] : memref<768x512xbf16, #tpu.memory_space<vmem>>, vector<768x512xbf16>
    %cst = arith.constant dense<0.000000e+00> : vector<128x512xf32>
    %6 = tpu.matmul %4, %5, %cst {dimension_numbers = #tpu.dot_dimension_numbers<[1], [0], [0], [1], [0, 0, 1, 1], [], []>} : vector<128x768xbf16>, vector<768x512xbf16>, vector<128x512xf32> -> vector<128x512xf32>
    %7 = arith.addf %3, %6 : vector<128x512xf32>
    %c0_6 = arith.constant 0 : index
    %c0_7 = arith.constant 0 : index
    %8 = vector.load %arg6[%c0_6, %c0_7] : memref<128x512xf32, #tpu.memory_space<vmem>>, vector<128x512xf32>
    tpu.vector_store %arg6[%c0_6, %c0_7], %7 {strides = array<i32>} : memref<128x512xf32, #tpu.memory_space<vmem>>, vector<128x512xf32>,
    %c2_i32 = arith.constant 2 : i32
    %9 = arith.cmpi eq, %arg1, %c2_i32 : i32
    %10 = arith.extui %9 : i1 to i32
    %c0_i32_8 = arith.constant 0 : i32
    %11 = arith.cmpi ne, %10, %c0_i32_8 : i32
    scf.if %11 {
      %c0_9 = arith.constant 0 : index
      %c0_10 = arith.constant 0 : index
      %12 = vector.load %arg6[%c0_9, %c0_10] : memref<128x512xf32, #tpu.memory_space<vmem>>, vector<128x512xf32>
      %c0_11 = arith.constant 0 : index
      %c0_12 = arith.constant 0 : index
      %13 = vector.load %arg4[%c0_11, %c0_12] : memref<1x512xf32, #tpu.memory_space<vmem>>, vector<1x512xf32>
      %14 = vector.broadcast %13 : vector<1x512xf32> to vector<128x512xf32>
      %15 = arith.addf %12, %14 : vector<128x512xf32>
      %c0_13 = arith.constant 0 : index
      %c0_14 = arith.constant 0 : index
      %16 = vector.load %arg5[%c0_13, %c0_14] : memref<128x512xf32, #tpu.memory_space<vmem>>, vector<128x512xf32>
      tpu.vector_store %arg5[%c0_13, %c0_14], %15 {strides = array<i32>} : memref<128x512xf32, #tpu.memory_space<vmem>>, vector<128x512xf32>,
    } else {
    }
    return
  }
  func.func @transform_0(%arg0: i32, %arg1: i32) -> (i32, i32) {
    %c0_i32 = arith.constant 0 : i32
    return %arg0, %arg1 : i32, i32
  }
  func.func @transform_1(%arg0: i32, %arg1: i32) -> (i32, i32) {
    %c0_i32 = arith.constant 0 : i32
    %c0_i32_0 = arith.constant 0 : i32
    return %arg1, %c0_i32 : i32, i32
  }
  func.func @transform_2(%arg0: i32, %arg1: i32) -> (i32, i32) {
    %c0_i32 = arith.constant 0 : i32
    %c0_i32_0 = arith.constant 0 : i32
    %c0_i32_1 = arith.constant 0 : i32
    return %c0_i32, %c0_i32_0 : i32, i32
  }
  func.func @transform_3(%arg0: i32, %arg1: i32) -> (i32, i32) {
    %c0_i32 = arith.constant 0 : i32
    %c0_i32_0 = arith.constant 0 : i32
    return %arg0, %c0_i32 : i32, i32
  }
}

</mosaic_0001>

<bundles_post_ra>
// kernel: forward.6
= control target key start
LH: loop header
LB: loop body
LE: loop exit
PB: predicated region body
PF: predicated region fallthrough
CT: control target
= control target key end

     0   :  { %s1503_s1 = inlined_call_operand.vmem [shape: bf16[256,128], index: 1, kind: input, shape index: {}]   ;;  %s1504_s0 = inlined_call_operand.vmem [shape: bf16[128,256], index: 0, kind: input, shape index: {}]   ;;  %s1505_s2 = inlined_call_operand.vmem [shape: f32[1,128], index: 2, kind: input, shape index: {}]   ;;  %s1506_s3 = inlined_call_operand.vmem [shape: bf16[128,128], index: 3, kind: input, shape index: {}]   ;;  %s1507_s4 = inlined_call_operand.vmem [shape: f32[1,128], index: 4, kind: input, shape index: {}]   ;;  %s1508_s5 = inlined_call_operand.vmem [shape: bf16[128,128], index: 5, kind: output, shape index: {}]  }
   0x1   :  { %v985_v0 = vld [vmem:[%s1503_s1 + $0x38] sm:$0xff]  ;;  %v984_v2 = vld [vmem:[%s1503_s1 + $0x30] sm:$0xff]  ;;  %v983_v4 = vld [vmem:[%s1503_s1 + $0x28] sm:$0xff] }
   0x2   :  { %v993_v1 = vld [vmem:[%s1503_s1 + $0x78] sm:$0xff]  ;;  %280 = vmatpush.bf16.msra.mxu0 %v985_v0  ;;  %1049 = vmatpush.bf16.msra.mxu3 %v985_v0  ;;  %v992_v3 = vld [vmem:[%s1503_s1 + $0x70] sm:$0xff]  ;;  %v991_v5 = vld [vmem:[%s1503_s1 + $0x68] sm:$0xff] }
   0x3   :  { %329 = vmatpush.bf16.msra.mxu1 %v993_v1  ;;  %v982_v6 = vld [vmem:[%s1503_s1 + $0x20] sm:$0xff]  ;;  %v981_v8 = vld [vmem:[%s1503_s1 + $0x18] sm:$0xff]  ;;  %v980_v10 = vld [vmem:[%s1503_s1 + $0x10] sm:$0xff] }
   0x4   :  { %v990_v7 = vld [vmem:[%s1503_s1 + $0x60] sm:$0xff]  ;;  %v989_v9 = vld [vmem:[%s1503_s1 + $0x58] sm:$0xff]  ;;  %v988_v11 = vld [vmem:[%s1503_s1 + $0x50] sm:$0xff] }
   0x5   :  { %v979_v12 = vld [vmem:[%s1503_s1 + $0x8] sm:$0xff]  ;;  %v978_v14 = vld [vmem:[%s1503_s1] sm:$0xff]  ;;  %v812_v25 = vld [vmem:[%s1504_s0 + $0x10] sm:$0xf] }
   0x6   :  { %281 = vmatpush.bf16.msra.mxu0 %v984_v2  ;;  %1050 = vmatpush.bf16.msra.mxu3 %v984_v2  ;;  %v987_v13 = vld [vmem:[%s1503_s1 + $0x48] sm:$0xff]  ;;  %v804_v15 = vld [vmem:[%s1504_s0] sm:$0xf]  ;;  %v962_v20 = vld [vmem:[%s1504_s0 + $0x4] sm:$0xf] }
   0x7   :  { %330 = vmatpush.bf16.msra.mxu1 %v992_v3  ;;  %v963_v16 = vld [vmem:[%s1504_s0 + $0x4] sm:$0xf0]  ;;  %v852_v17 = vld [vmem:[%s1504_s0 + $0x60] sm:$0xf]  ;;  %v806_v21 = vld [vmem:[%s1504_s0 + $0x8] sm:$0xf0] }
   0x8   :  { %v975_v18 = vld [vmem:[%s1504_s0 + $0x64] sm:$0xf0]  ;;  %v986_v19 = vld [vmem:[%s1503_s1 + $0x40] sm:$0xff]  ;;  %v805_v22 = vor.u32 %v963_v16, %v804_v15  ;;  %v809_v24 = vor.u32 %v962_v20, %v806_v21  ;;  %v965_v26 = vld [vmem:[%s1504_s0 + $0x14] sm:$0xf0] }
   0x9   :  { %v853_v23 = vor.u32 %v975_v18, %v852_v17  ;;  %v860_v27 = vld [vmem:[%s1504_s0 + $0x70] sm:$0xf]  ;;  %v977_v28 = vld [vmem:[%s1504_s0 + $0x74] sm:$0xf0]  ;;  %v964_v29 = vld [vmem:[%s1504_s0 + $0x14] sm:$0xf]  ;;  %v813_v31 = vor.u32 %v965_v26, %v812_v25 }
   0xa   :  { %282 = vmatpush.bf16.msra.mxu0 %v983_v4  ;;  %1051 = vmatpush.bf16.msra.mxu3 %v983_v4  ;;  %v814_v30 = vld [vmem:[%s1504_s0 + $0x18] sm:$0xf0]  ;;  %v861_v32 = vor.u32 %v977_v28, %v860_v27  ;;  %v820_v34 = vld [vmem:[%s1504_s0 + $0x20] sm:$0xf]  ;;  %v967_v35 = vld [vmem:[%s1504_s0 + $0x24] sm:$0xf0] }
   0xb   :  { %331 = vmatpush.bf16.msra.mxu1 %v991_v5  ;;  %v817_v33 = vor.u32 %v964_v29, %v814_v30  ;;  %v974_v36 = vld [vmem:[%s1504_s0 + $0x64] sm:$0xf]  ;;  %v854_v37 = vld [vmem:[%s1504_s0 + $0x68] sm:$0xf0]  ;;  %v821_v40 = vor.u32 %v967_v35, %v820_v34  ;;  %v828_v43 = vld [vmem:[%s1504_s0 + $0x30] sm:$0xf] }
   0xc   :  { %v966_v38 = vld [vmem:[%s1504_s0 + $0x24] sm:$0xf]  ;;  %v822_v39 = vld [vmem:[%s1504_s0 + $0x28] sm:$0xf0]  ;;  %v857_v41 = vor.u32 %v974_v36, %v854_v37  ;;  %v969_v44 = vld [vmem:[%s1504_s0 + $0x34] sm:$0xf0] }
   0xd   :  { %v825_v42 = vor.u32 %v966_v38, %v822_v39  ;;  %v976_v45 = vld [vmem:[%s1504_s0 + $0x74] sm:$0xf]  ;;  %v862_v46 = vld [vmem:[%s1504_s0 + $0x78] sm:$0xf0]  ;;  %v829_v49 = vor.u32 %v969_v44, %v828_v43  ;;  %v999_v54 = vld [vmem:[%s1506_s3 + $0x28] sm:$0xff] }
   0xe   :  { %283 = vmatpush.bf16.msra.mxu0 %v982_v6  ;;  %1052 = vmatpush.bf16.msra.mxu3 %v982_v6  ;;  %v968_v47 = vld [vmem:[%s1504_s0 + $0x34] sm:$0xf]  ;;  %v830_v48 = vld [vmem:[%s1504_s0 + $0x38] sm:$0xf0]  ;;  %v865_v50 = vor.u32 %v976_v45, %v862_v46  ;;  %v836_v55 = vld [vmem:[%s1504_s0 + $0x40] sm:$0xf] }
   0xf   :  { %332 = vmatpush.bf16.msra.mxu1 %v990_v7  ;;  %v833_v51 = vor.u32 %v968_v47, %v830_v48  ;;  %v1001_v52 = vld [vmem:[%s1506_s3 + $0x38] sm:$0xff]  ;;  %v1000_v53 = vld [vmem:[%s1506_s3 + $0x30] sm:$0xff]  ;;  %v971_v56 = vld [vmem:[%s1504_s0 + $0x44] sm:$0xf0] }
  0x10   :  { %541 = vmatpush.bf16.msra.mxu2 %v1001_v52  ;;  %v970_v57 = vld [vmem:[%s1504_s0 + $0x44] sm:$0xf]  ;;  %v838_v58 = vld [vmem:[%s1504_s0 + $0x48] sm:$0xf0]  ;;  %v837_v60 = vor.u32 %v971_v56, %v836_v55  ;;  %v844_v62 = vld [vmem:[%s1504_s0 + $0x50] sm:$0xf] }
  0x11   :  { %v998_v59 = vld [vmem:[%s1506_s3 + $0x20] sm:$0xff]  ;;  %v841_v61 = vor.u32 %v970_v57, %v838_v58  ;;  %v973_v63 = vld [vmem:[%s1504_s0 + $0x54] sm:$0xf0]  ;;  %v972_v0 = vld [vmem:[%s1504_s0 + $0x54] sm:$0xf] }
  0x12   :  { %284 = vmatpush.bf16.msra.mxu0 %v981_v8  ;;  %1053 = vmatpush.bf16.msra.mxu3 %v981_v8  ;;  %v845_v2 = vor.u32 %v973_v63, %v844_v62  ;;  %v997_v4 = vld [vmem:[%s1506_s3 + $0x18] sm:$0xff]  ;;  %v995_v6 = vld [vmem:[%s1506_s3 + $0x8] sm:$0xff] }
  0x13   :  { %333 = vmatpush.bf16.msra.mxu1 %v989_v9 }
  0x14   :  { %542 = vmatpush.bf16.msra.mxu2 %v1000_v53 }
  0x16   :  { %285 = vmatpush.bf16.msra.mxu0 %v980_v10  ;;  %1054 = vmatpush.bf16.msra.mxu3 %v980_v10 }
  0x17   :  { %334 = vmatpush.bf16.msra.mxu1 %v988_v11 }
  0x18   :  { %543 = vmatpush.bf16.msra.mxu2 %v999_v54 }
  0x1a   :  { %286 = vmatpush.bf16.msra.mxu0 %v979_v12  ;;  %1055 = vmatpush.bf16.msra.mxu3 %v979_v12 }
  0x1b   :  { %335 = vmatpush.bf16.msra.mxu1 %v987_v13 }
  0x1c   :  { %544 = vmatpush.bf16.msra.mxu2 %v998_v59 }
  0x1e   :  { %287 = vmatpush.bf16.msra.mxu0 %v978_v14  ;;  %1056 = vmatpush.bf16.msra.mxu3 %v978_v14 }
  0x1f   :  { %336 = vmatpush.bf16.msra.mxu1 %v986_v19 }
  0x20   :  { %545 = vmatpush.bf16.msra.mxu2 %v997_v4 }
  0x21   :  { %288 = vmatmul.bf16.vlgmr.msra.gmra.mxu0 %v805_v22  ;;  %318 = vmatmul.bf16.vlgmr.msra.gmra.mxu3 %v853_v23 }
  0x22   :  { %1057 = vmatpush.bf16.msrb.mxu3 %v993_v1  ;;  %337 = vmatmul.bf16.vlgmr.msra.gmra.mxu1 %v809_v24  ;;  %v846_v1 = vld [vmem:[%s1504_s0 + $0x58] sm:$0xf0] }
  0x26   :  { %1058 = vmatpush.bf16.msrb.mxu3 %v992_v3  ;;  %v849_v3 = vor.u32 %v972_v0, %v846_v1 }
  0x2a   :  { %1059 = vmatpush.bf16.msrb.mxu3 %v991_v5  ;;  %v996_v5 = vld [vmem:[%s1506_s3 + $0x10] sm:$0xff] }
  0x2b   :  { %546 = vmatpush.bf16.msra.mxu2 %v996_v5 }
  0x2e   :  { %1060 = vmatpush.bf16.msrb.mxu3 %v990_v7  ;;  %v994_v7 = vld [vmem:[%s1506_s3] sm:$0xff] }
  0x2f   :  { %547 = vmatpush.bf16.msra.mxu2 %v995_v6 }
  0x31   :  { %293 = vmatmul.bf16.gmra.mxu0 %v813_v31  ;;  %323 = vmatmul.bf16.gmra.mxu3 %v861_v32 }
  0x32   :  { %1061 = vmatpush.bf16.msrb.mxu3 %v989_v9  ;;  %342 = vmatmul.bf16.gmra.mxu1 %v817_v33 }
  0x33   :  { %548 = vmatpush.bf16.msra.mxu2 %v994_v7 }
  0x36   :  { %1062 = vmatpush.bf16.msrb.mxu3 %v988_v11  ;;  %v1308_v11 = vld [vmem:[%s1505_s2] ss:$0 sm:$0xff] }
  0x3a   :  { %1063 = vmatpush.bf16.msrb.mxu3 %v987_v13 }
  0x3e   :  { %1064 = vmatpush.bf16.msrb.mxu3 %v986_v19 }
  0x41   :  { %298 = vmatmul.bf16.gmra.mxu0 %v821_v40  ;;  %367 = vmatmul.bf16.vlgmr.msrb.gmra.mxu3 %v857_v41 }
  0x42   :  { %347 = vmatmul.bf16.gmra.mxu1 %v825_v42  ;;  %1065 = vmatpush.bf16.msra.mxu3 %v1001_v52 }
  0x46   :  { %1066 = vmatpush.bf16.msra.mxu3 %v1000_v53 }
  0x4a   :  { %1067 = vmatpush.bf16.msra.mxu3 %v999_v54 }
  0x4e   :  { %1068 = vmatpush.bf16.msra.mxu3 %v998_v59 }
  0x51   :  { %303 = vmatmul.bf16.gmra.mxu0 %v829_v49  ;;  %372 = vmatmul.bf16.gmra.mxu3 %v865_v50 }
  0x52   :  { %352 = vmatmul.bf16.gmra.mxu1 %v833_v51  ;;  %1069 = vmatpush.bf16.msra.mxu3 %v997_v4 }
  0x56   :  { %1070 = vmatpush.bf16.msra.mxu3 %v996_v5 }
  0x5a   :  { %1071 = vmatpush.bf16.msra.mxu3 %v995_v6 }
  0x5e   :  { %1072 = vmatpush.bf16.msra.mxu3 %v994_v7 }
  0x61   :  { %308 = vmatmul.bf16.gmra.mxu0 %v837_v60 }
  0x62   :  { %357 = vmatmul.bf16.gmra.mxu1 %v841_v61 }
  0x71   :  { %313 = vmatmul.bf16.gmra.mxu0 %v845_v2 }
  0x72   :  { %362 = vmatmul.bf16.gmra.mxu1 %v849_v3 }
  0x9e   :  { %v289_v8 = vpop.f32.mrf.mxu0 }
  0x9f   :  { %v338_v9 = vpop.f32.mrf.mxu1 }
  0xa0   :  { %v339_v10 = vadd.f32 %v338_v9, %v289_v8 }
  0xa2   :  { %v1311_v15 = vadd.f32 %v1308_v11, %v339_v10 }
  0xa4   :  { %v319_v12 = vpop.f32.mrf.mxu3  ;;  %v449_v19 = vmul.f32 %v1311_v15, %v1311_v15 }
  0xa6   :  { %v291_v13 = vpop.f32.mrf.mxu0 }
  0xa7   :  { %v340_v14 = vpop.f32.mrf.mxu1 }
  0xa8   :  { %v341_v16 = vadd.f32 %v340_v14, %v291_v13 }
  0xaa   :  { %v1314_v17 = vadd.f32 %v1308_v11, %v341_v16 }
  0xac   :  { %v321_v18 = vpop.f32.mrf.mxu3  ;;  %v450_v20 = vmul.f32 %v1314_v17, %v1314_v17 }
  0xae   :  { %v294_v21 = vpop.f32.mrf.mxu0  ;;  %v465_v22 = vpack.c.bf16 %v450_v20, %v449_v19 }
  0xaf   :  { %v343_v23 = vpop.f32.mrf.mxu1 }
  0xb0   :  { %549 = vmatmul.bf16.vlgmr.msra.gmra.mxu2 %v465_v22  ;;  %v344_v24 = vadd.f32 %v343_v23, %v294_v21 }
  0xb2   :  { %v1321_v28 = vadd.f32 %v1308_v11, %v344_v24 }
  0xb4   :  { %v324_v25 = vpop.f32.mrf.mxu3  ;;  %v451_v32 = vmul.f32 %v1321_v28, %v1321_v28 }
  0xb6   :  { %v296_v26 = vpop.f32.mrf.mxu0 }
  0xb7   :  { %v345_v27 = vpop.f32.mrf.mxu1 }
  0xb8   :  { %v346_v29 = vadd.f32 %v345_v27, %v296_v26 }
  0xba   :  { %v1324_v30 = vadd.f32 %v1308_v11, %v346_v29 }
  0xbc   :  { %v326_v31 = vpop.f32.mrf.mxu3  ;;  %v452_v33 = vmul.f32 %v1324_v30, %v1324_v30 }
  0xbe   :  { %v299_v34 = vpop.f32.mrf.mxu0  ;;  %v466_v35 = vpack.c.bf16 %v452_v33, %v451_v32 }
  0xbf   :  { %v348_v36 = vpop.f32.mrf.mxu1 }
  0xc0   :  { %554 = vmatmul.bf16.gmra.mxu2 %v466_v35  ;;  %v349_v37 = vadd.f32 %v348_v36, %v299_v34 }
  0xc2   :  { %v1331_v41 = vadd.f32 %v1308_v11, %v349_v37 }
  0xc4   :  { %v368_v38 = vpop.f32.mrf.mxu3  ;;  %v453_v46 = vmul.f32 %v1331_v41, %v1331_v41 }
  0xc5   :  { %v369_v43 = vadd.f32 %v368_v38, %v319_v12  ;;  %v1393_v38 = vld [vmem:[%s1507_s4] ss:$0 sm:$0xff] }
  0xc6   :  { %v301_v39 = vpop.f32.mrf.mxu0 }
  0xc7   :  { %v350_v40 = vpop.f32.mrf.mxu1  ;;  %v1341_v48 = vadd.f32 %v1308_v11, %v369_v43 }
  0xc8   :  { %v351_v42 = vadd.f32 %v350_v40, %v301_v39 }
  0xc9   :  { %v461_v54 = vmul.f32 %v1341_v48, %v1341_v48 }
  0xca   :  { %v1334_v44 = vadd.f32 %v1308_v11, %v351_v42 }
  0xcc   :  { %v370_v45 = vpop.f32.mrf.mxu3  ;;  %v454_v47 = vmul.f32 %v1334_v44, %v1334_v44 }
  0xcd   :  { %v371_v49 = vadd.f32 %v370_v45, %v321_v18 }
  0xce   :  { %v304_v50 = vpop.f32.mrf.mxu0  ;;  %v467_v51 = vpack.c.bf16 %v454_v47, %v453_v46 }
  0xcf   :  { %v1344_v52 = vadd.f32 %v1308_v11, %v371_v49  ;;  %v353_v53 = vpop.f32.mrf.mxu1 }
  0xd0   :  { %559 = vmatmul.bf16.gmra.mxu2 %v467_v51  ;;  %v354_v57 = vadd.f32 %v353_v53, %v304_v50 }
  0xd1   :  { %v462_v55 = vmul.f32 %v1344_v52, %v1344_v52 }
  0xd2   :  { %v1351_v61 = vadd.f32 %v1308_v11, %v354_v57 }
  0xd3   :  { %v471_v56 = vpack.c.bf16 %v462_v55, %v461_v54 }
  0xd4   :  { %v373_v58 = vpop.f32.mrf.mxu3  ;;  %v455_v2 = vmul.f32 %v1351_v61, %v1351_v61 }
  0xd5   :  { %579 = vmatmul.bf16.vlgmr.msra.gmra.mxu3 %v471_v56  ;;  %v374_v63 = vadd.f32 %v373_v58, %v324_v25 }
  0xd6   :  { %v306_v59 = vpop.f32.mrf.mxu0 }
  0xd7   :  { %v355_v60 = vpop.f32.mrf.mxu1  ;;  %v1361_v4 = vadd.f32 %v1308_v11, %v374_v63 }
  0xd8   :  { %v356_v62 = vadd.f32 %v355_v60, %v306_v59 }
  0xd9   :  { %v463_v10 = vmul.f32 %v1361_v4, %v1361_v4 }
  0xda   :  { %v1354_v0 = vadd.f32 %v1308_v11, %v356_v62 }
  0xdc   :  { %v375_v1 = vpop.f32.mrf.mxu3  ;;  %v456_v3 = vmul.f32 %v1354_v0, %v1354_v0 }
  0xdd   :  { %v376_v5 = vadd.f32 %v375_v1, %v326_v31 }
  0xde   :  { %v309_v6 = vpop.f32.mrf.mxu0  ;;  %v468_v7 = vpack.c.bf16 %v456_v3, %v455_v2 }
  0xdf   :  { %v1364_v8 = vadd.f32 %v1308_v11, %v376_v5  ;;  %v358_v9 = vpop.f32.mrf.mxu1 }
  0xe0   :  { %564 = vmatmul.bf16.gmra.mxu2 %v468_v7  ;;  %v359_v14 = vadd.f32 %v358_v9, %v309_v6 }
  0xe1   :  { %v464_v12 = vmul.f32 %v1364_v8, %v1364_v8 }
  0xe2   :  { %v1371_v19 = vadd.f32 %v1308_v11, %v359_v14 }
  0xe3   :  { %v472_v13 = vpack.c.bf16 %v464_v12, %v463_v10 }
  0xe4   :  { %v457_v22 = vmul.f32 %v1371_v19, %v1371_v19 }
  0xe5   :  { %584 = vmatmul.bf16.gmra.mxu3 %v472_v13 }
  0xe6   :  { %v311_v16 = vpop.f32.mrf.mxu0 }
  0xe7   :  { %v360_v18 = vpop.f32.mrf.mxu1 }
  0xe8   :  { %v361_v20 = vadd.f32 %v360_v18, %v311_v16 }
  0xea   :  { %v1374_v21 = vadd.f32 %v1308_v11, %v361_v20 }
  0xec   :  { %v458_v23 = vmul.f32 %v1374_v21, %v1374_v21 }
  0xee   :  { %v314_v24 = vpop.f32.mrf.mxu0  ;;  %v469_v25 = vpack.c.bf16 %v458_v23, %v457_v22 }
  0xef   :  { %v363_v26 = vpop.f32.mrf.mxu1 }
  0xf0   :  { %569 = vmatmul.bf16.gmra.mxu2 %v469_v25  ;;  %v364_v27 = vadd.f32 %v363_v26, %v314_v24 }
  0xf2   :  { %v1381_v32 = vadd.f32 %v1308_v11, %v364_v27 }
  0xf4   :  { %v459_v35 = vmul.f32 %v1381_v32, %v1381_v32 }
  0xf6   :  { %v316_v29 = vpop.f32.mrf.mxu0 }
  0xf7   :  { %v365_v31 = vpop.f32.mrf.mxu1 }
  0xf8   :  { %v366_v33 = vadd.f32 %v365_v31, %v316_v29 }
  0xfa   :  { %v1384_v34 = vadd.f32 %v1308_v11, %v366_v33 }
  0xfc   :  { %v460_v36 = vmul.f32 %v1384_v34, %v1384_v34 }
  0xfe   :  { %v470_v37 = vpack.c.bf16 %v460_v36, %v459_v35 }
 0x100   :  { %574 = vmatmul.bf16.gmra.mxu2 %v470_v37 }
 0x133   :  { %v550_v39 = vpop.f32.mrf.mxu2 }
 0x134   :  { %v551_v40 = vadd.f32 %v1393_v38, %v550_v39 }
 0x136   :  { %1075 = vrsqrt.f32 %v551_v40  ;;  %vm596_vm1 = vweird.f32 %v551_v40 }
 0x13b   :  { %v552_v42 = vpop.f32.mrf.mxu2 }
 0x13c   :  { %v1076_v11 = vpop.eup %1075  ;;  %v553_v43 = vadd.f32 %v1393_v38, %v552_v42 }
 0x13d   :  { %v591_v45 = vmul.f32 %v1076_v11, %v551_v40  ;;  %vm597_vm0 = vweird.f32 %v1076_v11 }
 0x13e   :  { %1077 = vrsqrt.f32 %v553_v43  ;;  %vm598_vm3 = vmor %vm596_vm1, %vm597_vm0  ;;  %vm606_vm4 = vweird.f32 %v553_v43 }
 0x13f   :  { %v592_v46 = vmul.f32 %v1076_v11, %v591_v45 }
 0x141   :  { %v593_v47 = vmul.f32 0.5, %v592_v46 }
 0x143   :  { %v555_v49 = vpop.f32.mrf.mxu2  ;;  %v594_v53 = vsub.f32 1.5, %v593_v47 }
 0x144   :  { %v1078_v50 = vpop.eup %1077  ;;  %v556_v51 = vadd.f32 %v1393_v38, %v555_v49 }
 0x145   :  { %v601_v54 = vmul.f32 %v1078_v50, %v553_v43  ;;  %v595_v56 = vmul.f32 %v1076_v11, %v594_v53  ;;  %vm607_vm2 = vweird.f32 %v1078_v50 }
 0x146   :  { %1079 = vrsqrt.f32 %v556_v51  ;;  %vm608_vm5 = vmor %vm606_vm4, %vm607_vm2  ;;  %vm616_vm7 = vweird.f32 %v556_v51 }
 0x147   :  { %v602_v55 = vmul.f32 %v1078_v50, %v601_v54  ;;  %v599_v63 = vsel %vm598_vm3, %v1076_v11, %v595_v56 }
 0x148   :  { %v750_v6 = vmul.f32 %v599_v63, %v1311_v15 }
 0x149   :  { %v603_v57 = vmul.f32 0.5, %v602_v55 }
 0x14b   :  { %v604_v58 = vsub.f32 1.5, %v603_v57  ;;  %v557_v59 = vpop.f32.mrf.mxu2 }
 0x14c   :  { %v1080_v60 = vpop.eup %1079  ;;  %v558_v62 = vadd.f32 %v1393_v38, %v557_v59 }
 0x14d   :  { %v605_v1 = vmul.f32 %v1078_v50, %v604_v58  ;;  %v611_v2 = vmul.f32 %v1080_v60, %v556_v51  ;;  %vm617_vm6 = vweird.f32 %v1080_v60 }
 0x14e   :  { %1081 = vrsqrt.f32 %v558_v62  ;;  %vm618_vm9 = vmor %vm616_vm7, %vm617_vm6  ;;  %vm626_vm10 = vweird.f32 %v558_v62 }
 0x14f   :  { %v609_v3 = vsel %vm608_vm5, %v1078_v50, %v605_v1  ;;  %v612_v5 = vmul.f32 %v1080_v60, %v611_v2 }
 0x150   :  { %v751_v7 = vmul.f32 %v609_v3, %v1314_v17 }
 0x151   :  { %v613_v9 = vmul.f32 0.5, %v612_v5 }
 0x152   :  { %v1005_v10 = vpack.c.bf16 %v751_v7, %v750_v6 }
 0x153   :  { %v560_v12 = vpop.f32.mrf.mxu2  ;;  %v614_v16 = vsub.f32 1.5, %v613_v9 }
 0x154   :  { %v1082_v13 = vpop.eup %1081  ;;  %1006 = vst [vmem:[%s1508_s5] sm:$0xff] %v1005_v10   ;;  %v561_v14 = vadd.f32 %v1393_v38, %v560_v12 }
 0x155   :  { %v621_v18 = vmul.f32 %v1082_v13, %v558_v62  ;;  %v615_v23 = vmul.f32 %v1080_v60, %v614_v16  ;;  %vm627_vm8 = vweird.f32 %v1082_v13 }
 0x156   :  { %1083 = vrsqrt.f32 %v561_v14  ;;  %vm628_vm11 = vmor %vm626_vm10, %vm627_vm8  ;;  %vm636_vm13 = vweird.f32 %v561_v14 }
 0x157   :  { %v622_v20 = vmul.f32 %v1082_v13, %v621_v18  ;;  %v619_v29 = vsel %vm618_vm9, %v1080_v60, %v615_v23 }
 0x158   :  { %v580_v22 = vpop.f32.mrf.mxu3  ;;  %v752_v37 = vmul.f32 %v619_v29, %v1321_v28 }
 0x159   :  { %v623_v15 = vmul.f32 0.5, %v622_v20  ;;  %v1406_v17 = vadd.f32 %v1393_v38, %v580_v22 }
 0x15b   :  { %v624_v24 = vsub.f32 1.5, %v623_v15  ;;  %1085 = vrsqrt.f32 %v1406_v17  ;;  %v562_v25 = vpop.f32.mrf.mxu2  ;;  %vm716_vm3 = vweird.f32 %v1406_v17 }
 0x15c   :  { %v1084_v26 = vpop.eup %1083  ;;  %v563_v27 = vadd.f32 %v1393_v38, %v562_v25 }
 0x15d   :  { %v625_v31 = vmul.f32 %v1082_v13, %v624_v24  ;;  %v631_v33 = vmul.f32 %v1084_v26, %v561_v14  ;;  %vm637_vm12 = vweird.f32 %v1084_v26 }
 0x15e   :  { %1087 = vrsqrt.f32 %v563_v27  ;;  %vm638_vm15 = vmor %vm636_vm13, %vm637_vm12  ;;  %vm646_vm0 = vweird.f32 %v563_v27 }
 0x15f   :  { %v629_v35 = vsel %vm628_vm11, %v1082_v13, %v625_v31  ;;  %v632_v36 = vmul.f32 %v1084_v26, %v631_v33 }
 0x160   :  { %v753_v39 = vmul.f32 %v629_v35, %v1324_v30  ;;  %v582_v40 = vpop.f32.mrf.mxu3 }
 0x161   :  { %v1412_v42 = vpop.eup %1085  ;;  %v633_v11 = vmul.f32 0.5, %v632_v36  ;;  %v583_v43 = vadd.f32 %v1393_v38, %v582_v40 }
 0x162   :  { %v1010_v45 = vpack.c.bf16 %v753_v39, %v752_v37  ;;  %v711_v46 = vmul.f32 %v1412_v42, %v1406_v17  ;;  %vm717_vm1 = vweird.f32 %v1412_v42 }
 0x163   :  { %1089 = vrsqrt.f32 %v583_v43  ;;  %v565_v47 = vpop.f32.mrf.mxu2  ;;  %v634_v50 = vsub.f32 1.5, %v633_v11  ;;  %vm1445_vm5 = vmor %vm716_vm3, %vm717_vm1  ;;  %vm726_vm6 = vweird.f32 %v583_v43 }
 0x164   :  { %v1088_v49 = vpop.eup %1087  ;;  %1042 = vst [vmem:[%s1508_s5 + $0x8] sm:$0xff] %v1010_v45   ;;  %v712_v28 = vmul.f32 %v1412_v42, %v711_v46  ;;  %v1422_v30 = vadd.f32 %v1393_v38, %v565_v47 }
 0x165   :  { %v641_v51 = vmul.f32 %v1088_v49, %v563_v27  ;;  %v635_v57 = vmul.f32 %v1084_v26, %v634_v50  ;;  %vm647_vm14 = vweird.f32 %v1088_v49 }
 0x166   :  { %v713_v53 = vmul.f32 0.5, %v712_v28  ;;  %1091 = vrsqrt.f32 %v1422_v30  ;;  %vm648_vm2 = vmor %vm646_vm0, %vm647_vm14  ;;  %vm656_vm9 = vweird.f32 %v1422_v30 }
 0x167   :  { %v642_v54 = vmul.f32 %v1088_v49, %v641_v51  ;;  %v639_v6 = vsel %vm638_vm15, %v1084_v26, %v635_v57 }
 0x168   :  { %v585_v55 = vpop.f32.mrf.mxu3  ;;  %v714_v60 = vsub.f32 1.5, %v713_v53  ;;  %v754_v16 = vmul.f32 %v639_v6, %v1331_v41 }
 0x169   :  { %v1090_v56 = vpop.eup %1089  ;;  %v643_v58 = vmul.f32 0.5, %v642_v54  ;;  %v1426_v59 = vadd.f32 %v1393_v38, %v585_v55 }
 0x16a   :  { %v721_v62 = vmul.f32 %v1090_v56, %v583_v43  ;;  %v715_v10 = vmul.f32 %v1412_v42, %v714_v60  ;;  %vm727_vm4 = vweird.f32 %v1090_v56 }
 0x16b   :  { %v644_v63 = vsub.f32 1.5, %v643_v58  ;;  %1093 = vrsqrt.f32 %v1426_v59  ;;  %v567_v1 = vpop.f32.mrf.mxu2  ;;  %vm728_vm7 = vmor %vm726_vm6, %vm727_vm4  ;;  %vm736_vm15 = vweird.f32 %v1426_v59 }
 0x16c   :  { %v1429_v2 = vpop.eup %1091  ;;  %v722_v3 = vmul.f32 %v1090_v56, %v721_v62  ;;  %v1432_v5 = vadd.f32 %v1393_v38, %v567_v1  ;;  %v719_v25 = vsel %vm1445_vm5, %v1412_v42, %v715_v10 }
 0x16d   :  { %v645_v7 = vmul.f32 %v1088_v49, %v644_v63  ;;  %v651_v9 = vmul.f32 %v1429_v2, %v1422_v30  ;;  %v762_v36 = vmul.f32 %v719_v25, %v1341_v48  ;;  %vm657_vm8 = vweird.f32 %v1429_v2 }
 0x16e   :  { %v723_v12 = vmul.f32 0.5, %v722_v3  ;;  %1095 = vrsqrt.f32 %v1432_v5  ;;  %vm658_vm11 = vmor %vm656_vm9, %vm657_vm8  ;;  %vm666_vm12 = vweird.f32 %v1432_v5 }
 0x16f   :  { %v649_v13 = vsel %vm648_vm2, %v1088_v49, %v645_v7  ;;  %v652_v14 = vmul.f32 %v1429_v2, %v651_v9 }
 0x170   :  { %v755_v18 = vmul.f32 %v649_v13, %v1334_v44  ;;  %v724_v20 = vsub.f32 1.5, %v723_v12  ;;  %v587_v22 = vpop.f32.mrf.mxu3 }
 0x171   :  { %v1443_v23 = vpop.eup %1093  ;;  %v653_v24 = vmul.f32 0.5, %v652_v14  ;;  %v588_v17 = vadd.f32 %v1393_v38, %v587_v22 }
 0x172   :  { %v1015_v41 = vpack.c.bf16 %v755_v18, %v754_v16  ;;  %v725_v26 = vmul.f32 %v1090_v56, %v724_v20  ;;  %v731_v44 = vmul.f32 %v1443_v23, %v1426_v59  ;;  %vm737_vm13 = vweird.f32 %v1443_v23 }
 0x173   :  { %1097 = vrsqrt.f32 %v588_v17  ;;  %v570_v27 = vpop.f32.mrf.mxu2  ;;  %v654_v39 = vsub.f32 1.5, %v653_v24  ;;  %vm738_vm1 = vmor %vm736_vm15, %vm737_vm13  ;;  %vm746_vm2 = vweird.f32 %v588_v17 }
 0x174   :  { %v1096_v29 = vpop.eup %1095  ;;  %1043 = vst [vmem:[%s1508_s5 + $0x10] sm:$0xff] %v1015_v41   ;;  %v729_v31 = vsel %vm728_vm7, %v1090_v56, %v725_v26  ;;  %v732_v33 = vmul.f32 %v1443_v23, %v731_v44  ;;  %v1460_v35 = vadd.f32 %v1393_v38, %v570_v27 }
 0x175   :  { %v763_v37 = vmul.f32 %v729_v31, %v1344_v52  ;;  %v661_v40 = vmul.f32 %v1096_v29, %v1432_v5  ;;  %v655_v46 = vmul.f32 %v1429_v2, %v654_v39  ;;  %vm667_vm10 = vweird.f32 %v1096_v29 }
 0x176   :  { %v733_v42 = vmul.f32 0.5, %v732_v33  ;;  %1099 = vrsqrt.f32 %v1460_v35  ;;  %vm668_vm14 = vmor %vm666_vm12, %vm667_vm10  ;;  %vm676_vm5 = vweird.f32 %v1460_v35 }
 0x177   :  { %v1035_v11 = vpack.c.bf16 %v763_v37, %v762_v36  ;;  %v662_v43 = vmul.f32 %v1096_v29, %v661_v40  ;;  %v659_v54 = vsel %vm658_vm11, %v1429_v2, %v655_v46 }
 0x178   :  { %v734_v47 = vsub.f32 1.5, %v733_v42  ;;  %v756_v62 = vmul.f32 %v659_v54, %v1351_v61 }
 0x179   :  { %v1098_v45 = vpop.eup %1097  ;;  %1047 = vst [vmem:[%s1508_s5 + $0x30] sm:$0xff] %v1035_v11   ;;  %v663_v48 = vmul.f32 0.5, %v662_v43 }
 0x17a   :  { %v741_v52 = vmul.f32 %v1098_v45, %v588_v17  ;;  %v735_v57 = vmul.f32 %v1443_v23, %v734_v47  ;;  %vm747_vm0 = vweird.f32 %v1098_v45 }
 0x17b   :  { %v664_v49 = vsub.f32 1.5, %v663_v48  ;;  %v572_v28 = vpop.f32.mrf.mxu2  ;;  %vm748_vm3 = vmor %vm746_vm2, %vm747_vm0 }
 0x17c   :  { %v1100_v50 = vpop.eup %1099  ;;  %v742_v51 = vmul.f32 %v1098_v45, %v741_v52  ;;  %v573_v53 = vadd.f32 %v1393_v38, %v572_v28  ;;  %v739_v3 = vsel %vm738_vm1, %v1443_v23, %v735_v57 }
 0x17d   :  { %v665_v55 = vmul.f32 %v1096_v29, %v664_v49  ;;  %v671_v56 = vmul.f32 %v1100_v50, %v1460_v35  ;;  %vm677_vm4 = vweird.f32 %v1100_v50 }
 0x17e   :  { %v743_v30 = vmul.f32 0.5, %v742_v51  ;;  %1101 = vrsqrt.f32 %v573_v53  ;;  %vm678_vm7 = vmor %vm676_vm5, %vm677_vm4  ;;  %vm686_vm8 = vweird.f32 %v573_v53 }
 0x17f   :  { %v669_v58 = vsel %vm668_vm14, %v1096_v29, %v665_v55  ;;  %v672_v60 = vmul.f32 %v1100_v50, %v671_v56 }
 0x180   :  { %v757_v63 = vmul.f32 %v669_v58, %v1354_v0  ;;  %v744_v1 = vsub.f32 1.5, %v743_v30  ;;  %v764_v0 = vmul.f32 %v739_v3, %v1361_v4 }
 0x181   :  { %v673_v2 = vmul.f32 0.5, %v672_v60 }
 0x182   :  { %v1020_v5 = vpack.c.bf16 %v757_v63, %v756_v62  ;;  %v745_v6 = vmul.f32 %v1098_v45, %v744_v1 }
 0x183   :  { %v575_v7 = vpop.f32.mrf.mxu2  ;;  %v674_v12 = vsub.f32 1.5, %v673_v2 }
 0x184   :  { %v1102_v9 = vpop.eup %1101  ;;  %1044 = vst [vmem:[%s1508_s5 + $0x18] sm:$0xff] %v1020_v5   ;;  %v749_v59 = vsel %vm748_vm3, %v1098_v45, %v745_v6  ;;  %v576_v61 = vadd.f32 %v1393_v38, %v575_v7 }
 0x185   :  { %v765_v10 = vmul.f32 %v749_v59, %v1364_v8  ;;  %v681_v13 = vmul.f32 %v1102_v9, %v573_v53  ;;  %v675_v18 = vmul.f32 %v1100_v50, %v674_v12  ;;  %vm687_vm6 = vweird.f32 %v1102_v9 }
 0x186   :  { %1103 = vrsqrt.f32 %v576_v61  ;;  %vm688_vm9 = vmor %vm686_vm8, %vm687_vm6  ;;  %vm696_vm11 = vweird.f32 %v576_v61 }
 0x187   :  { %v1040_v14 = vpack.c.bf16 %v765_v10, %v764_v0  ;;  %v682_v16 = vmul.f32 %v1102_v9, %v681_v13  ;;  %v679_v15 = vsel %vm678_vm7, %v1100_v50, %v675_v18 }
 0x188   :  { %v758_v26 = vmul.f32 %v679_v15, %v1371_v19 }
 0x189   :  { %1048 = vst [vmem:[%s1508_s5 + $0x38] sm:$0xff] %v1040_v14   ;;  %v683_v20 = vmul.f32 0.5, %v682_v16 }
 0x18b   :  { %v684_v22 = vsub.f32 1.5, %v683_v20  ;;  %v577_v23 = vpop.f32.mrf.mxu2 }
 0x18c   :  { %v1104_v4 = vpop.eup %1103  ;;  %v578_v8 = vadd.f32 %v1393_v38, %v577_v23 }
 0x18d   :  { %v685_v24 = vmul.f32 %v1102_v9, %v684_v22  ;;  %v691_v17 = vmul.f32 %v1104_v4, %v576_v61  ;;  %vm697_vm10 = vweird.f32 %v1104_v4 }
 0x18e   :  { %1105 = vrsqrt.f32 %v578_v8  ;;  %vm698_vm13 = vmor %vm696_vm11, %vm697_vm10  ;;  %vm706_vm14 = vweird.f32 %v578_v8 }
 0x18f   :  { %v689_v25 = vsel %vm688_vm9, %v1102_v9, %v685_v24  ;;  %v692_v41 = vmul.f32 %v1104_v4, %v691_v17 }
 0x190   :  { %v759_v44 = vmul.f32 %v689_v25, %v1374_v21 }
 0x191   :  { %v693_v27 = vmul.f32 0.5, %v692_v41 }
 0x192   :  { %v1025_v29 = vpack.c.bf16 %v759_v44, %v758_v26 }
 0x193   :  { %v694_v38 = vsub.f32 1.5, %v693_v27 }
 0x194   :  { %v1106_v31 = vpop.eup %1105  ;;  %1045 = vst [vmem:[%s1508_s5 + $0x20] sm:$0xff] %v1025_v29  }
 0x195   :  { %v701_v33 = vmul.f32 %v1106_v31, %v578_v8  ;;  %v695_v36 = vmul.f32 %v1104_v4, %v694_v38  ;;  %vm707_vm12 = vweird.f32 %v1106_v31 }
 0x196   :  { %vm708_vm15 = vmor %vm706_vm14, %vm707_vm12 }
 0x197   :  { %v702_v35 = vmul.f32 %v1106_v31, %v701_v33  ;;  %v699_v19 = vsel %vm698_vm13, %v1104_v4, %v695_v36 }
 0x198   :  { %v760_v42 = vmul.f32 %v699_v19, %v1381_v32 }
 0x199   :  { %v703_v37 = vmul.f32 0.5, %v702_v35 }
 0x19b   :  { %v704_v39 = vsub.f32 1.5, %v703_v37 }
 0x19d   :  { %v705_v40 = vmul.f32 %v1106_v31, %v704_v39 }
 0x19f   :  { %v709_v21 = vsel %vm708_vm15, %v1106_v31, %v705_v40 }
 0x1a0   :  { %v761_v11 = vmul.f32 %v709_v21, %v1384_v34 }
 0x1a2   :  { %v1030_v43 = vpack.c.bf16 %v761_v11, %v760_v42 }
 0x1a4   :  { %1046 = vst [vmem:[%s1508_s5 + $0x28] sm:$0xff] %v1030_v43  }

// kernel: forward.9
= control target key start
LH: loop header
LB: loop body
LE: loop exit
PB: predicated region body
PF: predicated region fallthrough
CT: control target
= control target key end

     0   :  { %s1197_s15 = smov 0   ;;  %s1199_s16 = smov 0   ;;  %s1500_s0 = inlined_call_operand.vmem [shape: bf16[128,256], index: 0, kind: input, shape index: {}]   ;;  %s1501_s1 = inlined_call_operand.vmem [shape: bf16[256,256], index: 1, kind: input, shape index: {}]   ;;  %s1502_s2 = inlined_call_operand.vmem [shape: f32[1,256], index: 2, kind: input, shape index: {}]   ;;  %s1503_s3 = inlined_call_operand.vmem [shape: bf16[128,256], index: 3, kind: output, shape index: {0}]   ;;  %s1504_s4 = inlined_call_operand.vmem [shape: f32[2,1,256], index: 4, kind: output, shape index: {1}]  }
   0x1   :  { %s1201_s17 = smov 0  }
   0x2 LB: > { %s27_s18 = sadd.s32 1, %s1166_s16  ;;  %p912_p0 = scmp.ge.s32.totalorder %s1170_s17, 1  ;;  %s1170_s17 = sphi %s1201_s17, %s15_s17   ;;  %s1166_s16 = sphi %s1199_s16, %s1506_s16   ;;  %s1162_s15 = sphi %s1197_s15, %s1505_s15  }
   0x3   : > { %p29_p1 = scmp.ge.s32.totalorder %s27_s18, 2  ;;  %p198_p2 = scmp.lt.s32.totalorder %s1170_s17, 3 }
   0x5   : > { %s1508_s18 = smov (%p29_p1, %s27_s18), 0  ;;  %p199_p3 = pnand %p912_p0, %p198_p2 }
   0x6   : > { %s913_s13 = sshll.u32 (!%p199_p3), %s1162_s15, 3  ;;  %p266_p5 = scmp.lt.s32.totalorder (!%p199_p3), %s1162_s15, 1 }
   0x7   : > { %202 = sbr.rel (%p199_p3) target bundleno = 260 (0x104), region = 32  ;;  %p242_p4 = scmp.lt.s32.totalorder (!%p199_p3), %s913_s13, 15 }
   0xc   : > { %v1010_v0 = vld [vmem:[%s1501_s1 + $0x70] sm:$0xf]  ;;  %v1107_v1 = vld [vmem:[%s1501_s1 + $0x74] sm:$0xf0]  ;;  %v1106_v5 = vld [vmem:[%s1501_s1 + $0x74] sm:$0xf] }
   0xd   : > { %v1074_v2 = vld [vmem:[%s1501_s1 + $0xf0] sm:$0xf]  ;;  %v1011_v3 = vor.u32 %v1107_v1, %v1010_v0  ;;  %v1123_v4 = vld [vmem:[%s1501_s1 + $0xf4] sm:$0xf0]  ;;  %v1012_v6 = vld [vmem:[%s1501_s1 + $0x78] sm:$0xf0] }
   0xe   : > { %v1075_v7 = vor.u32 %v1123_v4, %v1074_v2  ;;  %v1015_v8 = vor.u32 %v1106_v5, %v1012_v6  ;;  %v1122_v9 = vld [vmem:[%s1501_s1 + $0xf4] sm:$0xf]  ;;  %v1076_v10 = vld [vmem:[%s1501_s1 + $0xf8] sm:$0xf0]  ;;  %v1002_v11 = vld [vmem:[%s1501_s1 + $0x60] sm:$0xf] }
   0xf   : > { %546 = vmatpush.bf16.msra.mxu0 %v1011_v3  ;;  %v1079_v12 = vor.u32 %v1122_v9, %v1076_v10  ;;  %v1105_v13 = vld [vmem:[%s1501_s1 + $0x64] sm:$0xf0]  ;;  %v1066_v14 = vld [vmem:[%s1501_s1 + $0xe0] sm:$0xf]  ;;  %v1104_v18 = vld [vmem:[%s1501_s1 + $0x64] sm:$0xf] }
  0x10   : > { %v1121_v15 = vld [vmem:[%s1501_s1 + $0xe4] sm:$0xf0]  ;;  %575 = vmatpush.bf16.msra.mxu1 %v1075_v7  ;;  %604 = vmatpush.bf16.msra.mxu2 %v1015_v8  ;;  %v1003_v16 = vor.u32 %v1105_v13, %v1002_v11  ;;  %v1004_v19 = vld [vmem:[%s1501_s1 + $0x68] sm:$0xf0]  ;;  %v1120_v20 = vld [vmem:[%s1501_s1 + $0xe4] sm:$0xf] }
  0x11   : > { %v1067_v17 = vor.u32 %v1121_v15, %v1066_v14  ;;  %633 = vmatpush.bf16.msra.mxu3 %v1079_v12  ;;  %v1007_v21 = vor.u32 %v1104_v18, %v1004_v19  ;;  %v1068_v22 = vld [vmem:[%s1501_s1 + $0xe8] sm:$0xf0]  ;;  %v994_v23 = vld [vmem:[%s1501_s1 + $0x50] sm:$0xf]  ;;  %v1103_v24 = vld [vmem:[%s1501_s1 + $0x54] sm:$0xf0] }
  0x12   : > { %v1071_v25 = vor.u32 %v1120_v20, %v1068_v22  ;;  %v1058_v26 = vld [vmem:[%s1501_s1 + $0xd0] sm:$0xf]  ;;  %v1119_v27 = vld [vmem:[%s1501_s1 + $0xd4] sm:$0xf0]  ;;  %v1102_v28 = vld [vmem:[%s1501_s1 + $0x54] sm:$0xf]  ;;  %v995_v29 = vor.u32 %v1103_v24, %v994_v23 }
  0x13   : > { %547 = vmatpush.bf16.msra.mxu0 %v1003_v16  ;;  %v996_v30 = vld [vmem:[%s1501_s1 + $0x58] sm:$0xf0]  ;;  %v1118_v31 = vld [vmem:[%s1501_s1 + $0xd4] sm:$0xf]  ;;  %v1059_v33 = vor.u32 %v1119_v27, %v1058_v26  ;;  %v986_v35 = vld [vmem:[%s1501_s1 + $0x40] sm:$0xf] }
  0x14   : > { %v1060_v32 = vld [vmem:[%s1501_s1 + $0xd8] sm:$0xf0]  ;;  %576 = vmatpush.bf16.msra.mxu1 %v1067_v17  ;;  %605 = vmatpush.bf16.msra.mxu2 %v1007_v21  ;;  %v999_v34 = vor.u32 %v1102_v28, %v996_v30  ;;  %v1101_v36 = vld [vmem:[%s1501_s1 + $0x44] sm:$0xf0]  ;;  %v1050_v37 = vld [vmem:[%s1501_s1 + $0xc0] sm:$0xf] }
  0x15   : > { %634 = vmatpush.bf16.msra.mxu3 %v1071_v25  ;;  %v1063_v38 = vor.u32 %v1118_v31, %v1060_v32  ;;  %v1117_v39 = vld [vmem:[%s1501_s1 + $0xc4] sm:$0xf0]  ;;  %v1100_v40 = vld [vmem:[%s1501_s1 + $0x44] sm:$0xf]  ;;  %v988_v41 = vld [vmem:[%s1501_s1 + $0x48] sm:$0xf0]  ;;  %v987_v44 = vor.u32 %v1101_v36, %v986_v35 }
  0x16   : > { %v1116_v42 = vld [vmem:[%s1501_s1 + $0xc4] sm:$0xf]  ;;  %v1052_v43 = vld [vmem:[%s1501_s1 + $0xc8] sm:$0xf0]  ;;  %v1051_v45 = vor.u32 %v1117_v39, %v1050_v37  ;;  %v991_v46 = vor.u32 %v1100_v40, %v988_v41  ;;  %v978_v47 = vld [vmem:[%s1501_s1 + $0x30] sm:$0xf] }
  0x17   : > { %548 = vmatpush.bf16.msra.mxu0 %v995_v29  ;;  %v1099_v48 = vld [vmem:[%s1501_s1 + $0x34] sm:$0xf0]  ;;  %v1042_v49 = vld [vmem:[%s1501_s1 + $0xb0] sm:$0xf]  ;;  %v1055_v50 = vor.u32 %v1116_v42, %v1052_v43  ;;  %v1098_v52 = vld [vmem:[%s1501_s1 + $0x34] sm:$0xf] }
  0x18   : > { %577 = vmatpush.bf16.msra.mxu1 %v1059_v33  ;;  %606 = vmatpush.bf16.msra.mxu2 %v999_v34  ;;  %v1115_v51 = vld [vmem:[%s1501_s1 + $0xb4] sm:$0xf0]  ;;  %v980_v53 = vld [vmem:[%s1501_s1 + $0x38] sm:$0xf0]  ;;  %v1114_v54 = vld [vmem:[%s1501_s1 + $0xb4] sm:$0xf]  ;;  %v979_v56 = vor.u32 %v1099_v48, %v978_v47 }
  0x19   : > { %635 = vmatpush.bf16.msra.mxu3 %v1063_v38  ;;  %v1044_v55 = vld [vmem:[%s1501_s1 + $0xb8] sm:$0xf0]  ;;  %v1043_v57 = vor.u32 %v1115_v51, %v1042_v49  ;;  %v983_v58 = vor.u32 %v1098_v52, %v980_v53  ;;  %v970_v59 = vld [vmem:[%s1501_s1 + $0x20] sm:$0xf]  ;;  %v1097_v60 = vld [vmem:[%s1501_s1 + $0x24] sm:$0xf0] }
  0x1a   : > { %v1034_v61 = vld [vmem:[%s1501_s1 + $0xa0] sm:$0xf]  ;;  %v1047_v62 = vor.u32 %v1114_v54, %v1044_v55  ;;  %v1113_v63 = vld [vmem:[%s1501_s1 + $0xa4] sm:$0xf0]  ;;  %v1096_v0 = vld [vmem:[%s1501_s1 + $0x24] sm:$0xf]  ;;  %v971_v4 = vor.u32 %v1097_v60, %v970_v59 }
  0x1b   : > { %549 = vmatpush.bf16.msra.mxu0 %v987_v44  ;;  %v972_v1 = vld [vmem:[%s1501_s1 + $0x28] sm:$0xf0]  ;;  %v1112_v2 = vld [vmem:[%s1501_s1 + $0xa4] sm:$0xf]  ;;  %v962_v5 = vld [vmem:[%s1501_s1 + $0x10] sm:$0xf]  ;;  %v1035_v6 = vor.u32 %v1113_v63, %v1034_v61 }
  0x1c   : > { %578 = vmatpush.bf16.msra.mxu1 %v1051_v45  ;;  %607 = vmatpush.bf16.msra.mxu2 %v991_v46  ;;  %v1036_v3 = vld [vmem:[%s1501_s1 + $0xa8] sm:$0xf0]  ;;  %v975_v7 = vor.u32 %v1096_v0, %v972_v1  ;;  %v1095_v8 = vld [vmem:[%s1501_s1 + $0x14] sm:$0xf0]  ;;  %v1026_v9 = vld [vmem:[%s1501_s1 + $0x90] sm:$0xf] }
  0x1d   : > { %636 = vmatpush.bf16.msra.mxu3 %v1055_v50  ;;  %v1111_v10 = vld [vmem:[%s1501_s1 + $0x94] sm:$0xf0]  ;;  %v1039_v11 = vor.u32 %v1112_v2, %v1036_v3  ;;  %v1094_v12 = vld [vmem:[%s1501_s1 + $0x14] sm:$0xf]  ;;  %v964_v13 = vld [vmem:[%s1501_s1 + $0x18] sm:$0xf0]  ;;  %v963_v16 = vor.u32 %v1095_v8, %v962_v5 }
  0x1e   : > { %v1110_v14 = vld [vmem:[%s1501_s1 + $0x94] sm:$0xf]  ;;  %v1028_v15 = vld [vmem:[%s1501_s1 + $0x98] sm:$0xf0]  ;;  %v954_v17 = vld [vmem:[%s1501_s1] sm:$0xf]  ;;  %v1027_v18 = vor.u32 %v1111_v10, %v1026_v9  ;;  %v967_v19 = vor.u32 %v1094_v12, %v964_v13 }
  0x1f   : > { %550 = vmatpush.bf16.msra.mxu0 %v979_v56  ;;  %v1093_v20 = vld [vmem:[%s1501_s1 + $0x4] sm:$0xf0]  ;;  %v1018_v21 = vld [vmem:[%s1501_s1 + $0x80] sm:$0xf]  ;;  %s1510_s13 = smov (!%p242_p4, %s913_s13), 15  ;;  %v1031_v22 = vor.u32 %v1110_v14, %v1028_v15  ;;  %s1512_s15 = smov (!%p266_p5, %s1162_s15), 1 }
  0x20   : > { %579 = vmatpush.bf16.msra.mxu1 %v1043_v57  ;;  %608 = vmatpush.bf16.msra.mxu2 %v983_v58  ;;  %v1109_v23 = vld [vmem:[%s1501_s1 + $0x84] sm:$0xf0]  ;;  %v1092_v24 = vld [vmem:[%s1501_s1 + $0x4] sm:$0xf]  ;;  %v956_v25 = vld [vmem:[%s1501_s1 + $0x8] sm:$0xf0]  ;;  %v955_v28 = vor.u32 %v1093_v20, %v954_v17 }
  0x21   : > { %637 = vmatpush.bf16.msra.mxu3 %v1047_v62  ;;  %v1108_v26 = vld [vmem:[%s1501_s1 + $0x84] sm:$0xf]  ;;  %v1020_v27 = vld [vmem:[%s1501_s1 + $0x88] sm:$0xf0]  ;;  %s1082_s12 = sshll.u32 %s1510_s13, 3  ;;  %v1019_v29 = vor.u32 %v1109_v23, %v1018_v21  ;;  %v959_v30 = vor.u32 %v1092_v24, %v956_v25  ;;  %s919_s13 = sshll.u32 %s1512_s15, 1 }
  0x22   : > { %s1418_s20 = scalar_lea.vmem %s1500_s0, %s1082_s12  ;;  %v1023_v34 = vor.u32 %v1108_v26, %v1020_v27  ;;  %v713_v58 = vld [vmem:[%s1502_s2] sm:$0x3]  ;;  %s1454_s25 = scalar_lea.vmem %s1503_s3, %s1082_s12  ;;  %vm780_vm0 = vcmask 1040384  }
  0x23   : > { %551 = vmatpush.bf16.msra.mxu0 %v971_v4  ;;  %v922_v31 = vld [vmem:[%s1418_s20] sm:$0xf]  ;;  %v1085_v32 = vld [vmem:[%s1418_s20 + $0x4] sm:$0xf0]  ;;  %v1084_v33 = vld [vmem:[%s1418_s20 + $0x4] sm:$0xf]  ;;  %s269_s28 = scalar_lea.vmem %s1504_s4, %s919_s13 }
  0x24   : > { %580 = vmatpush.bf16.msra.mxu1 %v1035_v6  ;;  %609 = vmatpush.bf16.msra.mxu2 %v975_v7  ;;  %v924_v35 = vld [vmem:[%s1418_s20 + $0x8] sm:$0xf0]  ;;  %v923_v36 = vor.u32 %v1085_v32, %v922_v31  ;;  %v930_v38 = vld [vmem:[%s1418_s20 + $0x10] sm:$0xf]  ;;  %v1087_v39 = vld [vmem:[%s1418_s20 + $0x14] sm:$0xf0] }
  0x25   : > { %638 = vmatpush.bf16.msra.mxu3 %v1039_v11  ;;  %v927_v37 = vor.u32 %v1084_v33, %v924_v35  ;;  %v1086_v40 = vld [vmem:[%s1418_s20 + $0x14] sm:$0xf]  ;;  %v932_v41 = vld [vmem:[%s1418_s20 + $0x18] sm:$0xf0]  ;;  %v931_v42 = vor.u32 %v1087_v39, %v930_v38  ;;  %v938_v44 = vld [vmem:[%s1418_s20 + $0x20] sm:$0xf] }
  0x26   : > { %v935_v43 = vor.u32 %v1086_v40, %v932_v41  ;;  %v1089_v45 = vld [vmem:[%s1418_s20 + $0x24] sm:$0xf0]  ;;  %v1088_v46 = vld [vmem:[%s1418_s20 + $0x24] sm:$0xf]  ;;  %v940_v47 = vld [vmem:[%s1418_s20 + $0x28] sm:$0xf0] }
  0x27   : > { %552 = vmatpush.bf16.msra.mxu0 %v963_v16  ;;  %v939_v48 = vor.u32 %v1089_v45, %v938_v44  ;;  %v943_v49 = vor.u32 %v1088_v46, %v940_v47  ;;  %v946_v50 = vld [vmem:[%s1418_s20 + $0x30] sm:$0xf]  ;;  %v1091_v51 = vld [vmem:[%s1418_s20 + $0x34] sm:$0xf0]  ;;  %v1090_v52 = vld [vmem:[%s1418_s20 + $0x34] sm:$0xf] }
  0x28   : > { %581 = vmatpush.bf16.msra.mxu1 %v1027_v18  ;;  %610 = vmatpush.bf16.msra.mxu2 %v967_v19  ;;  %v948_v53 = vld [vmem:[%s1418_s20 + $0x38] sm:$0xf0]  ;;  %v947_v54 = vor.u32 %v1091_v51, %v946_v50  ;;  %v1439_v60 = vperm.slane %v713_v58, 0  ;;  %v1441_v62 = vperm.slane %v713_v58, 1 }
  0x29   : > { %639 = vmatpush.bf16.msra.mxu3 %v1031_v22  ;;  %v951_v55 = vor.u32 %v1090_v52, %v948_v53 }
  0x2b   : > { %553 = vmatpush.bf16.msra.mxu0 %v955_v28 }
  0x2c   : > { %582 = vmatpush.bf16.msra.mxu1 %v1019_v29  ;;  %611 = vmatpush.bf16.msra.mxu2 %v959_v30 }
  0x2d   : > { %640 = vmatpush.bf16.msra.mxu3 %v1023_v34 }
  0x2e   : > { %554 = vmatmul.bf16.vlgmr.msra.gmra.mxu0 %v923_v36 }
  0x2f   : > { %583 = vmatmul.bf16.vlgmr.msra.gmra.mxu1 %v927_v37  ;;  %612 = vmatmul.bf16.vlgmr.msra.gmra.mxu2 %v923_v36 }
  0x30   : > { %641 = vmatmul.bf16.vlgmr.msra.gmra.mxu3 %v927_v37 }
  0x3e   : > { %559 = vmatmul.bf16.gmra.mxu0 %v931_v42 }
  0x3f   : > { %588 = vmatmul.bf16.gmra.mxu1 %v935_v43  ;;  %617 = vmatmul.bf16.gmra.mxu2 %v931_v42 }
  0x40   : > { %646 = vmatmul.bf16.gmra.mxu3 %v935_v43 }
  0x4e   : > { %564 = vmatmul.bf16.gmra.mxu0 %v939_v48 }
  0x4f   : > { %593 = vmatmul.bf16.gmra.mxu1 %v943_v49  ;;  %622 = vmatmul.bf16.gmra.mxu2 %v939_v48 }
  0x50   : > { %651 = vmatmul.bf16.gmra.mxu3 %v943_v49 }
  0x5e   : > { %569 = vmatmul.bf16.gmra.mxu0 %v947_v54 }
  0x5f   : > { %598 = vmatmul.bf16.gmra.mxu1 %v951_v55  ;;  %627 = vmatmul.bf16.gmra.mxu2 %v947_v54 }
  0x60   : > { %656 = vmatmul.bf16.gmra.mxu3 %v951_v55 }
  0xab   : > { %v555_v56 = vpop.f32.mrf.mxu0 }
  0xac   : > { %v584_v57 = vpop.f32.mrf.mxu1 }
  0xad   : > { %v585_v59 = vadd.f32 %v584_v57, %v555_v56 }
  0xaf   : > { %v1444_v1 = vadd.f32 %v1439_v60, %v585_v59 }
  0xb2   : > { %v613_v61 = vpop.f32.mrf.mxu2 }
  0xb3   : > { %v642_v63 = vpop.f32.mrf.mxu3  ;;  %v557_v0 = vpop.f32.mrf.mxu0 }
  0xb4   : > { %v643_v2 = vadd.f32 %v642_v63, %v613_v61  ;;  %v586_v3 = vpop.f32.mrf.mxu1 }
  0xb5   : > { %v587_v6 = vadd.f32 %v586_v3, %v557_v0 }
  0xb6   : > { %v1447_v4 = vadd.f32 %v1441_v62, %v643_v2 }
  0xb7   : > { %v721_v12 = vadd.f32 %v1439_v60, %v587_v6 }
  0xb8   : > { %v735_v5 = vpack.c.bf16 %v1447_v4, %v1444_v1 }
  0xba   : > { %743 = vst [vmem:[%s1454_s25] sm:$0xff] %v735_v5  ;;  %v615_v7 = vpop.f32.mrf.mxu2 }
  0xbb   : > { %v644_v8 = vpop.f32.mrf.mxu3  ;;  %v560_v9 = vpop.f32.mrf.mxu0 }
  0xbc   : > { %v645_v10 = vadd.f32 %v644_v8, %v615_v7  ;;  %v589_v11 = vpop.f32.mrf.mxu1 }
  0xbd   : > { %v590_v15 = vadd.f32 %v589_v11, %v560_v9 }
  0xbe   : > { %v1461_v13 = vadd.f32 %v1441_v62, %v645_v10 }
  0xbf   : > { %v723_v21 = vadd.f32 %v1439_v60, %v590_v15 }
  0xc0   : > { %v736_v14 = vpack.c.bf16 %v1461_v13, %v721_v12 }
  0xc1   : > { %v751_v57 = vmax.f32 %v1444_v1, %v723_v21 }
  0xc2   : > { %744 = vst [vmem:[%s1454_s25 + $0x8] sm:$0xff] %v736_v14  ;;  %v618_v16 = vpop.f32.mrf.mxu2 }
  0xc3   : > { %v647_v17 = vpop.f32.mrf.mxu3  ;;  %v562_v18 = vpop.f32.mrf.mxu0 }
  0xc4   : > { %v648_v19 = vadd.f32 %v647_v17, %v618_v16  ;;  %v591_v20 = vpop.f32.mrf.mxu1 }
  0xc5   : > { %v592_v24 = vadd.f32 %v591_v20, %v562_v18 }
  0xc6   : > { %v724_v22 = vadd.f32 %v1441_v62, %v648_v19 }
  0xc7   : > { %v725_v30 = vadd.f32 %v1439_v60, %v592_v24 }
  0xc8   : > { %v737_v23 = vpack.c.bf16 %v724_v22, %v723_v21  ;;  %v764_v1 = vmax.f32 %v1447_v4, %v724_v22 }
  0xc9   : > { %v752_v58 = vmax.f32 %v721_v12, %v725_v30 }
  0xca   : > { %745 = vst [vmem:[%s1454_s25 + $0x10] sm:$0xff] %v737_v23  ;;  %v620_v25 = vpop.f32.mrf.mxu2 }
  0xcb   : > { %v649_v26 = vpop.f32.mrf.mxu3  ;;  %v565_v27 = vpop.f32.mrf.mxu0 }
  0xcc   : > { %v650_v28 = vadd.f32 %v649_v26, %v620_v25  ;;  %v594_v29 = vpop.f32.mrf.mxu1 }
  0xcd   : > { %v595_v33 = vadd.f32 %v594_v29, %v565_v27 }
  0xce   : > { %v726_v31 = vadd.f32 %v1441_v62, %v650_v28  ;;  %v783_v28 = vlaneseq }
  0xcf   : > { %v727_v39 = vadd.f32 %v1439_v60, %v595_v33 }
  0xd0   : > { %v738_v32 = vpack.c.bf16 %v726_v31, %v725_v30  ;;  %v765_v11 = vmax.f32 %v1461_v13, %v726_v31  ;;  %vm785_vm1 = vcmp.lt.s32.totalorder %v783_v28, 256 }
  0xd1   : > { %v753_v0 = vmax.f32 %v751_v57, %v727_v39 }
  0xd2   : > { %746 = vst [vmem:[%s1454_s25 + $0x18] sm:$0xff] %v738_v32  ;;  %v623_v34 = vpop.f32.mrf.mxu2 }
  0xd3   : > { %v652_v35 = vpop.f32.mrf.mxu3  ;;  %v567_v36 = vpop.f32.mrf.mxu0 }
  0xd4   : > { %v653_v37 = vadd.f32 %v652_v35, %v623_v34  ;;  %v596_v38 = vpop.f32.mrf.mxu1 }
  0xd5   : > { %v597_v42 = vadd.f32 %v596_v38, %v567_v36 }
  0xd6   : > { %v728_v40 = vadd.f32 %v1441_v62, %v653_v37 }
  0xd7   : > { %v729_v48 = vadd.f32 %v1439_v60, %v597_v42 }
  0xd8   : > { %v739_v41 = vpack.c.bf16 %v728_v40, %v727_v39  ;;  %v766_v15 = vmax.f32 %v764_v1, %v728_v40 }
  0xd9   : > { %v754_v2 = vmax.f32 %v752_v58, %v729_v48 }
  0xda   : > { %747 = vst [vmem:[%s1454_s25 + $0x20] sm:$0xff] %v739_v41  ;;  %v625_v43 = vpop.f32.mrf.mxu2 }
  0xdb   : > { %v654_v44 = vpop.f32.mrf.mxu3  ;;  %v570_v45 = vpop.f32.mrf.mxu0 }
  0xdc   : > { %v655_v46 = vadd.f32 %v654_v44, %v625_v43  ;;  %v599_v47 = vpop.f32.mrf.mxu1 }
  0xdd   : > { %v600_v51 = vadd.f32 %v599_v47, %v570_v45 }
  0xde   : > { %v730_v49 = vadd.f32 %v1441_v62, %v655_v46 }
  0xdf   : > { %v731_v59 = vadd.f32 %v1439_v60, %v600_v51 }
  0xe0   : > { %v740_v50 = vpack.c.bf16 %v730_v49, %v729_v48  ;;  %v767_v16 = vmax.f32 %v765_v11, %v730_v49 }
  0xe1   : > { %v755_v6 = vmax.f32 %v753_v0, %v731_v59 }
  0xe2   : > { %748 = vst [vmem:[%s1454_s25 + $0x28] sm:$0xff] %v740_v50  ;;  %v628_v52 = vpop.f32.mrf.mxu2 }
  0xe3   : > { %v657_v53 = vpop.f32.mrf.mxu3  ;;  %v572_v54 = vpop.f32.mrf.mxu0 }
  0xe4   : > { %v658_v55 = vadd.f32 %v657_v53, %v628_v52  ;;  %v601_v56 = vpop.f32.mrf.mxu1 }
  0xe5   : > { %v602_v61 = vadd.f32 %v601_v56, %v572_v54 }
  0xe6   : > { %v732_v63 = vadd.f32 %v1441_v62, %v658_v55 }
  0xe7   : > { %v733_v3 = vadd.f32 %v1439_v60, %v602_v61 }
  0xe8   : > { %v741_v5 = vpack.c.bf16 %v732_v63, %v731_v59  ;;  %v768_v17 = vmax.f32 %v766_v15, %v732_v63 }
  0xe9   : > { %v756_v7 = vmax.f32 %v754_v2, %v733_v3 }
  0xea   : > { %749 = vst [vmem:[%s1454_s25 + $0x30] sm:$0xff] %v741_v5  ;;  %v630_v8 = vpop.f32.mrf.mxu2 }
  0xeb   : > { %v757_v9 = vmax.f32 %v755_v6, %v756_v7  ;;  %v659_v10 = vpop.f32.mrf.mxu3 }
  0xec   : > { %v660_v12 = vadd.f32 %v659_v10, %v630_v8 }
  0xed   : > { %v758_v14 = vrot.slane %v757_v9, 4 }
  0xee   : > { %v734_v60 = vadd.f32 %v1441_v62, %v660_v12 }
  0xef   : > { %v759_v18 = vmax.f32 %v757_v9, %v758_v14 }
  0xf0   : > { %v742_v19 = vpack.c.bf16 %v734_v60, %v733_v3  ;;  %v769_v20 = vmax.f32 %v767_v16, %v734_v60 }
  0xf1   : > { %v760_v23 = vrot.slane %v759_v18, 2 }
  0xf2   : > { %750 = vst [vmem:[%s1454_s25 + $0x38] sm:$0xff] %v742_v19  ;;  %v770_v21 = vmax.f32 %v768_v17, %v769_v20 }
  0xf3   : > { %v761_v4 = vmax.f32 %v759_v18, %v760_v23 }
  0xf4   : > { %v771_v24 = vrot.slane %v770_v21, 4 }
  0xf5   : > { %v762_v26 = vrot.slane %v761_v4, 1 }
  0xf6   : > { %v772_v25 = vmax.f32 %v770_v21, %v771_v24 }
  0xf7   : > { %v763_v62 = vmax.f32 %v761_v4, %v762_v26 }
  0xf8   : > { %v773_v22 = vrot.slane %v772_v25, 2 }
  0xfa   : > { %v774_v13 = vmax.f32 %v772_v25, %v773_v22 }
  0xfc   : > { %v775_v27 = vrot.slane %v774_v13, 1 }
  0xfe   : > { %v776_v29 = vmax.f32 %v774_v13, %v775_v27 }
 0x100   : > { %v779_v30 = vrot.slane %v776_v29, 7 }
 0x102   : > { %v781_v31 = vsel %vm780_vm0, %v763_v62, %v779_v30 }
 0x103   : > { %787 = vst.msk [vmem:[%s269_s28] sm:$0x3] %vm785_vm1, %v781_v31 }
 0x104 PF: > { %s15_s17 = sadd.s32 1, %s1170_s17   ;;  %s1505_s15 = smov %s1166_s16 }
 0x105   : > { %p12_p6 = scmp.ge.s32.totalorder %s15_s17, 4   ;;  %s1506_s16 = smov %s1508_s18 }
 0x107   :  { %14 = sbr.rel (!%p12_p6) target bundleno = 2 (0x2), region = 85 }

// kernel: forward.10
= control target key start
LH: loop header
LB: loop body
LE: loop exit
PB: predicated region body
PF: predicated region fallthrough
CT: control target
= control target key end

     0   :  { %s283_s0 = inlined_call_operand.vmem [shape: bf16[128,256], index: 0, kind: input, shape index: {}]   ;;  %s284_s1 = inlined_call_operand.vmem [shape: f32[1,256], index: 1, kind: input, shape index: {}]   ;;  %s285_s2 = inlined_call_operand.vmem [shape: bf16[128,256], index: 2, kind: output, shape index: {}]  }
   0x1   :  { %v11_v0 = vld [vmem:[%s283_s0] sm:$0xff]  ;;  %v12_v2 = vld [vmem:[%s283_s0 + $0x8] sm:$0xff]  ;;  %v13_v7 = vld [vmem:[%s283_s0 + $0x10] sm:$0xff] }
   0x2   :  { %v59_v1 = vld [vmem:[%s284_s1] sm:$0x3]  ;;  %v27_v3 = vunpack.c.l.bf16 %v11_v0  ;;  %v28_v4 = vunpack.c.h.bf16 %v11_v0  ;;  %v14_v8 = vld [vmem:[%s283_s0 + $0x18] sm:$0xff]  ;;  %v29_v9 = vunpack.c.l.bf16 %v12_v2  ;;  %v30_v10 = vunpack.c.h.bf16 %v12_v2  ;;  %v16_v18 = vld [vmem:[%s283_s0 + $0x28] sm:$0xff] }
   0x3   :  { %v157_v5 = vperm.slane %v59_v1, 0  ;;  %v159_v6 = vperm.slane %v59_v1, 1  ;;  %v31_v11 = vunpack.c.l.bf16 %v13_v7  ;;  %v32_v12 = vunpack.c.h.bf16 %v13_v7  ;;  %v15_v13 = vld [vmem:[%s283_s0 + $0x20] sm:$0xff]  ;;  %v17_v23 = vld [vmem:[%s283_s0 + $0x30] sm:$0xff]  ;;  %v18_v28 = vld [vmem:[%s283_s0 + $0x38] sm:$0xff] }
   0x4   :  { %v33_v16 = vunpack.c.l.bf16 %v14_v8  ;;  %v34_v17 = vunpack.c.h.bf16 %v14_v8  ;;  %v35_v27 = vunpack.c.l.bf16 %v15_v13  ;;  %v36_v31 = vunpack.c.h.bf16 %v15_v13  ;;  %v19_v33 = vld [vmem:[%s283_s0 + $0x40] sm:$0xff]  ;;  %v20_v42 = vld [vmem:[%s283_s0 + $0x48] sm:$0xff]  ;;  %v21_v47 = vld [vmem:[%s283_s0 + $0x50] sm:$0xff] }
   0x5   :  { %v65_v14 = vmul.f32 %v157_v5, %v27_v3  ;;  %v66_v15 = vmul.f32 %v159_v6, %v28_v4  ;;  %v67_v19 = vmul.f32 %v157_v5, %v29_v9  ;;  %v68_v20 = vmul.f32 %v159_v6, %v30_v10  ;;  %v22_v52 = vld [vmem:[%s283_s0 + $0x58] sm:$0xff]  ;;  %v23_v61 = vld [vmem:[%s283_s0 + $0x60] sm:$0xff]  ;;  %v24_v2 = vld [vmem:[%s283_s0 + $0x68] sm:$0xff] }
   0x6   :  { %v69_v21 = vmul.f32 %v157_v5, %v31_v11  ;;  %v70_v22 = vmul.f32 %v159_v6, %v32_v12  ;;  %v71_v25 = vmul.f32 %v157_v5, %v33_v16  ;;  %v72_v26 = vmul.f32 %v159_v6, %v34_v17  ;;  %v25_v9 = vld [vmem:[%s283_s0 + $0x70] sm:$0xff] }
   0x7   :  { %v97_v24 = vpack.c.bf16 %v66_v15, %v65_v14  ;;  %v98_v29 = vpack.c.bf16 %v68_v20, %v67_v19  ;;  %v37_v32 = vunpack.c.l.bf16 %v16_v18  ;;  %v73_v35 = vmul.f32 %v157_v5, %v35_v27 }
   0x8   :  { %v99_v30 = vpack.c.bf16 %v70_v22, %v69_v21  ;;  %v100_v34 = vpack.c.bf16 %v72_v26, %v71_v25  ;;  %v38_v36 = vunpack.c.h.bf16 %v16_v18  ;;  %v39_v37 = vunpack.c.l.bf16 %v17_v23  ;;  %v26_v18 = vld [vmem:[%s283_s0 + $0x78] sm:$0xff] }
   0x9   :  { %113 = vst [vmem:[%s285_s2] sm:$0xff] %v97_v24  ;;  %v74_v38 = vmul.f32 %v159_v6, %v36_v31  ;;  %v75_v39 = vmul.f32 %v157_v5, %v37_v32  ;;  %v40_v40 = vunpack.c.h.bf16 %v17_v23  ;;  %v41_v41 = vunpack.c.l.bf16 %v18_v28 }
   0xa   :  { %114 = vst [vmem:[%s285_s2 + $0x8] sm:$0xff] %v98_v29  ;;  %v76_v43 = vmul.f32 %v159_v6, %v38_v36  ;;  %v77_v44 = vmul.f32 %v157_v5, %v39_v37  ;;  %v42_v45 = vunpack.c.h.bf16 %v18_v28  ;;  %v43_v46 = vunpack.c.l.bf16 %v19_v33 }
   0xb   :  { %115 = vst [vmem:[%s285_s2 + $0x10] sm:$0xff] %v99_v30  ;;  %v101_v48 = vpack.c.bf16 %v74_v38, %v73_v35  ;;  %v78_v49 = vmul.f32 %v159_v6, %v40_v40  ;;  %v79_v50 = vmul.f32 %v157_v5, %v41_v41  ;;  %v44_v51 = vunpack.c.h.bf16 %v19_v33 }
   0xc   :  { %116 = vst [vmem:[%s285_s2 + $0x18] sm:$0xff] %v100_v34  ;;  %v102_v53 = vpack.c.bf16 %v76_v43, %v75_v39  ;;  %v80_v54 = vmul.f32 %v159_v6, %v42_v45  ;;  %v81_v55 = vmul.f32 %v157_v5, %v43_v46  ;;  %v45_v56 = vunpack.c.l.bf16 %v20_v42 }
   0xd   :  { %117 = vst [vmem:[%s285_s2 + $0x20] sm:$0xff] %v101_v48  ;;  %v103_v57 = vpack.c.bf16 %v78_v49, %v77_v44  ;;  %v82_v58 = vmul.f32 %v159_v6, %v44_v51  ;;  %v46_v59 = vunpack.c.h.bf16 %v20_v42  ;;  %v47_v60 = vunpack.c.l.bf16 %v21_v47 }
   0xe   :  { %118 = vst [vmem:[%s285_s2 + $0x28] sm:$0xff] %v102_v53  ;;  %v104_v62 = vpack.c.bf16 %v80_v54, %v79_v50  ;;  %v83_v63 = vmul.f32 %v157_v5, %v45_v56  ;;  %v48_v0 = vunpack.c.h.bf16 %v21_v47  ;;  %v49_v1 = vunpack.c.l.bf16 %v22_v52 }
   0xf   :  { %119 = vst [vmem:[%s285_s2 + $0x30] sm:$0xff] %v103_v57  ;;  %v105_v3 = vpack.c.bf16 %v82_v58, %v81_v55  ;;  %v84_v4 = vmul.f32 %v159_v6, %v46_v59  ;;  %v85_v7 = vmul.f32 %v157_v5, %v47_v60  ;;  %v50_v8 = vunpack.c.h.bf16 %v22_v52 }
  0x10   :  { %120 = vst [vmem:[%s285_s2 + $0x38] sm:$0xff] %v104_v62  ;;  %v86_v10 = vmul.f32 %v159_v6, %v48_v0  ;;  %v87_v11 = vmul.f32 %v157_v5, %v49_v1  ;;  %v51_v12 = vunpack.c.l.bf16 %v23_v61  ;;  %v52_v13 = vunpack.c.h.bf16 %v23_v61 }
  0x11   :  { %121 = vst [vmem:[%s285_s2 + $0x40] sm:$0xff] %v105_v3  ;;  %v106_v14 = vpack.c.bf16 %v84_v4, %v83_v63  ;;  %v88_v15 = vmul.f32 %v159_v6, %v50_v8  ;;  %v53_v16 = vunpack.c.l.bf16 %v24_v2  ;;  %v54_v17 = vunpack.c.h.bf16 %v24_v2 }
  0x12   :  { %v107_v19 = vpack.c.bf16 %v86_v10, %v85_v7  ;;  %v89_v20 = vmul.f32 %v157_v5, %v51_v12  ;;  %v90_v21 = vmul.f32 %v159_v6, %v52_v13  ;;  %v55_v22 = vunpack.c.l.bf16 %v25_v9 }
  0x13   :  { %122 = vst [vmem:[%s285_s2 + $0x48] sm:$0xff] %v106_v14  ;;  %v108_v23 = vpack.c.bf16 %v88_v15, %v87_v11  ;;  %v91_v24 = vmul.f32 %v157_v5, %v53_v16  ;;  %v92_v25 = vmul.f32 %v159_v6, %v54_v17  ;;  %v56_v26 = vunpack.c.h.bf16 %v25_v9 }
  0x14   :  { %123 = vst [vmem:[%s285_s2 + $0x50] sm:$0xff] %v107_v19  ;;  %v109_v27 = vpack.c.bf16 %v90_v21, %v89_v20  ;;  %v93_v28 = vmul.f32 %v157_v5, %v55_v22  ;;  %v57_v29 = vunpack.c.l.bf16 %v26_v18  ;;  %v58_v30 = vunpack.c.h.bf16 %v26_v18 }
  0x15   :  { %124 = vst [vmem:[%s285_s2 + $0x58] sm:$0xff] %v108_v23  ;;  %v110_v31 = vpack.c.bf16 %v92_v25, %v91_v24  ;;  %v94_v32 = vmul.f32 %v159_v6, %v56_v26 }
  0x16   :  { %125 = vst [vmem:[%s285_s2 + $0x60] sm:$0xff] %v109_v27  ;;  %v95_v33 = vmul.f32 %v157_v5, %v57_v29  ;;  %v96_v34 = vmul.f32 %v159_v6, %v58_v30 }
  0x17   :  { %126 = vst [vmem:[%s285_s2 + $0x68] sm:$0xff] %v110_v31  ;;  %v111_v35 = vpack.c.bf16 %v94_v32, %v93_v28 }
  0x18   :  { %v112_v36 = vpack.c.bf16 %v96_v34, %v95_v33 }
  0x19   :  { %127 = vst [vmem:[%s285_s2 + $0x70] sm:$0xff] %v111_v35 }
  0x1a   :  { %128 = vst [vmem:[%s285_s2 + $0x78] sm:$0xff] %v112_v36 }

// kernel: tile.8
= control target key start
LH: loop header
LB: loop body
LE: loop exit
PB: predicated region body
PF: predicated region fallthrough
CT: control target
= control target key end

     0   :  { %s22_s0 = inlined_call_operand.vmem [shape: f32[128], index: 0, kind: input, shape index: {}]   ;;  %s23_s1 = inlined_call_operand.vmem [shape: f32[4,128], index: 1, kind: output, shape index: {}]  }
   0x1   :  { %v4_v0 = vld [vmem:[%s22_s0] ss:$0 sm:$0xff] }
   0x2   :  { %5 = vst [vmem:[%s23_s1] sm:$0xf] %v4_v0 }

// kernel: forward.11
= control target key start
LH: loop header
LB: loop body
LE: loop exit
PB: predicated region body
PF: predicated region fallthrough
CT: control target
= control target key end

     0   :  { %s4818_s12 = smov 0   ;;  %s4820_s13 = smov 0   ;;  %s6280_s0 = inlined_call_operand.vmem [shape: bf16[128,2304], index: 0, kind: input, shape index: {}]   ;;  %s6281_s1 = inlined_call_operand.vmem [shape: bf16[2304,512], index: 1, kind: input, shape index: {}]   ;;  %s6282_s2 = inlined_call_operand.vmem [shape: f32[1,512], index: 2, kind: input, shape index: {}]   ;;  %s6283_s3 = inlined_call_operand.vmem [shape: f32[128,512], index: 3, kind: output, shape index: {}]  }
   0x1   :  { %s4822_s14 = smov 0   ;;  %s4824_s15 = smov 0  }
   0x2   :  { %s4826_s16 = smov 0  }
   0x3 LB: > { %s22_s17 = sadd.s32 1, %s4791_s15  ;;  %p41_p1 = scmp.ne.s32.totalorder %s4783_s13, %s4779_s12  ;;  %s4795_s16 = sphi %s4826_s16, %s13_s16   ;;  %s4791_s15 = sphi %s4824_s15, %s6382_s15   ;;  %s4787_s14 = sphi %s4822_s14, %s6381_s14   ;;  %s4783_s13 = sphi %s4820_s13, %s6380_s13   ;;  %s4779_s12 = sphi %s4818_s12, %s6379_s12  }
   0x4   : > { %p23_p0 = scmp.ge.s32.totalorder %s22_s17, 3  ;;  %p42_p2 = scmp.eq.s32.totalorder %s4795_s16, 0 }
   0x5   : > { %s34_s19 = sadd.s32 1, %s4783_s13  ;;  %p3501_p5 = scmp.ge.s32.totalorder %s4795_s16, 3 }
   0x6   : > { %s6384_s17 = smov (%p23_p0, %s22_s17), 0  ;;  %p43_p3 = por %p42_p2, %p41_p1 }
   0x7   : > { %s30_s18 = ssub.s32 %s4791_s15, %s6384_s17  ;;  %143 = sbr.rel (%p3501_p5) target bundleno = 65 (0x41), region = 20 }
   0x8   : > { %p32_p4 = scmp.eq.s32.totalorder %s30_s18, 0 }
   0xa   : > { %s4853_s20 = scalar_select %p32_p4, %s4783_s13, %s34_s19  }
   0xc   : > { %146 = sbr.rel (!%p43_p3) target bundleno = 65 (0x41), region = 24  ;;  %s148_s21 = sand.u32 (%p43_p3), 1, %s4783_s13  }
   0xd   : > { %s4472_s22 = smul.u32 (%p43_p3), 24, %s4791_s15 }
   0xe   : > { %s4714_s23 = smul.u32 (%p43_p3), 384, %s148_s21 }
   0xf   : > { %s4861_s26 = scalar_lea.vmem (%p43_p3), %s6280_s0, %s4472_s22 }
  0x10   : > { %v169_v0 = vld [vmem:[%s4861_s26] sm:$0xff] (%p43_p3)  ;;  %v171_v1 = vld [vmem:[%s4861_s26 + $0x8] sm:$0xff] (%p43_p3)  ;;  %v173_v2 = vld [vmem:[%s4861_s26 + $0x10] sm:$0xff] (%p43_p3)  ;;  %s4866_s27 = scalar_lea.vmem (%p43_p3), [#allocation3], %s4714_s23 }
  0x11   : > { %170 = vst [vmem:[%s4866_s27] sm:$0xff] %v169_v0  ;;  %v175_v3 = vld [vmem:[%s4861_s26 + $0x48] sm:$0xff]  ;;  %v177_v4 = vld [vmem:[%s4861_s26 + $0x50] sm:$0xff]  ;;  %v179_v5 = vld [vmem:[%s4861_s26 + $0x58] sm:$0xff] }
  0x12   : > { %172 = vst [vmem:[%s4866_s27 + $0x8] sm:$0xff] %v171_v1  ;;  %v181_v6 = vld [vmem:[%s4861_s26 + $0x90] sm:$0xff]  ;;  %v183_v7 = vld [vmem:[%s4861_s26 + $0x98] sm:$0xff]  ;;  %v185_v8 = vld [vmem:[%s4861_s26 + $0xa0] sm:$0xff] }
  0x13   : > { %174 = vst [vmem:[%s4866_s27 + $0x10] sm:$0xff] %v173_v2  ;;  %v187_v9 = vld [vmem:[%s4861_s26 + $0xd8] sm:$0xff]  ;;  %v189_v10 = vld [vmem:[%s4861_s26 + $0xe0] sm:$0xff]  ;;  %v191_v11 = vld [vmem:[%s4861_s26 + $0xe8] sm:$0xff] }
  0x14   : > { %176 = vst [vmem:[%s4866_s27 + $0x18] sm:$0xff] %v175_v3  ;;  %v193_v12 = vld [vmem:[%s4861_s26 + $0x120] sm:$0xff]  ;;  %v195_v13 = vld [vmem:[%s4861_s26 + $0x128] sm:$0xff]  ;;  %v197_v14 = vld [vmem:[%s4861_s26 + $0x130] sm:$0xff] }
  0x15   : > { %178 = vst [vmem:[%s4866_s27 + $0x20] sm:$0xff] %v177_v4  ;;  %v199_v15 = vld [vmem:[%s4861_s26 + $0x168] sm:$0xff]  ;;  %v201_v16 = vld [vmem:[%s4861_s26 + $0x170] sm:$0xff]  ;;  %v203_v17 = vld [vmem:[%s4861_s26 + $0x178] sm:$0xff] }
  0x16   : > { %180 = vst [vmem:[%s4866_s27 + $0x28] sm:$0xff] %v179_v5  ;;  %v205_v18 = vld [vmem:[%s4861_s26 + $0x1b0] sm:$0xff]  ;;  %v207_v19 = vld [vmem:[%s4861_s26 + $0x1b8] sm:$0xff]  ;;  %v209_v20 = vld [vmem:[%s4861_s26 + $0x1c0] sm:$0xff] }
  0x17   : > { %182 = vst [vmem:[%s4866_s27 + $0x30] sm:$0xff] %v181_v6  ;;  %v211_v21 = vld [vmem:[%s4861_s26 + $0x1f8] sm:$0xff]  ;;  %v213_v22 = vld [vmem:[%s4861_s26 + $0x200] sm:$0xff]  ;;  %v215_v23 = vld [vmem:[%s4861_s26 + $0x208] sm:$0xff] }
  0x18   : > { %184 = vst [vmem:[%s4866_s27 + $0x38] sm:$0xff] %v183_v7  ;;  %v217_v24 = vld [vmem:[%s4861_s26 + $0x240] sm:$0xff]  ;;  %v219_v25 = vld [vmem:[%s4861_s26 + $0x248] sm:$0xff]  ;;  %v221_v26 = vld [vmem:[%s4861_s26 + $0x250] sm:$0xff] }
  0x19   : > { %186 = vst [vmem:[%s4866_s27 + $0x40] sm:$0xff] %v185_v8  ;;  %v223_v27 = vld [vmem:[%s4861_s26 + $0x288] sm:$0xff]  ;;  %v225_v28 = vld [vmem:[%s4861_s26 + $0x290] sm:$0xff]  ;;  %v227_v29 = vld [vmem:[%s4861_s26 + $0x298] sm:$0xff] }
  0x1a   : > { %188 = vst [vmem:[%s4866_s27 + $0x48] sm:$0xff] %v187_v9  ;;  %v229_v30 = vld [vmem:[%s4861_s26 + $0x2d0] sm:$0xff]  ;;  %v231_v31 = vld [vmem:[%s4861_s26 + $0x2d8] sm:$0xff]  ;;  %v233_v32 = vld [vmem:[%s4861_s26 + $0x2e0] sm:$0xff] }
  0x1b   : > { %190 = vst [vmem:[%s4866_s27 + $0x50] sm:$0xff] %v189_v10  ;;  %v235_v33 = vld [vmem:[%s4861_s26 + $0x318] sm:$0xff]  ;;  %v237_v34 = vld [vmem:[%s4861_s26 + $0x320] sm:$0xff]  ;;  %v239_v35 = vld [vmem:[%s4861_s26 + $0x328] sm:$0xff] }
  0x1c   : > { %192 = vst [vmem:[%s4866_s27 + $0x58] sm:$0xff] %v191_v11  ;;  %v241_v36 = vld [vmem:[%s4861_s26 + $0x360] sm:$0xff]  ;;  %v243_v37 = vld [vmem:[%s4861_s26 + $0x368] sm:$0xff]  ;;  %v245_v38 = vld [vmem:[%s4861_s26 + $0x370] sm:$0xff] }
  0x1d   : > { %194 = vst [vmem:[%s4866_s27 + $0x60] sm:$0xff] %v193_v12  ;;  %v247_v39 = vld [vmem:[%s4861_s26 + $0x3a8] sm:$0xff]  ;;  %v249_v40 = vld [vmem:[%s4861_s26 + $0x3b0] sm:$0xff]  ;;  %v251_v41 = vld [vmem:[%s4861_s26 + $0x3b8] sm:$0xff] }
  0x1e   : > { %196 = vst [vmem:[%s4866_s27 + $0x68] sm:$0xff] %v195_v13  ;;  %v253_v42 = vld [vmem:[%s4861_s26 + $0x3f0] sm:$0xff]  ;;  %v255_v43 = vld [vmem:[%s4861_s26 + $0x3f8] sm:$0xff]  ;;  %v257_v44 = vld [vmem:[%s4861_s26 + $0x400] sm:$0xff] }
  0x1f   : > { %198 = vst [vmem:[%s4866_s27 + $0x70] sm:$0xff] %v197_v14  ;;  %v259_v45 = vld [vmem:[%s4861_s26 + $0x438] sm:$0xff]  ;;  %v261_v46 = vld [vmem:[%s4861_s26 + $0x440] sm:$0xff]  ;;  %v263_v47 = vld [vmem:[%s4861_s26 + $0x448] sm:$0xff] }
  0x20   : > { %200 = vst [vmem:[%s4866_s27 + $0x78] sm:$0xff] %v199_v15 }
  0x21   : > { %202 = vst [vmem:[%s4866_s27 + $0x80] sm:$0xff] %v201_v16 }
  0x22   : > { %204 = vst [vmem:[%s4866_s27 + $0x88] sm:$0xff] %v203_v17 }
  0x23   : > { %206 = vst [vmem:[%s4866_s27 + $0x90] sm:$0xff] %v205_v18 }
  0x24   : > { %208 = vst [vmem:[%s4866_s27 + $0x98] sm:$0xff] %v207_v19 }
  0x25   : > { %210 = vst [vmem:[%s4866_s27 + $0xa0] sm:$0xff] %v209_v20 }
  0x26   : > { %212 = vst [vmem:[%s4866_s27 + $0xa8] sm:$0xff] %v211_v21 }
  0x27   : > { %214 = vst [vmem:[%s4866_s27 + $0xb0] sm:$0xff] %v213_v22 }
  0x28   : > { %216 = vst [vmem:[%s4866_s27 + $0xb8] sm:$0xff] %v215_v23 }
  0x29   : > { %218 = vst [vmem:[%s4866_s27 + $0xc0] sm:$0xff] %v217_v24 }
  0x2a   : > { %220 = vst [vmem:[%s4866_s27 + $0xc8] sm:$0xff] %v219_v25 }
  0x2b   : > { %222 = vst [vmem:[%s4866_s27 + $0xd0] sm:$0xff] %v221_v26 }
  0x2c   : > { %224 = vst [vmem:[%s4866_s27 + $0xd8] sm:$0xff] %v223_v27 }
  0x2d   : > { %226 = vst [vmem:[%s4866_s27 + $0xe0] sm:$0xff] %v225_v28 }
  0x2e   : > { %228 = vst [vmem:[%s4866_s27 + $0xe8] sm:$0xff] %v227_v29 }
  0x2f   : > { %230 = vst [vmem:[%s4866_s27 + $0xf0] sm:$0xff] %v229_v30 }
  0x30   : > { %232 = vst [vmem:[%s4866_s27 + $0xf8] sm:$0xff] %v231_v31 }
  0x31   : > { %234 = vst [vmem:[%s4866_s27 + $0x100] sm:$0xff] %v233_v32 }
  0x32   : > { %236 = vst [vmem:[%s4866_s27 + $0x108] sm:$0xff] %v235_v33 }
  0x33   : > { %238 = vst [vmem:[%s4866_s27 + $0x110] sm:$0xff] %v237_v34 }
  0x34   : > { %240 = vst [vmem:[%s4866_s27 + $0x118] sm:$0xff] %v239_v35 }
  0x35   : > { %242 = vst [vmem:[%s4866_s27 + $0x120] sm:$0xff] %v241_v36 }
  0x36   : > { %244 = vst [vmem:[%s4866_s27 + $0x128] sm:$0xff] %v243_v37 }
  0x37   : > { %246 = vst [vmem:[%s4866_s27 + $0x130] sm:$0xff] %v245_v38 }
  0x38   : > { %248 = vst [vmem:[%s4866_s27 + $0x138] sm:$0xff] %v247_v39 }
  0x39   : > { %250 = vst [vmem:[%s4866_s27 + $0x140] sm:$0xff] %v249_v40 }
  0x3a   : > { %252 = vst [vmem:[%s4866_s27 + $0x148] sm:$0xff] %v251_v41 }
  0x3b   : > { %254 = vst [vmem:[%s4866_s27 + $0x150] sm:$0xff] %v253_v42 }
  0x3c   : > { %256 = vst [vmem:[%s4866_s27 + $0x158] sm:$0xff] %v255_v43 }
  0x3d   : > { %258 = vst [vmem:[%s4866_s27 + $0x160] sm:$0xff] %v257_v44 }
  0x3e   : > { %260 = vst [vmem:[%s4866_s27 + $0x168] sm:$0xff] %v259_v45 }
  0x3f   : > { %262 = vst [vmem:[%s4866_s27 + $0x170] sm:$0xff] %v261_v46 }
  0x40   : > { %264 = vst [vmem:[%s4866_s27 + $0x178] sm:$0xff] %v263_v47 }
  0x41 PF: > { %p3503_p6 = scmp.ge.s32.totalorder %s4795_s16, 1  ;;  %p279_p7 = scmp.lt.s32.totalorder %s4795_s16, 4 }
  0x43   : > { %p280_p8 = pnand %p3503_p6, %p279_p7 }
  0x45   : > { %283 = sbr.rel (%p280_p8) target bundleno = 1151 (0x47f), region = 51 }
  0x4a   : > { %s286_s28 = sand.u32 1, %s4779_s12   ;;  %s318_s29 = smul.u32 96, %s4787_s14 }
  0x4b   : > { %s4715_s30 = smul.u32 384, %s286_s28  ;;  %p3506_p10 = scmp.ne.s32.totalorder %s4787_s14, 0 }
  0x4c   : > { %p319_p9 = scmp.lt.s32.totalorder %s318_s29, 287 }
  0x4d   : > { %s4970_s8 = scalar_lea.vmem [#allocation3], %s4715_s30  ;;  %335 = sbr.rel (%p3506_p10) target bundleno = 147 (0x93), region = 59 }
  0x4e   : > { %s6386_s29 = smov (!%p319_p9, %s318_s29), 287 }
  0x4f   : > { %s4473_s4 = sshll.u32 %s6386_s29, 4 }
  0x50   : > { %s4968_s7 = scalar_lea.vmem %s6281_s1, %s4473_s4 }
  0x52   : > { %v4797_v48 = vmov 0.0  }
  0x53   : > { %336 = vst [vmem:[#allocation2 + $0xb0] sm:$0xff] %v4797_v48 }
  0x54   : > { %337 = vst [vmem:[#allocation2 + $0x1b0] sm:$0xff] %v4797_v48 }
  0x55   : > { %338 = vst [vmem:[#allocation2 + $0xd8] sm:$0xff] %v4797_v48 }
  0x56   : > { %339 = vst [vmem:[#allocation2 + $0x18] sm:$0xff] %v4797_v48 }
  0x57   : > { %340 = vst [vmem:[#allocation2 + $0x50] sm:$0xff] %v4797_v48 }
  0x58   : > { %341 = vst [vmem:[#allocation2 + $0x168] sm:$0xff] %v4797_v48 }
  0x59   : > { %342 = vst [vmem:[#allocation2 + $0x130] sm:$0xff] %v4797_v48 }
  0x5a   : > { %343 = vst [vmem:[#allocation2 + $0x48] sm:$0xff] %v4797_v48 }
  0x5b   : > { %344 = vst [vmem:[#allocation2 + $0x180] sm:$0xff] %v4797_v48 }
  0x5c   : > { %345 = vst [vmem:[#allocation2 + $0x110] sm:$0xff] %v4797_v48 }
  0x5d   : > { %346 = vst [vmem:[#allocation2 + $0x118] sm:$0xff] %v4797_v48 }
  0x5e   : > { %347 = vst [vmem:[#allocation2 + $0x98] sm:$0xff] %v4797_v48 }
  0x5f   : > { %348 = vst [vmem:[#allocation2 + $0x120] sm:$0xff] %v4797_v48 }
  0x60   : > { %349 = vst [vmem:[#allocation2 + $0x150] sm:$0xff] %v4797_v48 }
  0x61   : > { %350 = vst [vmem:[#allocation2 + $0x108] sm:$0xff] %v4797_v48 }
  0x62   : > { %351 = vst [vmem:[#allocation2 + $0x60] sm:$0xff] %v4797_v48 }
  0x63   : > { %352 = vst [vmem:[#allocation2 + $0xe0] sm:$0xff] %v4797_v48 }
  0x64   : > { %353 = vst [vmem:[#allocation2 + $0x188] sm:$0xff] %v4797_v48 }
  0x65   : > { %354 = vst [vmem:[#allocation2 + $0x138] sm:$0xff] %v4797_v48 }
  0x66   : > { %355 = vst [vmem:[#allocation2 + $0x140] sm:$0xff] %v4797_v48 }
  0x67   : > { %356 = vst [vmem:[#allocation2 + $0x80] sm:$0xff] %v4797_v48 }
  0x68   : > { %357 = vst [vmem:[#allocation2 + $0x1a8] sm:$0xff] %v4797_v48 }
  0x69   : > { %358 = vst [vmem:[#allocation2 + $0x1b8] sm:$0xff] %v4797_v48 }
  0x6a   : > { %359 = vst [vmem:[#allocation2 + $0x28] sm:$0xff] %v4797_v48 }
  0x6b   : > { %360 = vst [vmem:[#allocation2 + $0x1e8] sm:$0xff] %v4797_v48 }
  0x6c   : > { %361 = vst [vmem:[#allocation2 + $0xf8] sm:$0xff] %v4797_v48 }
  0x6d   : > { %362 = vst [vmem:[#allocation2 + $0x160] sm:$0xff] %v4797_v48 }
  0x6e   : > { %363 = vst [vmem:[#allocation2 + $0x30] sm:$0xff] %v4797_v48 }
  0x6f   : > { %364 = vst [vmem:[#allocation2 + $0x1e0] sm:$0xff] %v4797_v48 }
  0x70   : > { %365 = vst [vmem:[#allocation2] sm:$0xff] %v4797_v48 }
  0x71   : > { %366 = vst [vmem:[#allocation2 + $0xf0] sm:$0xff] %v4797_v48 }
  0x72   : > { %367 = vst [vmem:[#allocation2 + $0x8] sm:$0xff] %v4797_v48 }
  0x73   : > { %368 = vst [vmem:[#allocation2 + $0x148] sm:$0xff] %v4797_v48 }
  0x74   : > { %369 = vst [vmem:[#allocation2 + $0x1d0] sm:$0xff] %v4797_v48 }
  0x75   : > { %370 = vst [vmem:[#allocation2 + $0x100] sm:$0xff] %v4797_v48 }
  0x76   : > { %371 = vst [vmem:[#allocation2 + $0xc8] sm:$0xff] %v4797_v48 }
  0x77   : > { %372 = vst [vmem:[#allocation2 + $0x40] sm:$0xff] %v4797_v48 }
  0x78   : > { %373 = vst [vmem:[#allocation2 + $0x1f8] sm:$0xff] %v4797_v48 }
  0x79   : > { %374 = vst [vmem:[#allocation2 + $0x20] sm:$0xff] %v4797_v48 }
  0x7a   : > { %375 = vst [vmem:[#allocation2 + $0x128] sm:$0xff] %v4797_v48 }
  0x7b   : > { %376 = vst [vmem:[#allocation2 + $0x1a0] sm:$0xff] %v4797_v48 }
  0x7c   : > { %377 = vst [vmem:[#allocation2 + $0x1f0] sm:$0xff] %v4797_v48 }
  0x7d   : > { %378 = vst [vmem:[#allocation2 + $0xe8] sm:$0xff] %v4797_v48 }
  0x7e   : > { %379 = vst [vmem:[#allocation2 + $0x78] sm:$0xff] %v4797_v48 }
  0x7f   : > { %380 = vst [vmem:[#allocation2 + $0x70] sm:$0xff] %v4797_v48 }
  0x80   : > { %381 = vst [vmem:[#allocation2 + $0x90] sm:$0xff] %v4797_v48 }
  0x81   : > { %382 = vst [vmem:[#allocation2 + $0x1d8] sm:$0xff] %v4797_v48 }
  0x82   : > { %383 = vst [vmem:[#allocation2 + $0xd0] sm:$0xff] %v4797_v48 }
  0x83   : > { %384 = vst [vmem:[#allocation2 + $0xb8] sm:$0xff] %v4797_v48 }
  0x84   : > { %385 = vst [vmem:[#allocation2 + $0x88] sm:$0xff] %v4797_v48 }
  0x85   : > { %386 = vst [vmem:[#allocation2 + $0xa8] sm:$0xff] %v4797_v48 }
  0x86   : > { %387 = vst [vmem:[#allocation2 + $0x1c8] sm:$0xff] %v4797_v48 }
  0x87   : > { %388 = vst [vmem:[#allocation2 + $0x170] sm:$0xff] %v4797_v48 }
  0x88   : > { %389 = vst [vmem:[#allocation2 + $0x178] sm:$0xff] %v4797_v48 }
  0x89   : > { %390 = vst [vmem:[#allocation2 + $0x68] sm:$0xff] %v4797_v48 }
  0x8a   : > { %391 = vst [vmem:[#allocation2 + $0x190] sm:$0xff] %v4797_v48 }
  0x8b   : > { %392 = vst [vmem:[#allocation2 + $0x198] sm:$0xff] %v4797_v48 }
  0x8c   : > { %393 = vst [vmem:[#allocation2 + $0x38] sm:$0xff] %v4797_v48 }
  0x8d   : > { %394 = vst [vmem:[#allocation2 + $0xc0] sm:$0xff] %v4797_v48 }
  0x8e   : > { %395 = vst [vmem:[#allocation2 + $0x1c0] sm:$0xff] %v4797_v48 }
  0x8f   : > { %396 = vst [vmem:[#allocation2 + $0x158] sm:$0xff] %v4797_v48 }
  0x90   : > { %397 = vst [vmem:[#allocation2 + $0x10] sm:$0xff] %v4797_v48 }
  0x91   : > { %398 = vst [vmem:[#allocation2 + $0x58] sm:$0xff] %v4797_v48 }
  0x92   : > { %399 = vst [vmem:[#allocation2 + $0xa0] sm:$0xff] %v4797_v48 }
  0x93 PF: > { %v3813_v49 = vld [vmem:[%s4968_s7 + $0xe0] sm:$0xf]  ;;  %v4552_v50 = vld [vmem:[%s4968_s7 + $0xec] sm:$0xf0]  ;;  %p4467_p11 = scmp.ne.s32.totalorder %s4787_s14, 2 }
  0x94   : > { %v3941_v51 = vld [vmem:[%s4968_s7 + $0x1e0] sm:$0xf]  ;;  %v3814_v52 = vor.u32 %v4552_v50, %v3813_v49  ;;  %v4584_v53 = vld [vmem:[%s4968_s7 + $0x1ec] sm:$0xf0] }
  0x95   : > { %v4069_v54 = vld [vmem:[%s4968_s7 + $0x2e0] sm:$0xf]  ;;  %v4616_v55 = vld [vmem:[%s4968_s7 + $0x2ec] sm:$0xf0]  ;;  %v3942_v56 = vor.u32 %v4584_v53, %v3941_v51 }
  0x96   : > { %v4070_v57 = vor.u32 %v4616_v55, %v4069_v54  ;;  %v4197_v58 = vld [vmem:[%s4968_s7 + $0x3e0] sm:$0xf]  ;;  %v4648_v59 = vld [vmem:[%s4968_s7 + $0x3ec] sm:$0xf0]  ;;  %1904 = vmatpush.bf16.msra.mxu0 %v3814_v52 }
  0x97   : > { %v3797_v60 = vld [vmem:[%s4968_s7 + $0xc0] sm:$0xf]  ;;  %v4198_v61 = vor.u32 %v4648_v59, %v4197_v58  ;;  %v4548_v62 = vld [vmem:[%s4968_s7 + $0xcc] sm:$0xf0]  ;;  %1953 = vmatpush.bf16.msra.mxu1 %v3942_v56 }
  0x98   : > { %v3925_v63 = vld [vmem:[%s4968_s7 + $0x1c0] sm:$0xf]  ;;  %v4580_v0 = vld [vmem:[%s4968_s7 + $0x1cc] sm:$0xf0]  ;;  %2002 = vmatpush.bf16.msra.mxu2 %v4070_v57  ;;  %v3798_v1 = vor.u32 %v4548_v62, %v3797_v60 }
  0x99   : > { %v3926_v2 = vor.u32 %v4580_v0, %v3925_v63  ;;  %v4053_v3 = vld [vmem:[%s4968_s7 + $0x2c0] sm:$0xf]  ;;  %v4612_v4 = vld [vmem:[%s4968_s7 + $0x2cc] sm:$0xf0]  ;;  %2051 = vmatpush.bf16.msra.mxu3 %v4198_v61 }
  0x9a   : > { %v4181_v5 = vld [vmem:[%s4968_s7 + $0x3c0] sm:$0xf]  ;;  %v4054_v6 = vor.u32 %v4612_v4, %v4053_v3  ;;  %v4644_v7 = vld [vmem:[%s4968_s7 + $0x3cc] sm:$0xf0]  ;;  %1905 = vmatpush.bf16.msra.mxu0 %v3798_v1 }
  0x9b   : > { %v3781_v8 = vld [vmem:[%s4968_s7 + $0xa0] sm:$0xf]  ;;  %v4544_v9 = vld [vmem:[%s4968_s7 + $0xac] sm:$0xf0]  ;;  %v4182_v10 = vor.u32 %v4644_v7, %v4181_v5  ;;  %1954 = vmatpush.bf16.msra.mxu1 %v3926_v2 }
  0x9c   : > { %v3909_v11 = vld [vmem:[%s4968_s7 + $0x1a0] sm:$0xf]  ;;  %v4576_v12 = vld [vmem:[%s4968_s7 + $0x1ac] sm:$0xf0]  ;;  %v3782_v14 = vor.u32 %v4544_v9, %v3781_v8  ;;  %2003 = vmatpush.bf16.msra.mxu2 %v4054_v6 }
  0x9d   : > { %v4037_v13 = vld [vmem:[%s4968_s7 + $0x2a0] sm:$0xf]  ;;  %v4608_v15 = vld [vmem:[%s4968_s7 + $0x2ac] sm:$0xf0]  ;;  %v3910_v18 = vor.u32 %v4576_v12, %v3909_v11  ;;  %2052 = vmatpush.bf16.msra.mxu3 %v4182_v10 }
  0x9e   : > { %v4165_v16 = vld [vmem:[%s4968_s7 + $0x3a0] sm:$0xf]  ;;  %v4640_v17 = vld [vmem:[%s4968_s7 + $0x3ac] sm:$0xf0]  ;;  %v4038_v19 = vor.u32 %v4608_v15, %v4037_v13  ;;  %1906 = vmatpush.bf16.msra.mxu0 %v3782_v14  ;;  %v4477_v14 = vld [vmem:[%s4970_s8 + $0x14] sm:$0xf0] }
  0x9f   : > { %v3765_v20 = vld [vmem:[%s4968_s7 + $0x80] sm:$0xf]  ;;  %v4540_v21 = vld [vmem:[%s4968_s7 + $0x8c] sm:$0xf0]  ;;  %v4166_v23 = vor.u32 %v4640_v17, %v4165_v16  ;;  %1955 = vmatpush.bf16.msra.mxu1 %v3910_v18  ;;  %v4474_v15 = vld [vmem:[%s4970_s8 + $0x4] sm:$0xf] }
  0xa0   : > { %v3893_v22 = vld [vmem:[%s4968_s7 + $0x180] sm:$0xf]  ;;  %v4572_v24 = vld [vmem:[%s4968_s7 + $0x18c] sm:$0xf0]  ;;  %v3766_v29 = vor.u32 %v4540_v21, %v3765_v20  ;;  %2004 = vmatpush.bf16.msra.mxu2 %v4038_v19  ;;  %v3511_v16 = vld [vmem:[%s4970_s8 + $0x18] sm:$0xf0] }
  0xa1   : > { %v4021_v25 = vld [vmem:[%s4968_s7 + $0x280] sm:$0xf]  ;;  %v4604_v26 = vld [vmem:[%s4968_s7 + $0x28c] sm:$0xf0]  ;;  %v3894_v30 = vor.u32 %v4572_v24, %v3893_v22  ;;  %2053 = vmatpush.bf16.msra.mxu3 %v4166_v23  ;;  %v4550_v17 = vld [vmem:[%s4968_s7 + $0xe4] sm:$0xf] }
  0xa2   : > { %v4149_v27 = vld [vmem:[%s4968_s7 + $0x380] sm:$0xf]  ;;  %v4636_v28 = vld [vmem:[%s4968_s7 + $0x38c] sm:$0xf0]  ;;  %v4022_v31 = vor.u32 %v4604_v26, %v4021_v25  ;;  %1907 = vmatpush.bf16.msra.mxu0 %v3766_v29  ;;  %v3815_v18 = vld [vmem:[%s4968_s7 + $0xf0] sm:$0xf0] }
  0xa3   : > { %v3749_v32 = vld [vmem:[%s4968_s7 + $0x60] sm:$0xf]  ;;  %v4536_v33 = vld [vmem:[%s4968_s7 + $0x6c] sm:$0xf0]  ;;  %v4150_v35 = vor.u32 %v4636_v28, %v4149_v27  ;;  %1956 = vmatpush.bf16.msra.mxu1 %v3894_v30  ;;  %v3517_v20 = vld [vmem:[%s4970_s8 + $0x8] sm:$0xf]  ;;  %v3818_v29 = vor.u32 %v4550_v17, %v3815_v18 }
  0xa4   : > { %v3877_v34 = vld [vmem:[%s4968_s7 + $0x160] sm:$0xf]  ;;  %v4568_v36 = vld [vmem:[%s4968_s7 + $0x16c] sm:$0xf0]  ;;  %v3750_v41 = vor.u32 %v4536_v33, %v3749_v32  ;;  %2005 = vmatpush.bf16.msra.mxu2 %v4022_v31  ;;  %v4582_v21 = vld [vmem:[%s4968_s7 + $0x1e4] sm:$0xf] }
  0xa5   : > { %v4005_v37 = vld [vmem:[%s4968_s7 + $0x260] sm:$0xf]  ;;  %v4600_v38 = vld [vmem:[%s4968_s7 + $0x26c] sm:$0xf0]  ;;  %v3878_v42 = vor.u32 %v4568_v36, %v3877_v34  ;;  %2054 = vmatpush.bf16.msra.mxu3 %v4150_v35  ;;  %v3943_v22 = vld [vmem:[%s4968_s7 + $0x1f0] sm:$0xf0] }
  0xa6   : > { %v4133_v39 = vld [vmem:[%s4968_s7 + $0x360] sm:$0xf]  ;;  %v4632_v40 = vld [vmem:[%s4968_s7 + $0x36c] sm:$0xf0]  ;;  %v4006_v43 = vor.u32 %v4600_v38, %v4005_v37  ;;  %1908 = vmatpush.bf16.msra.mxu0 %v3750_v41  ;;  %v4475_v26 = vld [vmem:[%s4970_s8 + $0xc] sm:$0xf]  ;;  %v3946_v34 = vor.u32 %v4582_v21, %v3943_v22  ;;  %v5121_v38 = vor.u32 %v4474_v15, %v3511_v16 }
  0xa7   : > { %v3733_v44 = vld [vmem:[%s4968_s7 + $0x40] sm:$0xf]  ;;  %v4532_v45 = vld [vmem:[%s4968_s7 + $0x4c] sm:$0xf0]  ;;  %v4134_v47 = vor.u32 %v4632_v40, %v4133_v39  ;;  %1957 = vmatpush.bf16.msra.mxu1 %v3878_v42  ;;  %v3519_v27 = vld [vmem:[%s4970_s8 + $0x20] sm:$0xf0] }
  0xa8   : > { %v3861_v46 = vld [vmem:[%s4968_s7 + $0x140] sm:$0xf]  ;;  %v4564_v48 = vld [vmem:[%s4968_s7 + $0x14c] sm:$0xf0]  ;;  %v3734_v53 = vor.u32 %v4532_v45, %v3733_v44  ;;  %2006 = vmatpush.bf16.msra.mxu2 %v4006_v43  ;;  %v4546_v36 = vld [vmem:[%s4968_s7 + $0xc4] sm:$0xf]  ;;  %v5127_v42 = vor.u32 %v4475_v26, %v3519_v27 }
  0xa9   : > { %v3989_v49 = vld [vmem:[%s4968_s7 + $0x240] sm:$0xf]  ;;  %v4596_v50 = vld [vmem:[%s4968_s7 + $0x24c] sm:$0xf0]  ;;  %v3862_v54 = vor.u32 %v4564_v48, %v3861_v46  ;;  %2055 = vmatpush.bf16.msra.mxu3 %v4134_v47  ;;  %v3799_v37 = vld [vmem:[%s4968_s7 + $0xd0] sm:$0xf0] }
  0xaa   : > { %v4117_v51 = vld [vmem:[%s4968_s7 + $0x340] sm:$0xf]  ;;  %v4628_v52 = vld [vmem:[%s4968_s7 + $0x34c] sm:$0xf0]  ;;  %v3990_v55 = vor.u32 %v4596_v50, %v3989_v49  ;;  %1909 = vmatpush.bf16.msra.mxu0 %v3734_v53  ;;  %6330 = vst [vmem:[#allocation5_spill] sm:$0xff] %v5121_v38  ;;  %v3802_v45 = vor.u32 %v4546_v36, %v3799_v37 }
  0xab   : > { %v3717_v56 = vld [vmem:[%s4968_s7 + $0x20] sm:$0xf]  ;;  %v4528_v57 = vld [vmem:[%s4968_s7 + $0x2c] sm:$0xf0]  ;;  %v4118_v59 = vor.u32 %v4628_v52, %v4117_v51  ;;  %1958 = vmatpush.bf16.msra.mxu1 %v3862_v54  ;;  %v4578_v40 = vld [vmem:[%s4968_s7 + $0x1c4] sm:$0xf] }
  0xac   : > { %v3845_v58 = vld [vmem:[%s4968_s7 + $0x120] sm:$0xf]  ;;  %v4560_v60 = vld [vmem:[%s4968_s7 + $0x12c] sm:$0xf0]  ;;  %v3718_v2 = vor.u32 %v4528_v57, %v3717_v56  ;;  %2007 = vmatpush.bf16.msra.mxu2 %v3990_v55  ;;  %v3927_v41 = vld [vmem:[%s4968_s7 + $0x1d0] sm:$0xf0] }
  0xad   : > { %v3973_v61 = vld [vmem:[%s4968_s7 + $0x220] sm:$0xf]  ;;  %v4592_v62 = vld [vmem:[%s4968_s7 + $0x22c] sm:$0xf0]  ;;  %v3846_v6 = vor.u32 %v4560_v60, %v3845_v58  ;;  %2056 = vmatpush.bf16.msra.mxu3 %v4118_v59  ;;  %6332 = vst [vmem:[#allocation7_spill] sm:$0xff] %v5127_v42  ;;  %v3930_v48 = vor.u32 %v4578_v40, %v3927_v41 }
  0xae   : > { %v4101_v63 = vld [vmem:[%s4968_s7 + $0x320] sm:$0xf]  ;;  %v4624_v0 = vld [vmem:[%s4968_s7 + $0x32c] sm:$0xf0]  ;;  %v3974_v7 = vor.u32 %v4592_v62, %v3973_v61  ;;  %1910 = vmatpush.bf16.msra.mxu0 %v3718_v2  ;;  %v4542_v52 = vld [vmem:[%s4968_s7 + $0xa4] sm:$0xf] }
  0xaf   : > { %v3701_v1 = vld [vmem:[%s4968_s7] sm:$0xf]  ;;  %v4524_v3 = vld [vmem:[%s4968_s7 + $0xc] sm:$0xf0]  ;;  %v4102_v11 = vor.u32 %v4624_v0, %v4101_v63  ;;  %1959 = vmatpush.bf16.msra.mxu1 %v3846_v6  ;;  %v3783_v53 = vld [vmem:[%s4968_s7 + $0xb0] sm:$0xf0] }
  0xb0   : > { %v3829_v4 = vld [vmem:[%s4968_s7 + $0x100] sm:$0xf]  ;;  %v4556_v5 = vld [vmem:[%s4968_s7 + $0x10c] sm:$0xf0]  ;;  %v3702_v19 = vor.u32 %v4524_v3, %v3701_v1  ;;  %2008 = vmatpush.bf16.msra.mxu2 %v3974_v7  ;;  %v3786_v56 = vor.u32 %v4542_v52, %v3783_v53  ;;  %v4574_v58 = vld [vmem:[%s4968_s7 + $0x1a4] sm:$0xf] }
  0xb1   : > { %v3957_v8 = vld [vmem:[%s4968_s7 + $0x200] sm:$0xf]  ;;  %v4588_v9 = vld [vmem:[%s4968_s7 + $0x20c] sm:$0xf0]  ;;  %v3830_v23 = vor.u32 %v4556_v5, %v3829_v4  ;;  %2057 = vmatpush.bf16.msra.mxu3 %v4102_v11  ;;  %v3911_v59 = vld [vmem:[%s4968_s7 + $0x1b0] sm:$0xf0] }
  0xb2   : > { %v4085_v10 = vld [vmem:[%s4968_s7 + $0x300] sm:$0xf]  ;;  %v4620_v12 = vld [vmem:[%s4968_s7 + $0x30c] sm:$0xf0]  ;;  %v3958_v24 = vor.u32 %v4588_v9, %v3957_v8  ;;  %1911 = vmatpush.bf16.msra.mxu0 %v3702_v19  ;;  %v3914_v60 = vor.u32 %v4574_v58, %v3911_v59  ;;  %v4483_v2 = vld [vmem:[%s4970_s8 + $0x44] sm:$0xf0] }
  0xb3   : > { %v3509_v13 = vld [vmem:[%s4970_s8] sm:$0xf]  ;;  %v4086_v28 = vor.u32 %v4620_v12, %v4085_v10  ;;  %v4680_v31 = vld [vmem:[%s4968_s7 + $0x4ec] sm:$0xf0]  ;;  %1960 = vmatpush.bf16.msra.mxu1 %v3830_v23  ;;  %v4480_v3 = vld [vmem:[%s4970_s8 + $0x34] sm:$0xf] }
  0xb4   : > { %v4478_v25 = vld [vmem:[%s4970_s8 + $0x1c] sm:$0xf0]  ;;  %v5116_v33 = vor.u32 %v4477_v14, %v3509_v13  ;;  %v4712_v35 = vld [vmem:[%s4968_s7 + $0x5ec] sm:$0xf0]  ;;  %2009 = vmatpush.bf16.msra.mxu2 %v3958_v24  ;;  %v3535_v4 = vld [vmem:[%s4970_s8 + $0x48] sm:$0xf0] }
  0xb5   : > { %v4325_v30 = vld [vmem:[%s4968_s7 + $0x4e0] sm:$0xf]  ;;  %v5123_v39 = vor.u32 %v4478_v25, %v3517_v20  ;;  %2058 = vmatpush.bf16.msra.mxu3 %v4086_v28  ;;  %v4676_v47 = vld [vmem:[%s4968_s7 + $0x4cc] sm:$0xf0]  ;;  %v3541_v5 = vld [vmem:[%s4970_s8 + $0x38] sm:$0xf]  ;;  %v5155_v10 = vor.u32 %v4480_v3, %v3535_v4 }
  0xb6   : > { %v4453_v32 = vld [vmem:[%s4968_s7 + $0x5e0] sm:$0xf]  ;;  %6329 = vst [vmem:[#allocation4_spill] sm:$0xff] %v5116_v33  ;;  %v4326_v43 = vor.u32 %v4680_v31, %v4325_v30  ;;  %1912 = vmatmul.bf16.vlgmr.msra.gmra.mxu0 %v5116_v33  ;;  %v4708_v50 = vld [vmem:[%s4968_s7 + $0x5cc] sm:$0xf0]  ;;  %1961 = vmatmul.bf16.vlgmr.msra.gmra.mxu1 %v5121_v38 }
  0xb7   : > { %6331 = vst [vmem:[#allocation6_spill] sm:$0xff] %v5123_v39  ;;  %v4454_v44 = vor.u32 %v4712_v35, %v4453_v32  ;;  %v4309_v46 = vld [vmem:[%s4968_s7 + $0x4c0] sm:$0xf]  ;;  %2010 = vmatmul.bf16.vlgmr.msra.gmra.mxu2 %v5123_v39  ;;  %v4672_v57 = vld [vmem:[%s4968_s7 + $0x4ac] sm:$0xf0] }
  0xb8   : > { %2198 = vmatpush.bf16.msrb.mxu2 %v3818_v29  ;;  %v4437_v49 = vld [vmem:[%s4968_s7 + $0x5c0] sm:$0xf]  ;;  %2059 = vmatmul.bf16.vlgmr.msra.gmra.mxu3 %v5127_v42  ;;  %v4310_v51 = vor.u32 %v4676_v47, %v4309_v46  ;;  %v4704_v62 = vld [vmem:[%s4968_s7 + $0x5ac] sm:$0xf0]  ;;  %v4481_v7 = vld [vmem:[%s4970_s8 + $0x3c] sm:$0xf] }
  0xb9   : > { %2247 = vmatpush.bf16.msrb.mxu3 %v3946_v34  ;;  %2100 = vmatpush.bf16.msrb.mxu0 %v4326_v43  ;;  %v4293_v54 = vld [vmem:[%s4968_s7 + $0x4a0] sm:$0xf]  ;;  %v4438_v55 = vor.u32 %v4708_v50, %v4437_v49  ;;  %v3533_v1 = vld [vmem:[%s4970_s8 + $0x30] sm:$0xf]  ;;  %v3543_v8 = vld [vmem:[%s4970_s8 + $0x50] sm:$0xf0] }
  0xba   : > { %2149 = vmatpush.bf16.msrb.mxu1 %v4454_v44  ;;  %v4421_v61 = vld [vmem:[%s4968_s7 + $0x5a0] sm:$0xf]  ;;  %v4294_v63 = vor.u32 %v4672_v57, %v4293_v54  ;;  %v4484_v6 = vld [vmem:[%s4970_s8 + $0x4c] sm:$0xf0]  ;;  %v5153_v9 = vor.u32 %v4483_v2, %v3533_v1  ;;  %6334 = vst [vmem:[#allocation9_spill] sm:$0xff] %v5155_v10  ;;  %v5159_v12 = vor.u32 %v4481_v7, %v3543_v8 }
  0xbb   : > { %v4422_v0 = vor.u32 %v4704_v62, %v4421_v61  ;;  %v5157_v11 = vor.u32 %v4484_v6, %v3541_v5  ;;  %v4538_v13 = vld [vmem:[%s4968_s7 + $0x84] sm:$0xf]  ;;  %v3767_v14 = vld [vmem:[%s4968_s7 + $0x90] sm:$0xf0]  ;;  %v4277_v15 = vld [vmem:[%s4968_s7 + $0x480] sm:$0xf] }
  0xbc   : > { %2199 = vmatpush.bf16.msrb.mxu2 %v3802_v45  ;;  %6333 = vst [vmem:[#allocation8_spill] sm:$0xff] %v5153_v9  ;;  %v3770_v16 = vor.u32 %v4538_v13, %v3767_v14  ;;  %v4668_v17 = vld [vmem:[%s4968_s7 + $0x48c] sm:$0xf0]  ;;  %v4570_v18 = vld [vmem:[%s4968_s7 + $0x184] sm:$0xf] }
  0xbd   : > { %2248 = vmatpush.bf16.msrb.mxu3 %v3930_v48  ;;  %2101 = vmatpush.bf16.msrb.mxu0 %v4310_v51  ;;  %6335 = vst [vmem:[#allocation10_spill] sm:$0xff] %v5159_v12  ;;  %v3895_v19 = vld [vmem:[%s4968_s7 + $0x190] sm:$0xf0]  ;;  %v4278_v20 = vor.u32 %v4668_v17, %v4277_v15  ;;  %v4405_v22 = vld [vmem:[%s4968_s7 + $0x580] sm:$0xf] }
  0xbe   : > { %2150 = vmatpush.bf16.msrb.mxu1 %v4438_v55  ;;  %v3898_v21 = vor.u32 %v4570_v18, %v3895_v19  ;;  %v4700_v23 = vld [vmem:[%s4968_s7 + $0x58c] sm:$0xf0]  ;;  %v3557_v25 = vld [vmem:[%s4970_s8 + $0x60] sm:$0xf]  ;;  %v4489_v26 = vld [vmem:[%s4970_s8 + $0x74] sm:$0xf0] }
  0xbf   : > { %v4406_v24 = vor.u32 %v4700_v23, %v4405_v22  ;;  %v4486_v27 = vld [vmem:[%s4970_s8 + $0x64] sm:$0xf]  ;;  %v3559_v28 = vld [vmem:[%s4970_s8 + $0x78] sm:$0xf0]  ;;  %v3565_v29 = vld [vmem:[%s4970_s8 + $0x68] sm:$0xf]  ;;  %v5181_v34 = vor.u32 %v4489_v26, %v3557_v25 }
  0xc0   : > { %2200 = vmatpush.bf16.msrb.mxu2 %v3786_v56  ;;  %v4490_v30 = vld [vmem:[%s4970_s8 + $0x7c] sm:$0xf0]  ;;  %v4487_v31 = vld [vmem:[%s4970_s8 + $0x6c] sm:$0xf]  ;;  %v3567_v32 = vld [vmem:[%s4970_s8 + $0x80] sm:$0xf0]  ;;  %v5183_v35 = vor.u32 %v4486_v27, %v3559_v28 }
  0xc1   : > { %2249 = vmatpush.bf16.msrb.mxu3 %v3914_v60  ;;  %2102 = vmatpush.bf16.msrb.mxu0 %v4294_v63  ;;  %6336 = vst [vmem:[#allocation11_spill] sm:$0xff] %v5181_v34  ;;  %v5185_v36 = vor.u32 %v4490_v30, %v3565_v29  ;;  %v5187_v37 = vor.u32 %v4487_v31, %v3567_v32  ;;  %v4534_v40 = vld [vmem:[%s4968_s7 + $0x64] sm:$0xf]  ;;  %v3751_v41 = vld [vmem:[%s4968_s7 + $0x70] sm:$0xf0] }
  0xc2   : > { %2151 = vmatpush.bf16.msrb.mxu1 %v4422_v0  ;;  %6337 = vst [vmem:[#allocation12_spill] sm:$0xff] %v5183_v35  ;;  %v4261_v43 = vld [vmem:[%s4968_s7 + $0x460] sm:$0xf]  ;;  %v3754_v44 = vor.u32 %v4534_v40, %v3751_v41  ;;  %v4664_v45 = vld [vmem:[%s4968_s7 + $0x46c] sm:$0xf0] }
  0xc3   : > { %v4566_v46 = vld [vmem:[%s4968_s7 + $0x164] sm:$0xf]  ;;  %v3879_v47 = vld [vmem:[%s4968_s7 + $0x170] sm:$0xf0]  ;;  %v4262_v48 = vor.u32 %v4664_v45, %v4261_v43  ;;  %v4389_v50 = vld [vmem:[%s4968_s7 + $0x560] sm:$0xf] }
  0xc4   : > { %2201 = vmatpush.bf16.msrb.mxu2 %v3770_v16  ;;  %v3882_v49 = vor.u32 %v4566_v46, %v3879_v47  ;;  %v4696_v51 = vld [vmem:[%s4968_s7 + $0x56c] sm:$0xf0]  ;;  %v4495_v54 = vld [vmem:[%s4970_s8 + $0xa4] sm:$0xf0]  ;;  %v4492_v55 = vld [vmem:[%s4970_s8 + $0x94] sm:$0xf] }
  0xc5   : > { %2103 = vmatpush.bf16.msrb.mxu0 %v4278_v20  ;;  %2250 = vmatpush.bf16.msrb.mxu3 %v3898_v21  ;;  %v4390_v52 = vor.u32 %v4696_v51, %v4389_v50  ;;  %v3581_v53 = vld [vmem:[%s4970_s8 + $0x90] sm:$0xf]  ;;  %v3583_v56 = vld [vmem:[%s4970_s8 + $0xa8] sm:$0xf0]  ;;  %v3589_v57 = vld [vmem:[%s4970_s8 + $0x98] sm:$0xf] }
  0xc6   : > { %1917 = vmatmul.bf16.gmra.mxu0 %v5153_v9  ;;  %1966 = vmatmul.bf16.gmra.mxu1 %v5155_v10  ;;  %v4496_v58 = vld [vmem:[%s4970_s8 + $0xac] sm:$0xf0]  ;;  %v4493_v59 = vld [vmem:[%s4970_s8 + $0x9c] sm:$0xf]  ;;  %v3591_v60 = vld [vmem:[%s4970_s8 + $0xb0] sm:$0xf0]  ;;  %v5209_v61 = vor.u32 %v4495_v54, %v3581_v53  ;;  %v5211_v62 = vor.u32 %v4492_v55, %v3583_v56 }
  0xc7   : > { %2015 = vmatmul.bf16.gmra.mxu2 %v5157_v11  ;;  %2152 = vmatpush.bf16.msrb.mxu1 %v4406_v24  ;;  %v5213_v63 = vor.u32 %v4496_v58, %v3589_v57  ;;  %v5215_v0 = vor.u32 %v4493_v59, %v3591_v60  ;;  %v4530_v1 = vld [vmem:[%s4968_s7 + $0x44] sm:$0xf]  ;;  %v3735_v2 = vld [vmem:[%s4968_s7 + $0x50] sm:$0xf0]  ;;  %v4245_v3 = vld [vmem:[%s4968_s7 + $0x440] sm:$0xf] }
  0xc8   : > { %2064 = vmatmul.bf16.gmra.mxu3 %v5159_v12  ;;  %2202 = vmatpush.bf16.msrb.mxu2 %v3754_v44  ;;  %6338 = vst [vmem:[#allocation13_spill] sm:$0xff] %v5209_v61  ;;  %v3738_v4 = vor.u32 %v4530_v1, %v3735_v2  ;;  %v4660_v5 = vld [vmem:[%s4968_s7 + $0x44c] sm:$0xf0]  ;;  %v4562_v6 = vld [vmem:[%s4968_s7 + $0x144] sm:$0xf] }
  0xc9   : > { %2104 = vmatpush.bf16.msrb.mxu0 %v4262_v48  ;;  %2251 = vmatpush.bf16.msrb.mxu3 %v3882_v49  ;;  %6339 = vst [vmem:[#allocation14_spill] sm:$0xff] %v5211_v62  ;;  %v3863_v7 = vld [vmem:[%s4968_s7 + $0x150] sm:$0xf0]  ;;  %v4246_v8 = vor.u32 %v4660_v5, %v4245_v3  ;;  %v4373_v14 = vld [vmem:[%s4968_s7 + $0x540] sm:$0xf] }
  0xca   : > { %v3866_v13 = vor.u32 %v4562_v6, %v3863_v7  ;;  %v4692_v15 = vld [vmem:[%s4968_s7 + $0x54c] sm:$0xf0]  ;;  %v3605_v17 = vld [vmem:[%s4970_s8 + $0xc0] sm:$0xf]  ;;  %v4501_v18 = vld [vmem:[%s4970_s8 + $0xd4] sm:$0xf0] }
  0xcb   : > { %2153 = vmatpush.bf16.msrb.mxu1 %v4390_v52  ;;  %v4374_v16 = vor.u32 %v4692_v15, %v4373_v14  ;;  %v4498_v19 = vld [vmem:[%s4970_s8 + $0xc4] sm:$0xf]  ;;  %v3607_v20 = vld [vmem:[%s4970_s8 + $0xd8] sm:$0xf0]  ;;  %v3613_v21 = vld [vmem:[%s4970_s8 + $0xc8] sm:$0xf]  ;;  %v5237_v25 = vor.u32 %v4501_v18, %v3605_v17 }
  0xcc   : > { %2203 = vmatpush.bf16.msrb.mxu2 %v3738_v4  ;;  %v4502_v22 = vld [vmem:[%s4970_s8 + $0xdc] sm:$0xf0]  ;;  %v4499_v23 = vld [vmem:[%s4970_s8 + $0xcc] sm:$0xf]  ;;  %v3615_v24 = vld [vmem:[%s4970_s8 + $0xe0] sm:$0xf0]  ;;  %v5239_v26 = vor.u32 %v4498_v19, %v3607_v20 }
  0xcd   : > { %2105 = vmatpush.bf16.msrb.mxu0 %v4246_v8  ;;  %2252 = vmatpush.bf16.msrb.mxu3 %v3866_v13  ;;  %6340 = vst [vmem:[#allocation15_spill] sm:$0xff] %v5237_v25  ;;  %v5241_v27 = vor.u32 %v4502_v22, %v3613_v21  ;;  %v5243_v28 = vor.u32 %v4499_v23, %v3615_v24  ;;  %v4526_v29 = vld [vmem:[%s4968_s7 + $0x24] sm:$0xf]  ;;  %v3719_v30 = vld [vmem:[%s4968_s7 + $0x30] sm:$0xf0] }
  0xce   : > { %6341 = vst [vmem:[#allocation16_spill] sm:$0xff] %v5239_v26  ;;  %v4229_v31 = vld [vmem:[%s4968_s7 + $0x420] sm:$0xf]  ;;  %v3722_v32 = vor.u32 %v4526_v29, %v3719_v30  ;;  %v4656_v40 = vld [vmem:[%s4968_s7 + $0x42c] sm:$0xf0] }
  0xcf   : > { %2154 = vmatpush.bf16.msrb.mxu1 %v4374_v16  ;;  %v4558_v41 = vld [vmem:[%s4968_s7 + $0x124] sm:$0xf]  ;;  %v3847_v43 = vld [vmem:[%s4968_s7 + $0x130] sm:$0xf0]  ;;  %v4230_v44 = vor.u32 %v4656_v40, %v4229_v31  ;;  %v4357_v46 = vld [vmem:[%s4968_s7 + $0x520] sm:$0xf] }
  0xd0   : > { %v3850_v45 = vor.u32 %v4558_v41, %v3847_v43  ;;  %v4688_v47 = vld [vmem:[%s4968_s7 + $0x52c] sm:$0xf0]  ;;  %2204 = vmatpush.bf16.msrb.mxu2 %v3722_v32  ;;  %v4507_v50 = vld [vmem:[%s4970_s8 + $0x104] sm:$0xf0]  ;;  %v4504_v51 = vld [vmem:[%s4970_s8 + $0xf4] sm:$0xf] }
  0xd1   : > { %v4358_v48 = vor.u32 %v4688_v47, %v4357_v46  ;;  %2106 = vmatpush.bf16.msrb.mxu0 %v4230_v44  ;;  %v3629_v49 = vld [vmem:[%s4970_s8 + $0xf0] sm:$0xf]  ;;  %v3631_v52 = vld [vmem:[%s4970_s8 + $0x108] sm:$0xf0]  ;;  %v3637_v53 = vld [vmem:[%s4970_s8 + $0xf8] sm:$0xf] }
  0xd2   : > { %2253 = vmatpush.bf16.msrb.mxu3 %v3850_v45  ;;  %v4508_v54 = vld [vmem:[%s4970_s8 + $0x10c] sm:$0xf0]  ;;  %v4505_v55 = vld [vmem:[%s4970_s8 + $0xfc] sm:$0xf]  ;;  %v3639_v56 = vld [vmem:[%s4970_s8 + $0x110] sm:$0xf0]  ;;  %v5265_v57 = vor.u32 %v4507_v50, %v3629_v49  ;;  %v5267_v58 = vor.u32 %v4504_v51, %v3631_v52 }
  0xd3   : > { %2155 = vmatpush.bf16.msrb.mxu1 %v4358_v48  ;;  %v5269_v59 = vor.u32 %v4508_v54, %v3637_v53  ;;  %v5271_v60 = vor.u32 %v4505_v55, %v3639_v56  ;;  %v4522_v1 = vld [vmem:[%s4968_s7 + $0x4] sm:$0xf]  ;;  %v3703_v2 = vld [vmem:[%s4968_s7 + $0x10] sm:$0xf0]  ;;  %v4213_v3 = vld [vmem:[%s4968_s7 + $0x400] sm:$0xf] }
  0xd4   : > { %6342 = vst [vmem:[#allocation17_spill] sm:$0xff] %v5265_v57  ;;  %v3706_v4 = vor.u32 %v4522_v1, %v3703_v2  ;;  %v4652_v5 = vld [vmem:[%s4968_s7 + $0x40c] sm:$0xf0]  ;;  %v4554_v6 = vld [vmem:[%s4968_s7 + $0x104] sm:$0xf] }
  0xd5   : > { %6343 = vst [vmem:[#allocation18_spill] sm:$0xff] %v5267_v58  ;;  %v3831_v7 = vld [vmem:[%s4968_s7 + $0x110] sm:$0xf0]  ;;  %v4214_v8 = vor.u32 %v4652_v5, %v4213_v3  ;;  %v4341_v14 = vld [vmem:[%s4968_s7 + $0x500] sm:$0xf] }
  0xd6   : > { %1922 = vmatmul.bf16.gmra.mxu0 %v5181_v34  ;;  %1971 = vmatmul.bf16.gmra.mxu1 %v5183_v35  ;;  %v3834_v13 = vor.u32 %v4554_v6, %v3831_v7  ;;  %v4684_v15 = vld [vmem:[%s4968_s7 + $0x50c] sm:$0xf0]  ;;  %v3653_v17 = vld [vmem:[%s4970_s8 + $0x120] sm:$0xf]  ;;  %v4513_v18 = vld [vmem:[%s4970_s8 + $0x134] sm:$0xf0] }
  0xd7   : > { %2020 = vmatmul.bf16.gmra.mxu2 %v5185_v36  ;;  %v4342_v16 = vor.u32 %v4684_v15, %v4341_v14  ;;  %2107 = vmatpush.bf16.msrb.mxu0 %v4214_v8  ;;  %v4510_v19 = vld [vmem:[%s4970_s8 + $0x124] sm:$0xf]  ;;  %v3655_v20 = vld [vmem:[%s4970_s8 + $0x138] sm:$0xf0]  ;;  %v3661_v21 = vld [vmem:[%s4970_s8 + $0x128] sm:$0xf]  ;;  %v5293_v29 = vor.u32 %v4513_v18, %v3653_v17 }
  0xd8   : > { %2069 = vmatmul.bf16.gmra.mxu3 %v5187_v37  ;;  %2205 = vmatpush.bf16.msrb.mxu2 %v3706_v4  ;;  %v4514_v22 = vld [vmem:[%s4970_s8 + $0x13c] sm:$0xf0]  ;;  %v4511_v23 = vld [vmem:[%s4970_s8 + $0x12c] sm:$0xf]  ;;  %v3663_v24 = vld [vmem:[%s4970_s8 + $0x140] sm:$0xf0]  ;;  %v5295_v30 = vor.u32 %v4510_v19, %v3655_v20 }
  0xd9   : > { %2254 = vmatpush.bf16.msrb.mxu3 %v3834_v13  ;;  %2156 = vmatpush.bf16.msrb.mxu1 %v4342_v16  ;;  %6344 = vst [vmem:[#allocation19_spill] sm:$0xff] %v5293_v29  ;;  %v5297_v31 = vor.u32 %v4514_v22, %v3661_v21  ;;  %v5299_v32 = vor.u32 %v4511_v23, %v3663_v24  ;;  %v4678_v40 = vld [vmem:[%s4968_s7 + $0x4e4] sm:$0xf]  ;;  %v4327_v41 = vld [vmem:[%s4968_s7 + $0x4f0] sm:$0xf0] }
  0xda   : > { %6345 = vst [vmem:[#allocation20_spill] sm:$0xff] %v5295_v30  ;;  %v4614_v43 = vld [vmem:[%s4968_s7 + $0x2e4] sm:$0xf]  ;;  %v4330_v44 = vor.u32 %v4678_v40, %v4327_v41  ;;  %v4071_v45 = vld [vmem:[%s4968_s7 + $0x2f0] sm:$0xf0] }
  0xdb   : > { %v4710_v46 = vld [vmem:[%s4968_s7 + $0x5e4] sm:$0xf]  ;;  %v4455_v47 = vld [vmem:[%s4968_s7 + $0x5f0] sm:$0xf0]  ;;  %v4074_v48 = vor.u32 %v4614_v43, %v4071_v45  ;;  %v3677_v53 = vld [vmem:[%s4970_s8 + $0x150] sm:$0xf] }
  0xdc   : > { %v4458_v49 = vor.u32 %v4710_v46, %v4455_v47  ;;  %2394 = vmatpush.bf16.msra.mxu2 %v4330_v44  ;;  %v4646_v50 = vld [vmem:[%s4968_s7 + $0x3e4] sm:$0xf]  ;;  %v4199_v51 = vld [vmem:[%s4968_s7 + $0x3f0] sm:$0xf0]  ;;  %v4519_v54 = vld [vmem:[%s4970_s8 + $0x164] sm:$0xf0] }
  0xdd   : > { %2296 = vmatpush.bf16.msra.mxu0 %v4074_v48  ;;  %v4202_v52 = vor.u32 %v4646_v50, %v4199_v51  ;;  %v4516_v55 = vld [vmem:[%s4970_s8 + $0x154] sm:$0xf]  ;;  %v3679_v56 = vld [vmem:[%s4970_s8 + $0x168] sm:$0xf0]  ;;  %v3685_v1 = vld [vmem:[%s4970_s8 + $0x158] sm:$0xf]  ;;  %v5321_v5 = vor.u32 %v4519_v54, %v3677_v53 }
  0xde   : > { %2443 = vmatpush.bf16.msra.mxu3 %v4458_v49  ;;  %v4520_v2 = vld [vmem:[%s4970_s8 + $0x16c] sm:$0xf0]  ;;  %v4517_v3 = vld [vmem:[%s4970_s8 + $0x15c] sm:$0xf]  ;;  %v3687_v4 = vld [vmem:[%s4970_s8 + $0x170] sm:$0xf0]  ;;  %v5323_v6 = vor.u32 %v4516_v55, %v3679_v56 }
  0xdf   : > { %2345 = vmatpush.bf16.msra.mxu1 %v4202_v52  ;;  %6346 = vst [vmem:[#allocation21_spill] sm:$0xff] %v5321_v5  ;;  %v5325_v7 = vor.u32 %v4520_v2, %v3685_v1  ;;  %v5327_v8 = vor.u32 %v4517_v3, %v3687_v4  ;;  %v4674_v13 = vld [vmem:[%s4968_s7 + $0x4c4] sm:$0xf]  ;;  %v4311_v14 = vld [vmem:[%s4968_s7 + $0x4d0] sm:$0xf0] }
  0xe0   : > { %6347 = vst [vmem:[#allocation22_spill] sm:$0xff] %v5323_v6  ;;  %v4610_v15 = vld [vmem:[%s4968_s7 + $0x2c4] sm:$0xf]  ;;  %v4314_v16 = vor.u32 %v4674_v13, %v4311_v14  ;;  %v4055_v17 = vld [vmem:[%s4968_s7 + $0x2d0] sm:$0xf0] }
  0xe1   : > { %6348 = vst [vmem:[#allocation23_spill] sm:$0xff] %v5327_v8  ;;  %v4706_v18 = vld [vmem:[%s4968_s7 + $0x5c4] sm:$0xf]  ;;  %v4439_v19 = vld [vmem:[%s4968_s7 + $0x5d0] sm:$0xf0]  ;;  %v4058_v20 = vor.u32 %v4610_v15, %v4055_v17 }
  0xe2   : > { %v4442_v21 = vor.u32 %v4706_v18, %v4439_v19  ;;  %2395 = vmatpush.bf16.msra.mxu2 %v4314_v16  ;;  %v4642_v22 = vld [vmem:[%s4968_s7 + $0x3c4] sm:$0xf]  ;;  %v4183_v23 = vld [vmem:[%s4968_s7 + $0x3d0] sm:$0xf0]  ;;  %v3525_v40 = vld [vmem:[%s4970_s8 + $0x10] sm:$0xf] }
  0xe3   : > { %2297 = vmatpush.bf16.msra.mxu0 %v4058_v20  ;;  %v4186_v24 = vor.u32 %v4642_v22, %v4183_v23  ;;  %v4479_v41 = vld [vmem:[%s4970_s8 + $0x24] sm:$0xf0]  ;;  %v4476_v43 = vld [vmem:[%s4970_s8 + $0x14] sm:$0xf]  ;;  %v3527_v44 = vld [vmem:[%s4970_s8 + $0x28] sm:$0xf0] }
  0xe4   : > { %2444 = vmatpush.bf16.msra.mxu3 %v4442_v21  ;;  %v5345_v45 = vor.u32 %v4479_v41, %v3525_v40  ;;  %v5347_v47 = vor.u32 %v4476_v43, %v3527_v44  ;;  %v4670_v50 = vld [vmem:[%s4968_s7 + $0x4a4] sm:$0xf]  ;;  %v4295_v51 = vld [vmem:[%s4968_s7 + $0x4b0] sm:$0xf0]  ;;  %v3549_v21 = vld [vmem:[%s4970_s8 + $0x40] sm:$0xf] }
  0xe5   : > { %2346 = vmatpush.bf16.msra.mxu1 %v4186_v24  ;;  %v4606_v52 = vld [vmem:[%s4968_s7 + $0x2a4] sm:$0xf]  ;;  %v4298_v53 = vor.u32 %v4670_v50, %v4295_v51  ;;  %v4039_v54 = vld [vmem:[%s4968_s7 + $0x2b0] sm:$0xf0]  ;;  %v4485_v22 = vld [vmem:[%s4970_s8 + $0x54] sm:$0xf0] }
  0xe6   : > { %1927 = vmatmul.bf16.gmra.mxu0 %v5209_v61  ;;  %1976 = vmatmul.bf16.gmra.mxu1 %v5211_v62  ;;  %v4702_v55 = vld [vmem:[%s4968_s7 + $0x5a4] sm:$0xf]  ;;  %v4423_v56 = vld [vmem:[%s4968_s7 + $0x5b0] sm:$0xf0]  ;;  %v4042_v2 = vor.u32 %v4606_v52, %v4039_v54  ;;  %v3551_v24 = vld [vmem:[%s4970_s8 + $0x58] sm:$0xf0]  ;;  %v5367_v41 = vor.u32 %v4485_v22, %v3549_v21 }
  0xe7   : > { %2025 = vmatmul.bf16.gmra.mxu2 %v5213_v63  ;;  %v4426_v3 = vor.u32 %v4702_v55, %v4423_v56  ;;  %v4638_v18 = vld [vmem:[%s4968_s7 + $0x3a4] sm:$0xf]  ;;  %v4167_v19 = vld [vmem:[%s4968_s7 + $0x3b0] sm:$0xf0] }
  0xe8   : > { %2074 = vmatmul.bf16.gmra.mxu3 %v5215_v0  ;;  %2396 = vmatpush.bf16.msra.mxu2 %v4298_v53  ;;  %v4170_v20 = vor.u32 %v4638_v18, %v4167_v19  ;;  %v4482_v23 = vld [vmem:[%s4970_s8 + $0x44] sm:$0xf]  ;;  %v4279_v53 = vld [vmem:[%s4968_s7 + $0x490] sm:$0xf0] }
  0xe9   : > { %2298 = vmatpush.bf16.msra.mxu0 %v4042_v2  ;;  %2445 = vmatpush.bf16.msra.mxu3 %v4426_v3  ;;  %v4666_v52 = vld [vmem:[%s4968_s7 + $0x484] sm:$0xf]  ;;  %v4023_v56 = vld [vmem:[%s4968_s7 + $0x290] sm:$0xf0] }
  0xea   : > { %2347 = vmatpush.bf16.msra.mxu1 %v4170_v20  ;;  %v4602_v54 = vld [vmem:[%s4968_s7 + $0x284] sm:$0xf]  ;;  %v4282_v55 = vor.u32 %v4666_v52, %v4279_v53  ;;  %v4407_v2 = vld [vmem:[%s4968_s7 + $0x590] sm:$0xf0] }
  0xeb   : > { %v4634_v21 = vld [vmem:[%s4968_s7 + $0x384] sm:$0xf]  ;;  %v4151_v22 = vld [vmem:[%s4968_s7 + $0x390] sm:$0xf0] }
  0xec   : > { %2397 = vmatpush.bf16.msra.mxu2 %v4282_v55 }
  0xf6   : > { %1932 = vmatmul.bf16.gmra.mxu0 %v5237_v25  ;;  %1981 = vmatmul.bf16.gmra.mxu1 %v5239_v26 }
  0xf7   : > { %2030 = vmatmul.bf16.gmra.mxu2 %v5241_v27 }
  0xf8   : > { %2079 = vmatmul.bf16.gmra.mxu3 %v5243_v28 }
 0x106   : > { %1937 = vmatmul.bf16.gmra.mxu0 %v5265_v57  ;;  %1986 = vmatmul.bf16.gmra.mxu1 %v5267_v58 }
 0x107   : > { %2035 = vmatmul.bf16.gmra.mxu2 %v5269_v59 }
 0x108   : > { %2084 = vmatmul.bf16.gmra.mxu3 %v5271_v60 }
 0x116   : > { %1942 = vmatmul.bf16.gmra.mxu0 %v5293_v29  ;;  %1991 = vmatmul.bf16.gmra.mxu1 %v5295_v30 }
 0x117   : > { %2040 = vmatmul.bf16.gmra.mxu2 %v5297_v31 }
 0x118   : > { %2089 = vmatmul.bf16.gmra.mxu3 %v5299_v32 }
 0x126   : > { %1947 = vmatmul.bf16.gmra.mxu0 %v5321_v5  ;;  %1996 = vmatmul.bf16.gmra.mxu1 %v5323_v6 }
 0x127   : > { %2045 = vmatmul.bf16.gmra.mxu2 %v5325_v7 }
 0x128   : > { %2094 = vmatmul.bf16.gmra.mxu3 %v5327_v8 }
 0x133   : > { %v1913_v46 = vpop.f32.mrf.mxu0  ;;  %v1962_v48 = vpop.f32.mrf.mxu1 }
 0x134   : > { %v1963_v49 = vadd.f32 %v1962_v48, %v1913_v46  ;;  %v5369_v48 = vor.u32 %v4482_v23, %v3551_v24  ;;  %v4154_v23 = vor.u32 %v4634_v21, %v4151_v22  ;;  %v3573_v24 = vld [vmem:[%s4970_s8 + $0x70] sm:$0xf] }
 0x136   : > { %2108 = vmatmul.bf16.vlgmr.msrb.gmra.mxu0 %v5345_v45  ;;  %2157 = vmatmul.bf16.vlgmr.msrb.gmra.mxu1 %v5347_v47 }
 0x137   : > { %2206 = vmatmul.bf16.vlgmr.msrb.gmra.mxu2 %v5116_v33  ;;  %2348 = vmatpush.bf16.msra.mxu1 %v4154_v23  ;;  %v3695_v33 = vld [vmem:[%s4970_s8 + $0x178] sm:$0xf0] }
 0x138   : > { %2255 = vmatmul.bf16.vlgmr.msrb.gmra.mxu3 %v5121_v38  ;;  %v4512_v38 = vld [vmem:[%s4970_s8 + $0x134] sm:$0xf] }
 0x13a   : > { %v2011_v1 = vpop.f32.mrf.mxu2 }
 0x13b   : > { %v2012_v4 = vadd.f32 %v2011_v1, %v1963_v49  ;;  %v2060_v13 = vpop.f32.mrf.mxu3  ;;  %v1915_v14 = vpop.f32.mrf.mxu0  ;;  %v4698_v1 = vld [vmem:[%s4968_s7 + $0x584] sm:$0xf] }
 0x13c   : > { %v1964_v15 = vpop.f32.mrf.mxu1 }
 0x13d   : > { %v5359_v16 = vadd.f32 %v2060_v13, %v2012_v4  ;;  %v1965_v17 = vadd.f32 %v1964_v15, %v1915_v14  ;;  %v4026_v4 = vor.u32 %v4602_v54, %v4023_v56  ;;  %v4410_v13 = vor.u32 %v4698_v1, %v4407_v2  ;;  %v4662_v2 = vld [vmem:[%s4968_s7 + $0x464] sm:$0xf] }
 0x13f   : > { %2299 = vmatpush.bf16.msra.mxu0 %v4026_v4  ;;  %2446 = vmatpush.bf16.msra.mxu3 %v4410_v13  ;;  %v4598_v4 = vld [vmem:[%s4968_s7 + $0x264] sm:$0xf] }
 0x142   : > { %v2013_v40 = vpop.f32.mrf.mxu2 }
 0x143   : > { %v2014_v43 = vadd.f32 %v2013_v40, %v1965_v17  ;;  %v2062_v44 = vpop.f32.mrf.mxu3  ;;  %v1918_v46 = vpop.f32.mrf.mxu0  ;;  %v4491_v40 = vld [vmem:[%s4970_s8 + $0x84] sm:$0xf0] }
 0x144   : > { %v1967_v49 = vpop.f32.mrf.mxu1 }
 0x145   : > { %v5371_v50 = vadd.f32 %v2062_v44, %v2014_v43  ;;  %v1968_v51 = vadd.f32 %v1967_v49, %v1918_v46  ;;  %v4488_v43 = vld [vmem:[%s4970_s8 + $0x74] sm:$0xf]  ;;  %v3575_v44 = vld [vmem:[%s4970_s8 + $0x88] sm:$0xf0]  ;;  %v5391_v49 = vor.u32 %v4491_v40, %v3573_v24 }
 0x146   : > { %2113 = vmatmul.bf16.gmra.mxu0 %v5367_v41  ;;  %2162 = vmatmul.bf16.gmra.mxu1 %v5369_v48  ;;  %v5393_v54 = vor.u32 %v4488_v43, %v3575_v44 }
 0x147   : > { %2211 = vmatmul.bf16.gmra.mxu2 %v5153_v9  ;;  %v4515_v9 = vld [vmem:[%s4970_s8 + $0x144] sm:$0xf0] }
 0x148   : > { %2260 = vmatmul.bf16.gmra.mxu3 %v5155_v10  ;;  %v4506_v10 = vld [vmem:[%s4970_s8 + $0x104] sm:$0xf] }
 0x14a   : > { %v2016_v3 = vpop.f32.mrf.mxu2 }
 0x14b   : > { %v2017_v14 = vadd.f32 %v2016_v3, %v1968_v51  ;;  %v2065_v15 = vpop.f32.mrf.mxu3  ;;  %v1920_v17 = vpop.f32.mrf.mxu0  ;;  %v4263_v3 = vld [vmem:[%s4968_s7 + $0x470] sm:$0xf0] }
 0x14c   : > { %v1969_v18 = vpop.f32.mrf.mxu1  ;;  %v4266_v13 = vor.u32 %v4662_v2, %v4263_v3  ;;  %v4494_v2 = vld [vmem:[%s4970_s8 + $0xa4] sm:$0xf]  ;;  %v3599_v3 = vld [vmem:[%s4970_s8 + $0xb8] sm:$0xf0] }
 0x14d   : > { %v5383_v19 = vadd.f32 %v2065_v15, %v2017_v14  ;;  %v1970_v20 = vadd.f32 %v1969_v18, %v1920_v17  ;;  %v4007_v14 = vld [vmem:[%s4968_s7 + $0x270] sm:$0xf0]  ;;  %v4694_v15 = vld [vmem:[%s4968_s7 + $0x564] sm:$0xf] }
 0x14e   : > { %v4391_v17 = vld [vmem:[%s4968_s7 + $0x570] sm:$0xf0]  ;;  %2398 = vmatpush.bf16.msra.mxu2 %v4266_v13 }
 0x14f   : > { %v4394_v21 = vor.u32 %v4694_v15, %v4391_v17  ;;  %v5417_v17 = vor.u32 %v4494_v2, %v3599_v3 }
 0x151   : > { %2447 = vmatpush.bf16.msra.mxu3 %v4394_v21 }
 0x152   : > { %v2018_v46 = vpop.f32.mrf.mxu2 }
 0x153   : > { %v2019_v51 = vadd.f32 %v2018_v46, %v1970_v20  ;;  %v2067_v52 = vpop.f32.mrf.mxu3  ;;  %v1923_v53 = vpop.f32.mrf.mxu0  ;;  %v4010_v20 = vor.u32 %v4598_v4, %v4007_v14  ;;  %v4630_v46 = vld [vmem:[%s4968_s7 + $0x364] sm:$0xf] }
 0x154   : > { %v1972_v55 = vpop.f32.mrf.mxu1 }
 0x155   : > { %v5395_v56 = vadd.f32 %v2067_v52, %v2019_v51  ;;  %v1973_v1 = vadd.f32 %v1972_v55, %v1923_v53  ;;  %2300 = vmatpush.bf16.msra.mxu0 %v4010_v20  ;;  %v4135_v51 = vld [vmem:[%s4968_s7 + $0x370] sm:$0xf0]  ;;  %v3597_v53 = vld [vmem:[%s4970_s8 + $0xa0] sm:$0xf]  ;;  %v4497_v55 = vld [vmem:[%s4970_s8 + $0xb4] sm:$0xf0] }
 0x156   : > { %2118 = vmatmul.bf16.gmra.mxu0 %v5391_v49  ;;  %2167 = vmatmul.bf16.gmra.mxu1 %v5393_v54  ;;  %v4138_v52 = vor.u32 %v4630_v46, %v4135_v51  ;;  %v5415_v4 = vor.u32 %v4497_v55, %v3597_v53  ;;  %v4690_v46 = vld [vmem:[%s4968_s7 + $0x544] sm:$0xf]  ;;  %v4375_v51 = vld [vmem:[%s4968_s7 + $0x550] sm:$0xf0] }
 0x157   : > { %2216 = vmatmul.bf16.gmra.mxu2 %v5181_v34  ;;  %v4378_v55 = vor.u32 %v4690_v46, %v4375_v51  ;;  %v4509_v34 = vld [vmem:[%s4970_s8 + $0x114] sm:$0xf0] }
 0x158   : > { %2265 = vmatmul.bf16.gmra.mxu3 %v5183_v35  ;;  %2349 = vmatpush.bf16.msra.mxu1 %v4138_v52  ;;  %v4500_v35 = vld [vmem:[%s4970_s8 + $0xd4] sm:$0xf] }
 0x159   : > { %2448 = vmatpush.bf16.msra.mxu3 %v4378_v55 }
 0x15a   : > { %v2021_v18 = vpop.f32.mrf.mxu2 }
 0x15b   : > { %v2022_v22 = vadd.f32 %v2021_v18, %v1973_v1  ;;  %v2070_v23 = vpop.f32.mrf.mxu3  ;;  %v1925_v24 = vpop.f32.mrf.mxu0 }
 0x15c   : > { %v1974_v40 = vpop.f32.mrf.mxu1 }
 0x15d   : > { %v5407_v43 = vadd.f32 %v2070_v23, %v2022_v22  ;;  %v1975_v44 = vadd.f32 %v1974_v40, %v1925_v24  ;;  %v4658_v22 = vld [vmem:[%s4968_s7 + $0x444] sm:$0xf]  ;;  %v4247_v23 = vld [vmem:[%s4968_s7 + $0x450] sm:$0xf0] }
 0x15e   : > { %v4594_v24 = vld [vmem:[%s4968_s7 + $0x244] sm:$0xf]  ;;  %v4250_v40 = vor.u32 %v4658_v22, %v4247_v23  ;;  %v4119_v22 = vld [vmem:[%s4968_s7 + $0x350] sm:$0xf0] }
 0x160   : > { %2399 = vmatpush.bf16.msra.mxu2 %v4250_v40 }
 0x162   : > { %v2023_v1 = vpop.f32.mrf.mxu2 }
 0x163   : > { %v2024_v13 = vadd.f32 %v2023_v1, %v1975_v44  ;;  %v2072_v14 = vpop.f32.mrf.mxu3  ;;  %v1928_v15 = vpop.f32.mrf.mxu0  ;;  %v3991_v44 = vld [vmem:[%s4968_s7 + $0x250] sm:$0xf0] }
 0x164   : > { %v1977_v18 = vpop.f32.mrf.mxu1  ;;  %v3994_v53 = vor.u32 %v4594_v24, %v3991_v44  ;;  %v3623_v24 = vld [vmem:[%s4970_s8 + $0xe8] sm:$0xf0] }
 0x165   : > { %v5419_v20 = vadd.f32 %v2072_v14, %v2024_v13  ;;  %v1978_v21 = vadd.f32 %v1977_v18, %v1928_v15  ;;  %v4626_v18 = vld [vmem:[%s4968_s7 + $0x344] sm:$0xf] }
 0x166   : > { %2123 = vmatmul.bf16.gmra.mxu0 %v5415_v4  ;;  %2172 = vmatmul.bf16.gmra.mxu1 %v5417_v17  ;;  %v4122_v23 = vor.u32 %v4626_v18, %v4119_v22 }
 0x167   : > { %2221 = vmatmul.bf16.gmra.mxu2 %v5209_v61  ;;  %2301 = vmatpush.bf16.msra.mxu0 %v3994_v53  ;;  %v4503_v61 = vld [vmem:[%s4970_s8 + $0xe4] sm:$0xf0] }
 0x168   : > { %2270 = vmatmul.bf16.gmra.mxu3 %v5211_v62  ;;  %v3621_v62 = vld [vmem:[%s4970_s8 + $0xd0] sm:$0xf]  ;;  %2350 = vmatpush.bf16.msra.mxu1 %v4122_v23 }
 0x169   : > { %v5439_v44 = vor.u32 %v4503_v61, %v3621_v62  ;;  %v4654_v61 = vld [vmem:[%s4968_s7 + $0x424] sm:$0xf]  ;;  %v4231_v62 = vld [vmem:[%s4968_s7 + $0x430] sm:$0xf0] }
 0x16a   : > { %v2026_v52 = vpop.f32.mrf.mxu2 }
 0x16b   : > { %v2027_v2 = vadd.f32 %v2026_v52, %v1978_v21  ;;  %v2075_v3 = vpop.f32.mrf.mxu3  ;;  %v1930_v1 = vpop.f32.mrf.mxu0  ;;  %v5441_v52 = vor.u32 %v4500_v35, %v3623_v24  ;;  %v4686_v35 = vld [vmem:[%s4968_s7 + $0x524] sm:$0xf] }
 0x16c   : > { %v1979_v13 = vpop.f32.mrf.mxu1 }
 0x16d   : > { %v5431_v14 = vadd.f32 %v2075_v3, %v2027_v2  ;;  %v1980_v15 = vadd.f32 %v1979_v13, %v1930_v1  ;;  %v4590_v3 = vld [vmem:[%s4968_s7 + $0x224] sm:$0xf]  ;;  %v4234_v1 = vor.u32 %v4654_v61, %v4231_v62  ;;  %v3975_v13 = vld [vmem:[%s4968_s7 + $0x230] sm:$0xf0] }
 0x16e   : > { %v3978_v22 = vor.u32 %v4590_v3, %v3975_v13  ;;  %v4622_v61 = vld [vmem:[%s4968_s7 + $0x324] sm:$0xf]  ;;  %v4103_v62 = vld [vmem:[%s4968_s7 + $0x330] sm:$0xf0]  ;;  %v3647_v3 = vld [vmem:[%s4970_s8 + $0x118] sm:$0xf0] }
 0x16f   : > { %2400 = vmatpush.bf16.msra.mxu2 %v4234_v1 }
 0x170   : > { %2302 = vmatpush.bf16.msra.mxu0 %v3978_v22 }
 0x172   : > { %v2028_v21 = vpop.f32.mrf.mxu2 }
 0x173   : > { %v2029_v40 = vadd.f32 %v2028_v21, %v1980_v15  ;;  %v2077_v46 = vpop.f32.mrf.mxu3  ;;  %v1933_v51 = vpop.f32.mrf.mxu0  ;;  %v4359_v15 = vld [vmem:[%s4968_s7 + $0x530] sm:$0xf0] }
 0x174   : > { %v1982_v53 = vpop.f32.mrf.mxu1  ;;  %v4362_v23 = vor.u32 %v4686_v35, %v4359_v15 }
 0x175   : > { %v5443_v55 = vadd.f32 %v2077_v46, %v2029_v40  ;;  %v1983_v2 = vadd.f32 %v1982_v53, %v1933_v51 }
 0x176   : > { %2128 = vmatmul.bf16.gmra.mxu0 %v5439_v44  ;;  %2177 = vmatmul.bf16.gmra.mxu1 %v5441_v52 }
 0x177   : > { %2226 = vmatmul.bf16.gmra.mxu2 %v5237_v25  ;;  %2449 = vmatpush.bf16.msra.mxu3 %v4362_v23  ;;  %v3645_v25 = vld [vmem:[%s4970_s8 + $0x100] sm:$0xf] }
 0x178   : > { %2275 = vmatmul.bf16.gmra.mxu3 %v5239_v26  ;;  %v4106_v26 = vor.u32 %v4622_v61, %v4103_v62  ;;  %v5463_v13 = vor.u32 %v4509_v34, %v3645_v25  ;;  %v4650_v34 = vld [vmem:[%s4968_s7 + $0x404] sm:$0xf]  ;;  %v4215_v25 = vld [vmem:[%s4968_s7 + $0x410] sm:$0xf0] }
 0x17a   : > { %v2031_v18 = vpop.f32.mrf.mxu2  ;;  %2351 = vmatpush.bf16.msra.mxu1 %v4106_v26  ;;  %v4586_v26 = vld [vmem:[%s4968_s7 + $0x204] sm:$0xf] }
 0x17b   : > { %v2032_v24 = vadd.f32 %v2031_v18, %v1983_v2  ;;  %v2080_v21 = vpop.f32.mrf.mxu3  ;;  %v1935_v40 = vpop.f32.mrf.mxu0  ;;  %v5465_v18 = vor.u32 %v4506_v10, %v3647_v3  ;;  %v4682_v10 = vld [vmem:[%s4968_s7 + $0x504] sm:$0xf] }
 0x17c   : > { %v1984_v46 = vpop.f32.mrf.mxu1 }
 0x17d   : > { %v5455_v51 = vadd.f32 %v2080_v21, %v2032_v24  ;;  %v1985_v53 = vadd.f32 %v1984_v46, %v1935_v40  ;;  %v4218_v21 = vor.u32 %v4650_v34, %v4215_v25  ;;  %v3959_v40 = vld [vmem:[%s4968_s7 + $0x210] sm:$0xf0]  ;;  %v4618_v34 = vld [vmem:[%s4968_s7 + $0x304] sm:$0xf] }
 0x17e   : > { %v4343_v46 = vld [vmem:[%s4968_s7 + $0x510] sm:$0xf0]  ;;  %v3962_v61 = vor.u32 %v4586_v26, %v3959_v40  ;;  %v3671_v26 = vld [vmem:[%s4970_s8 + $0x148] sm:$0xf0] }
 0x17f   : > { %v4346_v62 = vor.u32 %v4682_v10, %v4343_v46  ;;  %2401 = vmatpush.bf16.msra.mxu2 %v4218_v21  ;;  %v4087_v25 = vld [vmem:[%s4968_s7 + $0x310] sm:$0xf0] }
 0x180   : > { %2303 = vmatpush.bf16.msra.mxu0 %v3962_v61 }
 0x181   : > { %2450 = vmatpush.bf16.msra.mxu3 %v4346_v62 }
 0x182   : > { %v2033_v2 = vpop.f32.mrf.mxu2 }
 0x183   : > { %v2034_v1 = vadd.f32 %v2033_v2, %v1985_v53  ;;  %v2082_v35 = vpop.f32.mrf.mxu3  ;;  %v1938_v15 = vpop.f32.mrf.mxu0 }
 0x184   : > { %v1987_v22 = vpop.f32.mrf.mxu1 }
 0x185   : > { %v5467_v23 = vadd.f32 %v2082_v35, %v2034_v1  ;;  %v1988_v24 = vadd.f32 %v1987_v22, %v1938_v15 }
 0x186   : > { %2133 = vmatmul.bf16.gmra.mxu0 %v5463_v13  ;;  %2182 = vmatmul.bf16.gmra.mxu1 %v5465_v18 }
 0x187   : > { %2231 = vmatmul.bf16.gmra.mxu2 %v5265_v57  ;;  %v3669_v57 = vld [vmem:[%s4970_s8 + $0x130] sm:$0xf] }
 0x188   : > { %2280 = vmatmul.bf16.gmra.mxu3 %v5267_v58  ;;  %v4090_v58 = vor.u32 %v4618_v34, %v4087_v25  ;;  %v5487_v40 = vor.u32 %v4515_v9, %v3669_v57  ;;  %v4617_v57 = vld [vmem:[%s4968_s7 + $0x2f4] sm:$0xf0]  ;;  %v4205_v25 = vld [vmem:[%s4968_s7 + $0x3e8] sm:$0xf] }
 0x189   : > { %v4553_v34 = vld [vmem:[%s4968_s7 + $0xf4] sm:$0xf0] }
 0x18a   : > { %v2036_v53 = vpop.f32.mrf.mxu2  ;;  %2352 = vmatpush.bf16.msra.mxu1 %v4090_v58  ;;  %6349 = vst [vmem:[#allocation24_spill] sm:$0xff] %v5487_v40  ;;  %v3821_v58 = vld [vmem:[%s4968_s7 + $0xe8] sm:$0xf] }
 0x18b   : > { %v2037_v3 = vadd.f32 %v2036_v53, %v1988_v24  ;;  %v2085_v2 = vpop.f32.mrf.mxu3  ;;  %v1940_v1 = vpop.f32.mrf.mxu0  ;;  %v5489_v53 = vor.u32 %v4512_v38, %v3671_v26  ;;  %v4077_v38 = vld [vmem:[%s4968_s7 + $0x2e8] sm:$0xf]  ;;  %v4649_v26 = vld [vmem:[%s4968_s7 + $0x3f4] sm:$0xf0] }
 0x18c   : > { %v1989_v35 = vpop.f32.mrf.mxu1 }
 0x18d   : > { %v5479_v15 = vadd.f32 %v2085_v2, %v2037_v3  ;;  %v1990_v22 = vadd.f32 %v1989_v35, %v1940_v1  ;;  %6350 = vst [vmem:[#allocation25_spill] sm:$0xff] %v5489_v53 }
 0x192   : > { %v2038_v24 = vpop.f32.mrf.mxu2 }
 0x193   : > { %v2039_v21 = vadd.f32 %v2038_v24, %v1990_v22  ;;  %v2087_v10 = vpop.f32.mrf.mxu3  ;;  %v1943_v46 = vpop.f32.mrf.mxu0  ;;  %v4078_v22 = vor.u32 %v4617_v57, %v4077_v38  ;;  %v4521_v38 = vld [vmem:[%s4970_s8 + $0x174] sm:$0xf0]  ;;  %v4518_v57 = vld [vmem:[%s4970_s8 + $0x164] sm:$0xf] }
 0x194   : > { %v1992_v61 = vpop.f32.mrf.mxu1 }
 0x195   : > { %v5491_v62 = vadd.f32 %v2087_v10, %v2039_v21  ;;  %v1993_v3 = vadd.f32 %v1992_v61, %v1943_v46  ;;  %v3822_v21 = vor.u32 %v4553_v34, %v3821_v58  ;;  %v4206_v10 = vor.u32 %v4649_v26, %v4205_v25  ;;  %v3949_v46 = vld [vmem:[%s4968_s7 + $0x1e8] sm:$0xf]  ;;  %v4585_v61 = vld [vmem:[%s4968_s7 + $0x1f4] sm:$0xf0]  ;;  %2590 = vmatpush.bf16.msrb.mxu2 %v4078_v22 }
 0x196   : > { %2138 = vmatmul.bf16.gmra.mxu0 %v5487_v40  ;;  %2187 = vmatmul.bf16.gmra.mxu1 %v5489_v53 }
 0x197   : > { %2236 = vmatmul.bf16.gmra.mxu2 %v5293_v29  ;;  %2492 = vmatpush.bf16.msrb.mxu0 %v3822_v21 }
 0x198   : > { %2285 = vmatmul.bf16.gmra.mxu3 %v5295_v30 }
 0x199   : > { %2639 = vmatpush.bf16.msrb.mxu3 %v4206_v10 }
 0x19a   : > { %v2041_v9 = vpop.f32.mrf.mxu2 }
 0x19b   : > { %v2042_v2 = vadd.f32 %v2041_v9, %v1993_v3  ;;  %v2090_v1 = vpop.f32.mrf.mxu3  ;;  %v1945_v35 = vpop.f32.mrf.mxu0  ;;  %v3950_v3 = vor.u32 %v4585_v61, %v3949_v46  ;;  %v3693_v9 = vld [vmem:[%s4970_s8 + $0x160] sm:$0xf] }
 0x19c   : > { %v1994_v24 = vpop.f32.mrf.mxu1  ;;  %v5511_v58 = vor.u32 %v4521_v38, %v3693_v9  ;;  %v4189_v9 = vld [vmem:[%s4968_s7 + $0x3c8] sm:$0xf]  ;;  %v4645_v38 = vld [vmem:[%s4968_s7 + $0x3d4] sm:$0xf0] }
 0x19d   : > { %v5505_v30 = vadd.f32 %v2090_v1, %v2042_v2  ;;  %v1995_v29 = vadd.f32 %v1994_v24, %v1945_v35  ;;  %2541 = vmatpush.bf16.msrb.mxu1 %v3950_v3  ;;  %v5513_v1 = vor.u32 %v4518_v57, %v3695_v33  ;;  %v4061_v33 = vld [vmem:[%s4968_s7 + $0x2c8] sm:$0xf]  ;;  %v4549_v3 = vld [vmem:[%s4968_s7 + $0xd4] sm:$0xf0] }
 0x19e   : > { %6351 = vst [vmem:[#allocation26_spill] sm:$0xff] %v5511_v58  ;;  %v3805_v24 = vld [vmem:[%s4968_s7 + $0xc8] sm:$0xf] }
 0x19f   : > { %6352 = vst [vmem:[#allocation27_spill] sm:$0xff] %v5513_v1 }
 0x1a2   : > { %v2043_v8 = vpop.f32.mrf.mxu2 }
 0x1a3   : > { %v2044_v34 = vadd.f32 %v2043_v8, %v1995_v29  ;;  %v2092_v25 = vpop.f32.mrf.mxu3  ;;  %v1948_v2 = vpop.f32.mrf.mxu0  ;;  %v4613_v8 = vld [vmem:[%s4968_s7 + $0x2d4] sm:$0xf0] }
 0x1a4   : > { %v1997_v35 = vpop.f32.mrf.mxu1  ;;  %v4062_v61 = vor.u32 %v4613_v8, %v4061_v33 }
 0x1a5   : > { %v5515_v22 = vadd.f32 %v2092_v25, %v2044_v34  ;;  %v1998_v26 = vadd.f32 %v1997_v35, %v1948_v2  ;;  %v3806_v34 = vor.u32 %v4549_v3, %v3805_v24  ;;  %v4190_v25 = vor.u32 %v4645_v38, %v4189_v9  ;;  %v3933_v2 = vld [vmem:[%s4968_s7 + $0x1c8] sm:$0xf]  ;;  %v4581_v35 = vld [vmem:[%s4968_s7 + $0x1d4] sm:$0xf0] }
 0x1a6   : > { %2143 = vmatmul.bf16.gmra.mxu0 %v5511_v58  ;;  %2192 = vmatmul.bf16.gmra.mxu1 %v5513_v1  ;;  %v3934_v1 = vor.u32 %v4581_v35, %v3933_v2 }
 0x1a7   : > { %2241 = vmatmul.bf16.gmra.mxu2 %v5321_v5  ;;  %2493 = vmatpush.bf16.msrb.mxu0 %v3806_v34  ;;  %v4173_v34 = vld [vmem:[%s4968_s7 + $0x3a8] sm:$0xf] }
 0x1a8   : > { %2290 = vmatmul.bf16.gmra.mxu3 %v5323_v6  ;;  %2591 = vmatpush.bf16.msrb.mxu2 %v4062_v61 }
 0x1a9   : > { %2640 = vmatpush.bf16.msrb.mxu3 %v4190_v25  ;;  %2542 = vmatpush.bf16.msrb.mxu1 %v3934_v1  ;;  %v4045_v1 = vld [vmem:[%s4968_s7 + $0x2a8] sm:$0xf] }
 0x1aa   : > { %v2046_v29 = vpop.f32.mrf.mxu2 }
 0x1ab   : > { %v2047_v21 = vadd.f32 %v2046_v29, %v1998_v26  ;;  %v2095_v10 = vpop.f32.mrf.mxu3  ;;  %v1950_v46 = vpop.f32.mrf.mxu0 }
 0x1ac   : > { %v1999_v57 = vpop.f32.mrf.mxu1 }
 0x1ad   : > { %v5529_v5 = vadd.f32 %v2095_v10, %v2047_v21  ;;  %v2000_v6 = vadd.f32 %v1999_v57, %v1950_v46  ;;  %v400_v21 = vld [vmem:[#allocation2 + $0xb0] sm:$0xff]  ;;  %v4609_v46 = vld [vmem:[%s4968_s7 + $0x2b4] sm:$0xf0] }
 0x1ae   : > { %v4046_v38 = vor.u32 %v4609_v46, %v4045_v1  ;;  %v4545_v57 = vld [vmem:[%s4968_s7 + $0xb4] sm:$0xf0] }
 0x1b0   : > { %2592 = vmatpush.bf16.msrb.mxu2 %v4046_v38  ;;  %v408_v38 = vld [vmem:[#allocation2 + $0x180] sm:$0xff] }
 0x1b2   : > { %v2048_v26 = vpop.f32.mrf.mxu2 }
 0x1b3   : > { %v2049_v29 = vadd.f32 %v2048_v26, %v2000_v6  ;;  %v2097_v33 = vpop.f32.mrf.mxu3  ;;  %v2109_v8 = vpop.f32.mrf.mxu0 }
 0x1b4   : > { %v2110_v58 = vadd.f32 %v2109_v8, %v5359_v16  ;;  %v2158_v24 = vpop.f32.mrf.mxu1  ;;  %v4577_v8 = vld [vmem:[%s4968_s7 + $0x1b4] sm:$0xf0] }
 0x1b5   : > { %v5532_v3 = vadd.f32 %v2097_v33, %v2049_v29  ;;  %v4641_v29 = vld [vmem:[%s4968_s7 + $0x3b4] sm:$0xf0]  ;;  %v3917_v33 = vld [vmem:[%s4968_s7 + $0x1a8] sm:$0xf] }
 0x1b6   : > { %v2159_v10 = vadd.f32 %v2158_v24, %v2110_v58  ;;  %2304 = vmatmul.bf16.vlgmr.msra.gmra.mxu0 %v5123_v39  ;;  %2353 = vmatmul.bf16.vlgmr.msra.gmra.mxu1 %v5127_v42  ;;  %v3789_v58 = vld [vmem:[%s4968_s7 + $0xa8] sm:$0xf]  ;;  %v404_v24 = vld [vmem:[#allocation2 + $0x50] sm:$0xff] }
 0x1b7   : > { %2402 = vmatmul.bf16.vlgmr.msra.gmra.mxu2 %v5345_v45  ;;  %v3790_v26 = vor.u32 %v4545_v57, %v3789_v58 }
 0x1b8   : > { %v3080_v6 = vadd.f32 %v2159_v10, %v400_v21  ;;  %2451 = vmatmul.bf16.vlgmr.msra.gmra.mxu3 %v5347_v47  ;;  %v4174_v21 = vor.u32 %v4641_v29, %v4173_v34  ;;  %v3918_v10 = vor.u32 %v4577_v8, %v3917_v33  ;;  %v3773_v8 = vld [vmem:[%s4968_s7 + $0x88] sm:$0xf] }
 0x1b9   : > { %2494 = vmatpush.bf16.msrb.mxu0 %v3790_v26 }
 0x1ba   : > { %3144 = vst [vmem:[#allocation2 + $0xb0] sm:$0xff] %v3080_v6  ;;  %v2207_v16 = vpop.f32.mrf.mxu2  ;;  %2641 = vmatpush.bf16.msrb.mxu3 %v4174_v21  ;;  %2543 = vmatpush.bf16.msrb.mxu1 %v3918_v10  ;;  %v4157_v21 = vld [vmem:[%s4968_s7 + $0x388] sm:$0xf] }
 0x1bb   : > { %v2256_v61 = vpop.f32.mrf.mxu3  ;;  %v2111_v9 = vpop.f32.mrf.mxu0 }
 0x1bc   : > { %v5543_v25 = vadd.f32 %v2256_v61, %v2207_v16  ;;  %v2112_v2 = vadd.f32 %v2111_v9, %v5371_v50  ;;  %v2160_v35 = vpop.f32.mrf.mxu1 }
 0x1be   : > { %v2161_v6 = vadd.f32 %v2160_v35, %v2112_v2  ;;  %v4029_v2 = vld [vmem:[%s4968_s7 + $0x288] sm:$0xf]  ;;  %v4605_v35 = vld [vmem:[%s4968_s7 + $0x294] sm:$0xf0] }
 0x1bf   : > { %v4030_v33 = vor.u32 %v4605_v35, %v4029_v2 }
 0x1c0   : > { %v3084_v1 = vadd.f32 %v2161_v6, %v404_v24  ;;  %v4541_v24 = vld [vmem:[%s4968_s7 + $0x94] sm:$0xf0] }
 0x1c1   : > { %2593 = vmatpush.bf16.msrb.mxu2 %v4030_v33  ;;  %v416_v33 = vld [vmem:[#allocation2 + $0xe0] sm:$0xff] }
 0x1c2   : > { %3148 = vst [vmem:[#allocation2 + $0x50] sm:$0xff] %v3084_v1  ;;  %v2209_v16 = vpop.f32.mrf.mxu2 }
 0x1c3   : > { %v2258_v46 = vpop.f32.mrf.mxu3  ;;  %v2114_v50 = vpop.f32.mrf.mxu0 }
 0x1c4   : > { %v5549_v61 = vadd.f32 %v2258_v46, %v2209_v16  ;;  %v2115_v9 = vadd.f32 %v2114_v50, %v5383_v19  ;;  %v2163_v58 = vpop.f32.mrf.mxu1  ;;  %v3774_v16 = vor.u32 %v4541_v24, %v3773_v8  ;;  %v4637_v46 = vld [vmem:[%s4968_s7 + $0x394] sm:$0xf0]  ;;  %v3901_v50 = vld [vmem:[%s4968_s7 + $0x188] sm:$0xf] }
 0x1c6   : > { %v2164_v57 = vadd.f32 %v2163_v58, %v2115_v9  ;;  %2309 = vmatmul.bf16.gmra.mxu0 %v5157_v11  ;;  %2358 = vmatmul.bf16.gmra.mxu1 %v5159_v12  ;;  %v4573_v9 = vld [vmem:[%s4968_s7 + $0x194] sm:$0xf0]  ;;  %v412_v58 = vld [vmem:[#allocation2 + $0x120] sm:$0xff] }
 0x1c7   : > { %2407 = vmatmul.bf16.gmra.mxu2 %v5367_v41  ;;  %2495 = vmatpush.bf16.msrb.mxu0 %v3774_v16 }
 0x1c8   : > { %v3088_v34 = vadd.f32 %v2164_v57, %v408_v38  ;;  %2456 = vmatmul.bf16.gmra.mxu3 %v5369_v48  ;;  %v4158_v38 = vor.u32 %v4637_v46, %v4157_v21  ;;  %v3902_v57 = vor.u32 %v4573_v9, %v3901_v50  ;;  %v3757_v9 = vld [vmem:[%s4968_s7 + $0x68] sm:$0xf] }
 0x1ca   : > { %3152 = vst [vmem:[#allocation2 + $0x180] sm:$0xff] %v3088_v34  ;;  %v2212_v19 = vpop.f32.mrf.mxu2  ;;  %2642 = vmatpush.bf16.msrb.mxu3 %v4158_v38  ;;  %2544 = vmatpush.bf16.msrb.mxu1 %v3902_v57  ;;  %v4141_v38 = vld [vmem:[%s4968_s7 + $0x368] sm:$0xf] }
 0x1cb   : > { %v2261_v26 = vpop.f32.mrf.mxu3  ;;  %v2116_v29 = vpop.f32.mrf.mxu0 }
 0x1cc   : > { %v5561_v10 = vadd.f32 %v2261_v26, %v2212_v19  ;;  %v2117_v6 = vadd.f32 %v2116_v29, %v5395_v56  ;;  %v2165_v1 = vpop.f32.mrf.mxu1 }
 0x1ce   : > { %v2166_v34 = vadd.f32 %v2165_v1, %v2117_v6  ;;  %v4013_v6 = vld [vmem:[%s4968_s7 + $0x268] sm:$0xf]  ;;  %v4601_v1 = vld [vmem:[%s4968_s7 + $0x274] sm:$0xf0] }
 0x1cf   : > { %v4014_v50 = vor.u32 %v4601_v1, %v4013_v6 }
 0x1d0   : > { %v3092_v2 = vadd.f32 %v2166_v34, %v412_v58  ;;  %v4537_v58 = vld [vmem:[%s4968_s7 + $0x74] sm:$0xf0] }
 0x1d1   : > { %2594 = vmatpush.bf16.msrb.mxu2 %v4014_v50  ;;  %v424_v50 = vld [vmem:[#allocation2 + $0x1e8] sm:$0xff] }
 0x1d2   : > { %3156 = vst [vmem:[#allocation2 + $0x120] sm:$0xff] %v3092_v2  ;;  %v2214_v19 = vpop.f32.mrf.mxu2 }
 0x1d3   : > { %v2263_v35 = vpop.f32.mrf.mxu3  ;;  %v2119_v56 = vpop.f32.mrf.mxu0 }
 0x1d4   : > { %v5567_v26 = vadd.f32 %v2263_v35, %v2214_v19  ;;  %v2120_v29 = vadd.f32 %v2119_v56, %v5407_v43  ;;  %v2168_v8 = vpop.f32.mrf.mxu1  ;;  %v3758_v19 = vor.u32 %v4537_v58, %v3757_v9  ;;  %v4633_v35 = vld [vmem:[%s4968_s7 + $0x374] sm:$0xf0]  ;;  %v3885_v56 = vld [vmem:[%s4968_s7 + $0x168] sm:$0xf] }
 0x1d6   : > { %v2169_v24 = vadd.f32 %v2168_v8, %v2120_v29  ;;  %2314 = vmatmul.bf16.gmra.mxu0 %v5185_v36  ;;  %2363 = vmatmul.bf16.gmra.mxu1 %v5187_v37  ;;  %v4569_v29 = vld [vmem:[%s4968_s7 + $0x174] sm:$0xf0]  ;;  %v420_v8 = vld [vmem:[#allocation2 + $0x80] sm:$0xff] }
 0x1d7   : > { %2412 = vmatmul.bf16.gmra.mxu2 %v5391_v49  ;;  %2496 = vmatpush.bf16.msrb.mxu0 %v3758_v19 }
 0x1d8   : > { %v3096_v21 = vadd.f32 %v2169_v24, %v416_v33  ;;  %2461 = vmatmul.bf16.gmra.mxu3 %v5393_v54  ;;  %v4142_v33 = vor.u32 %v4633_v35, %v4141_v38  ;;  %v3886_v24 = vor.u32 %v4569_v29, %v3885_v56  ;;  %v3741_v29 = vld [vmem:[%s4968_s7 + $0x48] sm:$0xf] }
 0x1da   : > { %3160 = vst [vmem:[#allocation2 + $0xe0] sm:$0xff] %v3096_v21  ;;  %v2217_v43 = vpop.f32.mrf.mxu2  ;;  %2643 = vmatpush.bf16.msrb.mxu3 %v4142_v33  ;;  %2545 = vmatpush.bf16.msrb.mxu1 %v3886_v24  ;;  %v4125_v33 = vld [vmem:[%s4968_s7 + $0x348] sm:$0xf] }
 0x1db   : > { %v2266_v16 = vpop.f32.mrf.mxu3  ;;  %v2121_v46 = vpop.f32.mrf.mxu0 }
 0x1dc   : > { %v5579_v57 = vadd.f32 %v2266_v16, %v2217_v43  ;;  %v2122_v34 = vadd.f32 %v2121_v46, %v5419_v20  ;;  %v2170_v2 = vpop.f32.mrf.mxu1 }
 0x1de   : > { %v2171_v21 = vadd.f32 %v2170_v2, %v2122_v34  ;;  %v3997_v34 = vld [vmem:[%s4968_s7 + $0x248] sm:$0xf]  ;;  %v4597_v2 = vld [vmem:[%s4968_s7 + $0x254] sm:$0xf0] }
 0x1df   : > { %v3998_v56 = vor.u32 %v4597_v2, %v3997_v34 }
 0x1e0   : > { %v3100_v6 = vadd.f32 %v2171_v21, %v420_v8  ;;  %v4533_v8 = vld [vmem:[%s4968_s7 + $0x54] sm:$0xf0] }
 0x1e1   : > { %2595 = vmatpush.bf16.msrb.mxu2 %v3998_v56  ;;  %v432_v56 = vld [vmem:[#allocation2 + $0x148] sm:$0xff] }
 0x1e2   : > { %3164 = vst [vmem:[#allocation2 + $0x80] sm:$0xff] %v3100_v6  ;;  %v2219_v43 = vpop.f32.mrf.mxu2 }
 0x1e3   : > { %v2268_v1 = vpop.f32.mrf.mxu3  ;;  %v2124_v20 = vpop.f32.mrf.mxu0 }
 0x1e4   : > { %v5585_v16 = vadd.f32 %v2268_v1, %v2219_v43  ;;  %v2125_v46 = vadd.f32 %v2124_v20, %v5431_v14  ;;  %v2173_v9 = vpop.f32.mrf.mxu1  ;;  %v3742_v43 = vor.u32 %v4533_v8, %v3741_v29  ;;  %v4629_v1 = vld [vmem:[%s4968_s7 + $0x354] sm:$0xf0]  ;;  %v3869_v20 = vld [vmem:[%s4968_s7 + $0x148] sm:$0xf] }
 0x1e6   : > { %v2174_v58 = vadd.f32 %v2173_v9, %v2125_v46  ;;  %2319 = vmatmul.bf16.gmra.mxu0 %v5213_v63  ;;  %2368 = vmatmul.bf16.gmra.mxu1 %v5215_v0  ;;  %v4565_v46 = vld [vmem:[%s4968_s7 + $0x154] sm:$0xf0]  ;;  %v428_v9 = vld [vmem:[#allocation2 + $0x1e0] sm:$0xff] }
 0x1e7   : > { %2417 = vmatmul.bf16.gmra.mxu2 %v5415_v4  ;;  %2497 = vmatpush.bf16.msrb.mxu0 %v3742_v43 }
 0x1e8   : > { %v3104_v38 = vadd.f32 %v2174_v58, %v424_v50  ;;  %2466 = vmatmul.bf16.gmra.mxu3 %v5417_v17  ;;  %v4126_v50 = vor.u32 %v4629_v1, %v4125_v33  ;;  %v3870_v58 = vor.u32 %v4565_v46, %v3869_v20  ;;  %v3725_v46 = vld [vmem:[%s4968_s7 + $0x28] sm:$0xf] }
 0x1ea   : > { %3168 = vst [vmem:[#allocation2 + $0x1e8] sm:$0xff] %v3104_v38  ;;  %v2222_v14 = vpop.f32.mrf.mxu2  ;;  %2644 = vmatpush.bf16.msrb.mxu3 %v4126_v50  ;;  %2546 = vmatpush.bf16.msrb.mxu1 %v3870_v58  ;;  %v4109_v50 = vld [vmem:[%s4968_s7 + $0x328] sm:$0xf] }
 0x1eb   : > { %v2271_v19 = vpop.f32.mrf.mxu3  ;;  %v2126_v35 = vpop.f32.mrf.mxu0 }
 0x1ec   : > { %v5597_v24 = vadd.f32 %v2271_v19, %v2222_v14  ;;  %v2127_v21 = vadd.f32 %v2126_v35, %v5443_v55  ;;  %v2175_v6 = vpop.f32.mrf.mxu1 }
 0x1ee   : > { %v2176_v38 = vadd.f32 %v2175_v6, %v2127_v21  ;;  %v3981_v21 = vld [vmem:[%s4968_s7 + $0x228] sm:$0xf]  ;;  %v4593_v6 = vld [vmem:[%s4968_s7 + $0x234] sm:$0xf0] }
 0x1ef   : > { %v3982_v20 = vor.u32 %v4593_v6, %v3981_v21 }
 0x1f0   : > { %v3108_v34 = vadd.f32 %v2176_v38, %v428_v9  ;;  %v4529_v9 = vld [vmem:[%s4968_s7 + $0x34] sm:$0xf0] }
 0x1f1   : > { %2596 = vmatpush.bf16.msrb.mxu2 %v3982_v20  ;;  %v440_v20 = vld [vmem:[#allocation2 + $0x1a0] sm:$0xff] }
 0x1f2   : > { %3172 = vst [vmem:[#allocation2 + $0x1e0] sm:$0xff] %v3108_v34  ;;  %v2224_v14 = vpop.f32.mrf.mxu2 }
 0x1f3   : > { %v2273_v2 = vpop.f32.mrf.mxu3  ;;  %v2129_v55 = vpop.f32.mrf.mxu0 }
 0x1f4   : > { %v5603_v19 = vadd.f32 %v2273_v2, %v2224_v14  ;;  %v2130_v35 = vadd.f32 %v2129_v55, %v5455_v51  ;;  %v2178_v29 = vpop.f32.mrf.mxu1  ;;  %v3726_v14 = vor.u32 %v4529_v9, %v3725_v46  ;;  %v4625_v2 = vld [vmem:[%s4968_s7 + $0x334] sm:$0xf0]  ;;  %v3853_v55 = vld [vmem:[%s4968_s7 + $0x128] sm:$0xf] }
 0x1f6   : > { %v2179_v8 = vadd.f32 %v2178_v29, %v2130_v35  ;;  %2324 = vmatmul.bf16.gmra.mxu0 %v5241_v27  ;;  %2373 = vmatmul.bf16.gmra.mxu1 %v5243_v28  ;;  %v4561_v35 = vld [vmem:[%s4968_s7 + $0x134] sm:$0xf0]  ;;  %v436_v29 = vld [vmem:[#allocation2 + $0x40] sm:$0xff] }
 0x1f7   : > { %2422 = vmatmul.bf16.gmra.mxu2 %v5439_v44  ;;  %2498 = vmatpush.bf16.msrb.mxu0 %v3726_v14 }
 0x1f8   : > { %v3112_v33 = vadd.f32 %v2179_v8, %v432_v56  ;;  %2471 = vmatmul.bf16.gmra.mxu3 %v5441_v52  ;;  %v4110_v56 = vor.u32 %v4625_v2, %v4109_v50  ;;  %v3854_v8 = vor.u32 %v4561_v35, %v3853_v55  ;;  %v3709_v35 = vld [vmem:[%s4968_s7 + $0x8] sm:$0xf] }
 0x1fa   : > { %3176 = vst [vmem:[#allocation2 + $0x148] sm:$0xff] %v3112_v33  ;;  %v2227_v51 = vpop.f32.mrf.mxu2  ;;  %2645 = vmatpush.bf16.msrb.mxu3 %v4110_v56  ;;  %2547 = vmatpush.bf16.msrb.mxu1 %v3854_v8  ;;  %v4093_v56 = vld [vmem:[%s4968_s7 + $0x308] sm:$0xf] }
 0x1fb   : > { %v2276_v43 = vpop.f32.mrf.mxu3  ;;  %v2131_v1 = vpop.f32.mrf.mxu0 }
 0x1fc   : > { %v5615_v58 = vadd.f32 %v2276_v43, %v2227_v51  ;;  %v2132_v38 = vadd.f32 %v2131_v1, %v5467_v23  ;;  %v2180_v34 = vpop.f32.mrf.mxu1 }
 0x1fe   : > { %v2181_v33 = vadd.f32 %v2180_v34, %v2132_v38  ;;  %v3965_v38 = vld [vmem:[%s4968_s7 + $0x208] sm:$0xf]  ;;  %v4589_v34 = vld [vmem:[%s4968_s7 + $0x214] sm:$0xf0] }
 0x1ff   : > { %v3966_v55 = vor.u32 %v4589_v34, %v3965_v38 }
 0x200   : > { %v3116_v21 = vadd.f32 %v2181_v33, %v436_v29  ;;  %v4525_v29 = vld [vmem:[%s4968_s7 + $0x14] sm:$0xf0] }
 0x201   : > { %2597 = vmatpush.bf16.msrb.mxu2 %v3966_v55 }
 0x202   : > { %3180 = vst [vmem:[#allocation2 + $0x40] sm:$0xff] %v3116_v21  ;;  %v2229_v51 = vpop.f32.mrf.mxu2 }
 0x203   : > { %v2278_v6 = vpop.f32.mrf.mxu3  ;;  %v2134_v23 = vpop.f32.mrf.mxu0 }
 0x204   : > { %v5621_v43 = vadd.f32 %v2278_v6, %v2229_v51  ;;  %v2135_v1 = vadd.f32 %v2134_v23, %v5479_v15  ;;  %v2183_v46 = vpop.f32.mrf.mxu1  ;;  %v3710_v51 = vor.u32 %v4525_v29, %v3709_v35  ;;  %v4621_v6 = vld [vmem:[%s4968_s7 + $0x314] sm:$0xf0]  ;;  %v3837_v23 = vld [vmem:[%s4968_s7 + $0x108] sm:$0xf] }
 0x205   : > { %v448_v35 = vld [vmem:[#allocation2 + $0xb8] sm:$0xff] }
 0x206   : > { %v2184_v9 = vadd.f32 %v2183_v46, %v2135_v1  ;;  %2329 = vmatmul.bf16.gmra.mxu0 %v5269_v59  ;;  %2378 = vmatmul.bf16.gmra.mxu1 %v5271_v60  ;;  %v4557_v1 = vld [vmem:[%s4968_s7 + $0x114] sm:$0xf0]  ;;  %v444_v46 = vld [vmem:[#allocation2 + $0x70] sm:$0xff] }
 0x207   : > { %2427 = vmatmul.bf16.gmra.mxu2 %v5463_v13  ;;  %2499 = vmatpush.bf16.msrb.mxu0 %v3710_v51  ;;  %v4333_v51 = vld [vmem:[%s4968_s7 + $0x4e8] sm:$0xf] }
 0x208   : > { %v3120_v50 = vadd.f32 %v2184_v9, %v440_v20  ;;  %2476 = vmatmul.bf16.gmra.mxu3 %v5465_v18  ;;  %v4094_v20 = vor.u32 %v4621_v6, %v4093_v56  ;;  %v3838_v9 = vor.u32 %v4557_v1, %v3837_v23  ;;  %v4681_v23 = vld [vmem:[%s4968_s7 + $0x4f4] sm:$0xf0]  ;;  %v4583_v1 = vld [vmem:[%s4968_s7 + $0x1ec] sm:$0xf] }
 0x20a   : > { %3184 = vst [vmem:[#allocation2 + $0x1a0] sm:$0xff] %v3120_v50  ;;  %v2232_v15 = vpop.f32.mrf.mxu2  ;;  %2646 = vmatpush.bf16.msrb.mxu3 %v4094_v20  ;;  %2548 = vmatpush.bf16.msrb.mxu1 %v3838_v9  ;;  %v4334_v20 = vor.u32 %v4681_v23, %v4333_v51 }
 0x20b   : > { %v2281_v14 = vpop.f32.mrf.mxu3  ;;  %v2136_v2 = vpop.f32.mrf.mxu0 }
 0x20c   : > { %v5633_v8 = vadd.f32 %v2281_v14, %v2232_v15  ;;  %v2137_v33 = vadd.f32 %v2136_v2, %v5491_v62  ;;  %v2185_v21 = vpop.f32.mrf.mxu1  ;;  %2688 = vmatpush.bf16.msra.mxu0 %v4334_v20  ;;  %v6353_v20 = vld [vmem:[#allocation23_spill] sm:$0xff] }
 0x20e   : > { %v2186_v50 = vadd.f32 %v2185_v21, %v2137_v33  ;;  %v4551_v33 = vld [vmem:[%s4968_s7 + $0xec] sm:$0xf]  ;;  %v3823_v21 = vld [vmem:[%s4968_s7 + $0xf8] sm:$0xf0] }
 0x20f   : > { %v3826_v6 = vor.u32 %v4551_v33, %v3823_v21  ;;  %v4713_v33 = vld [vmem:[%s4968_s7 + $0x5f4] sm:$0xf0] }
 0x210   : > { %v3124_v38 = vadd.f32 %v2186_v50, %v444_v46  ;;  %v3951_v46 = vld [vmem:[%s4968_s7 + $0x1f8] sm:$0xf0] }
 0x211   : > { %v3954_v9 = vor.u32 %v4583_v1, %v3951_v46  ;;  %2786 = vmatpush.bf16.msra.mxu2 %v3826_v6  ;;  %v456_v46 = vld [vmem:[#allocation2 + $0x198] sm:$0xff] }
 0x212   : > { %3188 = vst [vmem:[#allocation2 + $0x70] sm:$0xff] %v3124_v38  ;;  %v2234_v15 = vpop.f32.mrf.mxu2 }
 0x213   : > { %v2283_v62 = vpop.f32.mrf.mxu3  ;;  %v2139_v34 = vpop.f32.mrf.mxu0  ;;  %2835 = vmatpush.bf16.msra.mxu3 %v3954_v9  ;;  %v6354_v9 = vld [vmem:[#allocation26_spill] sm:$0xff] }
 0x214   : > { %v5639_v14 = vadd.f32 %v2283_v62, %v2234_v15  ;;  %v2140_v2 = vadd.f32 %v2139_v34, %v5505_v30  ;;  %v2188_v55 = vpop.f32.mrf.mxu1 }
 0x216   : > { %v2189_v29 = vadd.f32 %v2188_v55, %v2140_v2  ;;  %2334 = vmatmul.bf16.gmra.mxu0 %v5297_v31  ;;  %2383 = vmatmul.bf16.gmra.mxu1 %v5299_v32  ;;  %v452_v2 = vld [vmem:[#allocation2 + $0x170] sm:$0xff] }
 0x217   : > { %2432 = vmatmul.bf16.gmra.mxu2 %v5487_v40 }
 0x218   : > { %v3128_v56 = vadd.f32 %v2189_v29, %v448_v35  ;;  %2481 = vmatmul.bf16.gmra.mxu3 %v5489_v53  ;;  %v4461_v29 = vld [vmem:[%s4968_s7 + $0x5e8] sm:$0xf]  ;;  %v4705_v53 = vld [vmem:[%s4968_s7 + $0x5b4] sm:$0xf0] }
 0x219   : > { %v4462_v21 = vor.u32 %v4713_v33, %v4461_v29  ;;  %v4579_v29 = vld [vmem:[%s4968_s7 + $0x1cc] sm:$0xf] }
 0x21a   : > { %3192 = vst [vmem:[#allocation2 + $0xb8] sm:$0xff] %v3128_v56  ;;  %v2237_v30 = vpop.f32.mrf.mxu2 }
 0x21b   : > { %v2286_v50 = vpop.f32.mrf.mxu3  ;;  %v2141_v38 = vpop.f32.mrf.mxu0  ;;  %2737 = vmatpush.bf16.msra.mxu1 %v4462_v21 }
 0x21c   : > { %v5652_v15 = vadd.f32 %v2286_v50, %v2237_v30  ;;  %v2142_v62 = vadd.f32 %v2141_v38, %v5515_v22  ;;  %v2190_v34 = vpop.f32.mrf.mxu1  ;;  %v6355_v38 = vld [vmem:[#allocation27_spill] sm:$0xff] }
 0x21e   : > { %v2191_v55 = vadd.f32 %v2190_v34, %v2142_v62  ;;  %v4547_v62 = vld [vmem:[%s4968_s7 + $0xcc] sm:$0xf]  ;;  %v3807_v34 = vld [vmem:[%s4968_s7 + $0xd8] sm:$0xf0] }
 0x220   : > { %v3132_v35 = vadd.f32 %v2191_v55, %v452_v2  ;;  %v4317_v2 = vld [vmem:[%s4968_s7 + $0x4c8] sm:$0xf]  ;;  %v3810_v55 = vor.u32 %v4547_v62, %v3807_v34 }
 0x221   : > { %v4445_v34 = vld [vmem:[%s4968_s7 + $0x5c8] sm:$0xf] }
 0x222   : > { %3196 = vst [vmem:[#allocation2 + $0x170] sm:$0xff] %v3132_v35  ;;  %v2239_v56 = vpop.f32.mrf.mxu2  ;;  %v4677_v35 = vld [vmem:[%s4968_s7 + $0x4d4] sm:$0xf0]  ;;  %2787 = vmatpush.bf16.msra.mxu2 %v3810_v55 }
 0x223   : > { %v2288_v51 = vpop.f32.mrf.mxu3  ;;  %v2144_v6 = vpop.f32.mrf.mxu0  ;;  %v4318_v21 = vor.u32 %v4677_v35, %v4317_v2 }
 0x224   : > { %v5657_v23 = vadd.f32 %v2288_v51, %v2239_v56  ;;  %v2145_v22 = vadd.f32 %v2144_v6, %v5529_v5  ;;  %v2193_v1 = vpop.f32.mrf.mxu1  ;;  %v3935_v51 = vld [vmem:[%s4968_s7 + $0x1d8] sm:$0xf0] }
 0x225   : > { %2689 = vmatpush.bf16.msra.mxu0 %v4318_v21  ;;  %v6357_v21 = vld [vmem:[#allocation5_spill] sm:$0xff] }
 0x226   : > { %v2194_v30 = vadd.f32 %v2193_v1, %v2145_v22  ;;  %2339 = vmatmul.bf16.gmra.mxu0 %v5325_v7  ;;  %2388 = vmatmul.bf16.gmra.mxu1 %v6353_v20 }
 0x227   : > { %2437 = vmatmul.bf16.gmra.mxu2 %v6354_v9  ;;  %v401_v9 = vld [vmem:[#allocation2 + $0x1b0] sm:$0xff] }
 0x228   : > { %v3136_v50 = vadd.f32 %v2194_v30, %v456_v46  ;;  %2486 = vmatmul.bf16.gmra.mxu3 %v6355_v38  ;;  %v3938_v46 = vor.u32 %v4579_v29, %v3935_v51  ;;  %v460_v30 = vld [vmem:[#allocation2 + $0x158] sm:$0xff]  ;;  %v4543_v51 = vld [vmem:[%s4968_s7 + $0xac] sm:$0xf] }
 0x229   : > { %v4709_v38 = vld [vmem:[%s4968_s7 + $0x5d4] sm:$0xf0] }
 0x22a   : > { %3200 = vst [vmem:[#allocation2 + $0x198] sm:$0xff] %v3136_v50  ;;  %v2242_v5 = vpop.f32.mrf.mxu2  ;;  %2836 = vmatpush.bf16.msra.mxu3 %v3938_v46  ;;  %v4446_v35 = vor.u32 %v4709_v38, %v4445_v34  ;;  %v3919_v34 = vld [vmem:[%s4968_s7 + $0x1b8] sm:$0xf0] }
 0x22b   : > { %v2291_v33 = vpop.f32.mrf.mxu3  ;;  %v2146_v56 = vpop.f32.mrf.mxu0 }
 0x22c   : > { %v5670_v6 = vadd.f32 %v2291_v33, %v2242_v5  ;;  %v2147_v22 = vadd.f32 %v2146_v56, %v5532_v3  ;;  %v2195_v1 = vpop.f32.mrf.mxu1  ;;  %2738 = vmatpush.bf16.msra.mxu1 %v4446_v35  ;;  %v6356_v56 = vld [vmem:[#allocation4_spill] sm:$0xff] }
 0x22e   : > { %v2196_v50 = vadd.f32 %v2195_v1, %v2147_v22  ;;  %v3791_v22 = vld [vmem:[%s4968_s7 + $0xb8] sm:$0xf0]  ;;  %v4301_v1 = vld [vmem:[%s4968_s7 + $0x4a8] sm:$0xf] }
 0x230   : > { %v3140_v62 = vadd.f32 %v2196_v50, %v460_v30  ;;  %v3794_v30 = vor.u32 %v4543_v51, %v3791_v22  ;;  %v4673_v50 = vld [vmem:[%s4968_s7 + $0x4b4] sm:$0xf0]  ;;  %v4429_v22 = vld [vmem:[%s4968_s7 + $0x5a8] sm:$0xf] }
 0x232   : > { %3204 = vst [vmem:[#allocation2 + $0x158] sm:$0xff] %v3140_v62  ;;  %v2244_v2 = vpop.f32.mrf.mxu2  ;;  %v4575_v62 = vld [vmem:[%s4968_s7 + $0x1ac] sm:$0xf]  ;;  %2788 = vmatpush.bf16.msra.mxu2 %v3794_v30 }
 0x233   : > { %v2293_v5 = vpop.f32.mrf.mxu3  ;;  %v2305_v33 = vpop.f32.mrf.mxu0 }
 0x234   : > { %v5675_v3 = vadd.f32 %v2293_v5, %v2244_v2  ;;  %v2354_v55 = vpop.f32.mrf.mxu1  ;;  %v2306_v29 = vadd.f32 %v2305_v33, %v5543_v25  ;;  %v4302_v5 = vor.u32 %v4673_v50, %v4301_v1  ;;  %v3922_v33 = vor.u32 %v4575_v62, %v3919_v34  ;;  %v405_v62 = vld [vmem:[#allocation2 + $0x168] sm:$0xff] }
 0x235   : > { %v6359_v34 = vld [vmem:[#allocation9_spill] sm:$0xff] }
 0x236   : > { %2500 = vmatmul.bf16.vlgmr.msrb.gmra.mxu0 %v6356_v56  ;;  %2549 = vmatmul.bf16.vlgmr.msrb.gmra.mxu1 %v6357_v21  ;;  %v2355_v38 = vadd.f32 %v2354_v55, %v2306_v29 }
 0x237   : > { %2598 = vmatmul.bf16.vlgmr.msrb.gmra.mxu2 %v5123_v39  ;;  %2690 = vmatpush.bf16.msra.mxu0 %v4302_v5  ;;  %v4285_v5 = vld [vmem:[%s4968_s7 + $0x488] sm:$0xf] }
 0x238   : > { %2647 = vmatmul.bf16.vlgmr.msrb.gmra.mxu3 %v5127_v42 }
 0x239   : > { %2837 = vmatpush.bf16.msra.mxu3 %v3922_v33  ;;  %v4669_v33 = vld [vmem:[%s4968_s7 + $0x494] sm:$0xf0] }
 0x23a   : > { %v2403_v46 = vpop.f32.mrf.mxu2 }
 0x23b   : > { %v2404_v2 = vadd.f32 %v2403_v46, %v2355_v38  ;;  %v2452_v25 = vpop.f32.mrf.mxu3  ;;  %v2307_v35 = vpop.f32.mrf.mxu0  ;;  %v4430_v38 = vor.u32 %v4705_v53, %v4429_v22  ;;  %v4539_v53 = vld [vmem:[%s4968_s7 + $0x8c] sm:$0xf]  ;;  %v4286_v22 = vor.u32 %v4669_v33, %v4285_v5 }
 0x23c   : > { %v2356_v39 = vpop.f32.mrf.mxu1  ;;  %v2308_v55 = vadd.f32 %v2307_v35, %v5549_v61 }
 0x23d   : > { %v2453_v42 = vadd.f32 %v2452_v25, %v2404_v2  ;;  %2739 = vmatpush.bf16.msra.mxu1 %v4430_v38  ;;  %v3775_v2 = vld [vmem:[%s4968_s7 + $0x98] sm:$0xf0]  ;;  %2691 = vmatpush.bf16.msra.mxu0 %v4286_v22 }
 0x23e   : > { %v2357_v51 = vadd.f32 %v2356_v39, %v2308_v55  ;;  %v3778_v35 = vor.u32 %v4539_v53, %v3775_v2  ;;  %v4571_v55 = vld [vmem:[%s4968_s7 + $0x18c] sm:$0xf]  ;;  %v3903_v38 = vld [vmem:[%s4968_s7 + $0x198] sm:$0xf0] }
 0x23f   : > { %v3081_v29 = vadd.f32 %v2453_v42, %v401_v9  ;;  %v6358_v9 = vld [vmem:[#allocation8_spill] sm:$0xff] }
 0x240   : > { %2789 = vmatpush.bf16.msra.mxu2 %v3778_v35 }
 0x241   : > { %3145 = vst [vmem:[#allocation2 + $0x1b0] sm:$0xff] %v3081_v29 }
 0x242   : > { %v2405_v40 = vpop.f32.mrf.mxu2 }
 0x243   : > { %v2406_v46 = vadd.f32 %v2405_v40, %v2357_v51  ;;  %v2454_v1 = vpop.f32.mrf.mxu3  ;;  %v2310_v50 = vpop.f32.mrf.mxu0 }
 0x244   : > { %v2359_v30 = vpop.f32.mrf.mxu1  ;;  %v2311_v42 = vadd.f32 %v2310_v50, %v5561_v10  ;;  %v3906_v50 = vor.u32 %v4571_v55, %v3903_v38  ;;  %v4535_v38 = vld [vmem:[%s4968_s7 + $0x6c] sm:$0xf] }
 0x245   : > { %v2455_v61 = vadd.f32 %v2454_v1, %v2406_v46  ;;  %v409_v46 = vld [vmem:[#allocation2 + $0x110] sm:$0xff] }
 0x246   : > { %2505 = vmatmul.bf16.gmra.mxu0 %v6358_v9  ;;  %2554 = vmatmul.bf16.gmra.mxu1 %v6359_v34  ;;  %v2360_v40 = vadd.f32 %v2359_v30, %v2311_v42 }
 0x247   : > { %v3085_v39 = vadd.f32 %v2455_v61, %v405_v62  ;;  %2603 = vmatmul.bf16.gmra.mxu2 %v5157_v11  ;;  %2838 = vmatpush.bf16.msra.mxu3 %v3906_v50 }
 0x248   : > { %2652 = vmatmul.bf16.gmra.mxu3 %v5159_v12  ;;  %v413_v12 = vld [vmem:[#allocation2 + $0x150] sm:$0xff] }
 0x249   : > { %3149 = vst [vmem:[#allocation2 + $0x168] sm:$0xff] %v3085_v39  ;;  %v4413_v39 = vld [vmem:[%s4968_s7 + $0x588] sm:$0xf] }
 0x24a   : > { %v2408_v25 = vpop.f32.mrf.mxu2 }
 0x24b   : > { %v2409_v10 = vadd.f32 %v2408_v25, %v2360_v40  ;;  %v2457_v29 = vpop.f32.mrf.mxu3  ;;  %v2312_v51 = vpop.f32.mrf.mxu0  ;;  %v4701_v40 = vld [vmem:[%s4968_s7 + $0x594] sm:$0xf0] }
 0x24c   : > { %v2361_v1 = vpop.f32.mrf.mxu1  ;;  %v2313_v30 = vadd.f32 %v2312_v51, %v5567_v26  ;;  %v4414_v2 = vor.u32 %v4701_v40, %v4413_v39  ;;  %v6361_v51 = vld [vmem:[#allocation12_spill] sm:$0xff]  ;;  %v3887_v40 = vld [vmem:[%s4968_s7 + $0x178] sm:$0xf0] }
 0x24d   : > { %v2458_v62 = vadd.f32 %v2457_v29, %v2409_v10  ;;  %v6360_v10 = vld [vmem:[#allocation11_spill] sm:$0xff] }
 0x24e   : > { %v2362_v42 = vadd.f32 %v2361_v1, %v2313_v30  ;;  %2740 = vmatpush.bf16.msra.mxu1 %v4414_v2  ;;  %v4665_v30 = vld [vmem:[%s4968_s7 + $0x474] sm:$0xf0] }
 0x24f   : > { %v3089_v61 = vadd.f32 %v2458_v62, %v409_v46  ;;  %v3759_v46 = vld [vmem:[%s4968_s7 + $0x78] sm:$0xf0]  ;;  %v4269_v62 = vld [vmem:[%s4968_s7 + $0x468] sm:$0xf] }
 0x250   : > { %v3762_v50 = vor.u32 %v4535_v38, %v3759_v46  ;;  %v4270_v39 = vor.u32 %v4665_v30, %v4269_v62  ;;  %v421_v30 = vld [vmem:[#allocation2 + $0x1a8] sm:$0xff] }
 0x251   : > { %3153 = vst [vmem:[#allocation2 + $0x110] sm:$0xff] %v3089_v61  ;;  %v4567_v61 = vld [vmem:[%s4968_s7 + $0x16c] sm:$0xf] }
 0x252   : > { %v2410_v53 = vpop.f32.mrf.mxu2  ;;  %2790 = vmatpush.bf16.msra.mxu2 %v3762_v50  ;;  %2692 = vmatpush.bf16.msra.mxu0 %v4270_v39 }
 0x253   : > { %v2411_v25 = vadd.f32 %v2410_v53, %v2362_v42  ;;  %v2459_v5 = vpop.f32.mrf.mxu3  ;;  %v2315_v33 = vpop.f32.mrf.mxu0  ;;  %v417_v53 = vld [vmem:[#allocation2 + $0x188] sm:$0xff] }
 0x254   : > { %v2364_v35 = vpop.f32.mrf.mxu1  ;;  %v2316_v55 = vadd.f32 %v2315_v33, %v5579_v57 }
 0x255   : > { %v2460_v26 = vadd.f32 %v2459_v5, %v2411_v25  ;;  %v3890_v25 = vor.u32 %v4567_v61, %v3887_v40  ;;  %v4531_v40 = vld [vmem:[%s4968_s7 + $0x4c] sm:$0xf] }
 0x256   : > { %2510 = vmatmul.bf16.gmra.mxu0 %v6360_v10  ;;  %2559 = vmatmul.bf16.gmra.mxu1 %v6361_v51  ;;  %v2365_v22 = vadd.f32 %v2364_v35, %v2316_v55  ;;  %v4397_v55 = vld [vmem:[%s4968_s7 + $0x568] sm:$0xf] }
 0x257   : > { %v3093_v29 = vadd.f32 %v2460_v26, %v413_v12  ;;  %2608 = vmatmul.bf16.gmra.mxu2 %v5185_v36  ;;  %2839 = vmatpush.bf16.msra.mxu3 %v3890_v25 }
 0x258   : > { %2657 = vmatmul.bf16.gmra.mxu3 %v5187_v37 }
 0x259   : > { %3157 = vst [vmem:[#allocation2 + $0x150] sm:$0xff] %v3093_v29  ;;  %v4697_v29 = vld [vmem:[%s4968_s7 + $0x574] sm:$0xf0] }
 0x25a   : > { %v2413_v1 = vpop.f32.mrf.mxu2  ;;  %v4398_v38 = vor.u32 %v4697_v29, %v4397_v55 }
 0x25b   : > { %v2414_v57 = vadd.f32 %v2413_v1, %v2365_v22  ;;  %v2462_v42 = vpop.f32.mrf.mxu3  ;;  %v2317_v12 = vpop.f32.mrf.mxu0 }
 0x25c   : > { %v2366_v2 = vpop.f32.mrf.mxu1  ;;  %v2318_v33 = vadd.f32 %v2317_v12, %v5585_v16  ;;  %2741 = vmatpush.bf16.msra.mxu1 %v4398_v38  ;;  %v6363_v12 = vld [vmem:[#allocation14_spill] sm:$0xff]  ;;  %v425_v38 = vld [vmem:[#allocation2 + $0xf8] sm:$0xff] }
 0x25d   : > { %v2463_v5 = vadd.f32 %v2462_v42, %v2414_v57  ;;  %v6362_v57 = vld [vmem:[#allocation13_spill] sm:$0xff] }
 0x25e   : > { %v2367_v26 = vadd.f32 %v2366_v2, %v2318_v33  ;;  %v4661_v33 = vld [vmem:[%s4968_s7 + $0x454] sm:$0xf0] }
 0x25f   : > { %v3097_v35 = vadd.f32 %v2463_v5, %v417_v53  ;;  %v3743_v53 = vld [vmem:[%s4968_s7 + $0x58] sm:$0xf0]  ;;  %v4253_v5 = vld [vmem:[%s4968_s7 + $0x448] sm:$0xf] }
 0x260   : > { %v3746_v25 = vor.u32 %v4531_v40, %v3743_v53  ;;  %v4254_v29 = vor.u32 %v4661_v33, %v4253_v5  ;;  %v429_v33 = vld [vmem:[#allocation2] sm:$0xff] }
 0x261   : > { %3161 = vst [vmem:[#allocation2 + $0x188] sm:$0xff] %v3097_v35  ;;  %v4563_v35 = vld [vmem:[%s4968_s7 + $0x14c] sm:$0xf] }
 0x262   : > { %v2415_v22 = vpop.f32.mrf.mxu2  ;;  %2791 = vmatpush.bf16.msra.mxu2 %v3746_v25  ;;  %2693 = vmatpush.bf16.msra.mxu0 %v4254_v29 }
 0x263   : > { %v2416_v46 = vadd.f32 %v2415_v22, %v2367_v26  ;;  %v2464_v1 = vpop.f32.mrf.mxu3  ;;  %v2320_v62 = vpop.f32.mrf.mxu0  ;;  %v3871_v22 = vld [vmem:[%s4968_s7 + $0x158] sm:$0xf0] }
 0x264   : > { %v2369_v50 = vpop.f32.mrf.mxu1  ;;  %v2321_v61 = vadd.f32 %v2320_v62, %v5597_v24 }
 0x265   : > { %v2465_v16 = vadd.f32 %v2464_v1, %v2416_v46  ;;  %v3874_v1 = vor.u32 %v4563_v35, %v3871_v22  ;;  %v4527_v22 = vld [vmem:[%s4968_s7 + $0x2c] sm:$0xf] }
 0x266   : > { %2515 = vmatmul.bf16.gmra.mxu0 %v6362_v57  ;;  %2564 = vmatmul.bf16.gmra.mxu1 %v6363_v12  ;;  %v2370_v39 = vadd.f32 %v2369_v50, %v2321_v61  ;;  %v4381_v61 = vld [vmem:[%s4968_s7 + $0x548] sm:$0xf] }
 0x267   : > { %v3101_v42 = vadd.f32 %v2465_v16, %v421_v30  ;;  %2613 = vmatmul.bf16.gmra.mxu2 %v5213_v63  ;;  %2840 = vmatpush.bf16.msra.mxu3 %v3874_v1 }
 0x268   : > { %2662 = vmatmul.bf16.gmra.mxu3 %v5215_v0 }
 0x269   : > { %3165 = vst [vmem:[#allocation2 + $0x1a8] sm:$0xff] %v3101_v42  ;;  %v4693_v42 = vld [vmem:[%s4968_s7 + $0x554] sm:$0xf0] }
 0x26a   : > { %v2418_v2 = vpop.f32.mrf.mxu2  ;;  %v4382_v40 = vor.u32 %v4693_v42, %v4381_v61 }
 0x26b   : > { %v2419_v24 = vadd.f32 %v2418_v2, %v2370_v39  ;;  %v2467_v26 = vpop.f32.mrf.mxu3  ;;  %v2322_v55 = vpop.f32.mrf.mxu0 }
 0x26c   : > { %v2371_v46 = vpop.f32.mrf.mxu1  ;;  %v2323_v30 = vadd.f32 %v2322_v55, %v5603_v19  ;;  %2742 = vmatpush.bf16.msra.mxu1 %v4382_v40  ;;  %v6365_v55 = vld [vmem:[#allocation16_spill] sm:$0xff]  ;;  %v433_v40 = vld [vmem:[#allocation2 + $0x1d0] sm:$0xff] }
 0x26d   : > { %v2468_v62 = vadd.f32 %v2467_v26, %v2419_v24  ;;  %v6364_v24 = vld [vmem:[#allocation15_spill] sm:$0xff] }
 0x26e   : > { %v2372_v16 = vadd.f32 %v2371_v46, %v2323_v30  ;;  %v4657_v30 = vld [vmem:[%s4968_s7 + $0x434] sm:$0xf0] }
 0x26f   : > { %v3105_v50 = vadd.f32 %v2468_v62, %v425_v38  ;;  %v3727_v38 = vld [vmem:[%s4968_s7 + $0x38] sm:$0xf0]  ;;  %v4237_v62 = vld [vmem:[%s4968_s7 + $0x428] sm:$0xf] }
 0x270   : > { %v3730_v1 = vor.u32 %v4527_v22, %v3727_v38  ;;  %v4238_v42 = vor.u32 %v4657_v30, %v4237_v62  ;;  %v437_v30 = vld [vmem:[#allocation2 + $0x1f8] sm:$0xff] }
 0x271   : > { %3169 = vst [vmem:[#allocation2 + $0xf8] sm:$0xff] %v3105_v50  ;;  %v4559_v50 = vld [vmem:[%s4968_s7 + $0x12c] sm:$0xf] }
 0x272   : > { %v2420_v39 = vpop.f32.mrf.mxu2  ;;  %2792 = vmatpush.bf16.msra.mxu2 %v3730_v1  ;;  %2694 = vmatpush.bf16.msra.mxu0 %v4238_v42 }
 0x273   : > { %v2421_v53 = vadd.f32 %v2420_v39, %v2372_v16  ;;  %v2469_v2 = vpop.f32.mrf.mxu3  ;;  %v2325_v5 = vpop.f32.mrf.mxu0  ;;  %v3855_v39 = vld [vmem:[%s4968_s7 + $0x138] sm:$0xf0] }
 0x274   : > { %v2374_v25 = vpop.f32.mrf.mxu1  ;;  %v2326_v35 = vadd.f32 %v2325_v5, %v5615_v58 }
 0x275   : > { %v2470_v19 = vadd.f32 %v2469_v2, %v2421_v53  ;;  %v3858_v2 = vor.u32 %v4559_v50, %v3855_v39  ;;  %v4523_v39 = vld [vmem:[%s4968_s7 + $0xc] sm:$0xf] }
 0x276   : > { %2520 = vmatmul.bf16.gmra.mxu0 %v6364_v24  ;;  %2569 = vmatmul.bf16.gmra.mxu1 %v6365_v55  ;;  %v2375_v29 = vadd.f32 %v2374_v25, %v2326_v35  ;;  %v4365_v35 = vld [vmem:[%s4968_s7 + $0x528] sm:$0xf] }
 0x277   : > { %v3109_v26 = vadd.f32 %v2470_v19, %v429_v33  ;;  %2618 = vmatmul.bf16.gmra.mxu2 %v5241_v27  ;;  %2841 = vmatpush.bf16.msra.mxu3 %v3858_v2 }
 0x278   : > { %2667 = vmatmul.bf16.gmra.mxu3 %v5243_v28 }
 0x279   : > { %3173 = vst [vmem:[#allocation2] sm:$0xff] %v3109_v26  ;;  %v4689_v26 = vld [vmem:[%s4968_s7 + $0x534] sm:$0xf0] }
 0x27a   : > { %v2423_v46 = vpop.f32.mrf.mxu2  ;;  %v4366_v22 = vor.u32 %v4689_v26, %v4365_v35 }
 0x27b   : > { %v2424_v58 = vadd.f32 %v2423_v46, %v2375_v29  ;;  %v2472_v16 = vpop.f32.mrf.mxu3  ;;  %v2327_v61 = vpop.f32.mrf.mxu0 }
 0x27c   : > { %v2376_v53 = vpop.f32.mrf.mxu1  ;;  %v2328_v33 = vadd.f32 %v2327_v61, %v5621_v43  ;;  %2743 = vmatpush.bf16.msra.mxu1 %v4366_v22  ;;  %v6367_v61 = vld [vmem:[#allocation18_spill] sm:$0xff] }
 0x27d   : > { %v2473_v5 = vadd.f32 %v2472_v16, %v2424_v58  ;;  %v6366_v58 = vld [vmem:[#allocation17_spill] sm:$0xff]  ;;  %v441_v22 = vld [vmem:[#allocation2 + $0x1f0] sm:$0xff] }
 0x27e   : > { %v2377_v19 = vadd.f32 %v2376_v53, %v2328_v33  ;;  %v4653_v33 = vld [vmem:[%s4968_s7 + $0x414] sm:$0xf0] }
 0x27f   : > { %v3113_v25 = vadd.f32 %v2473_v5, %v433_v40  ;;  %v3711_v40 = vld [vmem:[%s4968_s7 + $0x18] sm:$0xf0]  ;;  %v4221_v5 = vld [vmem:[%s4968_s7 + $0x408] sm:$0xf] }
 0x280   : > { %v3714_v2 = vor.u32 %v4523_v39, %v3711_v40  ;;  %v4222_v26 = vor.u32 %v4653_v33, %v4221_v5  ;;  %v445_v33 = vld [vmem:[#allocation2 + $0x90] sm:$0xff] }
 0x281   : > { %3177 = vst [vmem:[#allocation2 + $0x1d0] sm:$0xff] %v3113_v25  ;;  %v4555_v25 = vld [vmem:[%s4968_s7 + $0x10c] sm:$0xf] }
 0x282   : > { %v2425_v29 = vpop.f32.mrf.mxu2  ;;  %2793 = vmatpush.bf16.msra.mxu2 %v3714_v2  ;;  %2695 = vmatpush.bf16.msra.mxu0 %v4222_v26 }
 0x283   : > { %v2426_v38 = vadd.f32 %v2425_v29, %v2377_v19  ;;  %v2474_v46 = vpop.f32.mrf.mxu3  ;;  %v2330_v62 = vpop.f32.mrf.mxu0  ;;  %v3839_v29 = vld [vmem:[%s4968_s7 + $0x118] sm:$0xf0] }
 0x284   : > { %v2379_v1 = vpop.f32.mrf.mxu1  ;;  %v2331_v50 = vadd.f32 %v2330_v62, %v5633_v8 }
 0x285   : > { %v2475_v43 = vadd.f32 %v2474_v46, %v2426_v38  ;;  %v3842_v46 = vor.u32 %v4555_v25, %v3839_v29  ;;  %v4679_v29 = vld [vmem:[%s4968_s7 + $0x4ec] sm:$0xf] }
 0x286   : > { %2525 = vmatmul.bf16.gmra.mxu0 %v6366_v58  ;;  %2574 = vmatmul.bf16.gmra.mxu1 %v6367_v61  ;;  %v2380_v42 = vadd.f32 %v2379_v1, %v2331_v50  ;;  %v4349_v50 = vld [vmem:[%s4968_s7 + $0x508] sm:$0xf] }
 0x287   : > { %v3117_v16 = vadd.f32 %v2475_v43, %v437_v30  ;;  %2623 = vmatmul.bf16.gmra.mxu2 %v5269_v59  ;;  %2842 = vmatpush.bf16.msra.mxu3 %v3842_v46 }
 0x288   : > { %2672 = vmatmul.bf16.gmra.mxu3 %v5271_v60 }
 0x289   : > { %3181 = vst [vmem:[#allocation2 + $0x1f8] sm:$0xff] %v3117_v16  ;;  %v4685_v16 = vld [vmem:[%s4968_s7 + $0x514] sm:$0xf0] }
 0x28a   : > { %v2428_v53 = vpop.f32.mrf.mxu2  ;;  %v4350_v39 = vor.u32 %v4685_v16, %v4349_v50 }
 0x28b   : > { %v2429_v8 = vadd.f32 %v2428_v53, %v2380_v42  ;;  %v2477_v19 = vpop.f32.mrf.mxu3  ;;  %v2332_v35 = vpop.f32.mrf.mxu0 }
 0x28c   : > { %v2381_v38 = vpop.f32.mrf.mxu1  ;;  %v2333_v30 = vadd.f32 %v2332_v35, %v5639_v14  ;;  %2744 = vmatpush.bf16.msra.mxu1 %v4350_v39  ;;  %v6369_v35 = vld [vmem:[#allocation20_spill] sm:$0xff]  ;;  %v449_v39 = vld [vmem:[#allocation2 + $0x88] sm:$0xff] }
 0x28d   : > { %v2478_v62 = vadd.f32 %v2477_v19, %v2429_v8  ;;  %v6368_v8 = vld [vmem:[#allocation19_spill] sm:$0xff] }
 0x28e   : > { %v2382_v43 = vadd.f32 %v2381_v38, %v2333_v30  ;;  %v4711_v30 = vld [vmem:[%s4968_s7 + $0x5ec] sm:$0xf] }
 0x28f   : > { %v3121_v1 = vadd.f32 %v2478_v62, %v441_v22  ;;  %v4335_v22 = vld [vmem:[%s4968_s7 + $0x4f8] sm:$0xf0]  ;;  %v4615_v62 = vld [vmem:[%s4968_s7 + $0x2ec] sm:$0xf] }
 0x290   : > { %v4338_v46 = vor.u32 %v4679_v29, %v4335_v22 }
 0x291   : > { %3185 = vst [vmem:[#allocation2 + $0x1f0] sm:$0xff] %v3121_v1 }
 0x292   : > { %v2430_v42 = vpop.f32.mrf.mxu2  ;;  %2982 = vmatpush.bf16.msrb.mxu2 %v4338_v46 }
 0x293   : > { %v2431_v40 = vadd.f32 %v2430_v42, %v2382_v43  ;;  %v2479_v53 = vpop.f32.mrf.mxu3  ;;  %v2335_v5 = vpop.f32.mrf.mxu0  ;;  %v4463_v42 = vld [vmem:[%s4968_s7 + $0x5f8] sm:$0xf0] }
 0x294   : > { %v2384_v2 = vpop.f32.mrf.mxu1  ;;  %v2336_v25 = vadd.f32 %v2335_v5, %v5652_v15  ;;  %v4079_v15 = vld [vmem:[%s4968_s7 + $0x2f8] sm:$0xf0] }
 0x295   : > { %v2480_v14 = vadd.f32 %v2479_v53, %v2431_v40  ;;  %v4082_v16 = vor.u32 %v4615_v62, %v4079_v15  ;;  %v4466_v53 = vor.u32 %v4711_v30, %v4463_v42  ;;  %v453_v62 = vld [vmem:[#allocation2 + $0x178] sm:$0xff] }
 0x296   : > { %2530 = vmatmul.bf16.gmra.mxu0 %v6368_v8  ;;  %2579 = vmatmul.bf16.gmra.mxu1 %v6369_v35  ;;  %v2385_v26 = vadd.f32 %v2384_v2, %v2336_v25  ;;  %v4647_v2 = vld [vmem:[%s4968_s7 + $0x3ec] sm:$0xf]  ;;  %v4319_v42 = vld [vmem:[%s4968_s7 + $0x4d8] sm:$0xf0] }
 0x297   : > { %v3125_v19 = vadd.f32 %v2480_v14, %v445_v33  ;;  %2628 = vmatmul.bf16.gmra.mxu2 %v5297_v31  ;;  %2884 = vmatpush.bf16.msrb.mxu0 %v4082_v16  ;;  %v4207_v14 = vld [vmem:[%s4968_s7 + $0x3f8] sm:$0xf0]  ;;  %v4675_v16 = vld [vmem:[%s4968_s7 + $0x4cc] sm:$0xf] }
 0x298   : > { %2677 = vmatmul.bf16.gmra.mxu3 %v5299_v32  ;;  %v4210_v25 = vor.u32 %v4647_v2, %v4207_v14  ;;  %v4447_v14 = vld [vmem:[%s4968_s7 + $0x5d8] sm:$0xf0] }
 0x299   : > { %3189 = vst [vmem:[#allocation2 + $0x90] sm:$0xff] %v3125_v19  ;;  %3031 = vmatpush.bf16.msrb.mxu3 %v4466_v53  ;;  %v4322_v53 = vor.u32 %v4675_v16, %v4319_v42 }
 0x29a   : > { %v2433_v38 = vpop.f32.mrf.mxu2  ;;  %2933 = vmatpush.bf16.msrb.mxu1 %v4210_v25 }
 0x29b   : > { %v2434_v1 = vadd.f32 %v2433_v38, %v2385_v26  ;;  %v2482_v43 = vpop.f32.mrf.mxu3  ;;  %v2337_v50 = vpop.f32.mrf.mxu0  ;;  %2983 = vmatpush.bf16.msrb.mxu2 %v4322_v53 }
 0x29c   : > { %v2386_v40 = vpop.f32.mrf.mxu1  ;;  %v2338_v33 = vadd.f32 %v2337_v50, %v5657_v23  ;;  %v6371_v50 = vld [vmem:[#allocation22_spill] sm:$0xff] }
 0x29d   : > { %v2483_v5 = vadd.f32 %v2482_v43, %v2434_v1  ;;  %v6370_v1 = vld [vmem:[#allocation21_spill] sm:$0xff] }
 0x29e   : > { %v2387_v26 = vadd.f32 %v2386_v40, %v2338_v33  ;;  %v4707_v33 = vld [vmem:[%s4968_s7 + $0x5cc] sm:$0xf] }
 0x29f   : > { %v3129_v19 = vadd.f32 %v2483_v5, %v449_v39  ;;  %v4611_v39 = vld [vmem:[%s4968_s7 + $0x2cc] sm:$0xf]  ;;  %v4063_v5 = vld [vmem:[%s4968_s7 + $0x2d8] sm:$0xf0] }
 0x2a0   : > { %v4066_v2 = vor.u32 %v4611_v39, %v4063_v5  ;;  %v461_v5 = vld [vmem:[#allocation2 + $0x10] sm:$0xff] }
 0x2a1   : > { %3193 = vst [vmem:[#allocation2 + $0x88] sm:$0xff] %v3129_v19 }
 0x2a2   : > { %v2435_v29 = vpop.f32.mrf.mxu2  ;;  %2885 = vmatpush.bf16.msrb.mxu0 %v4066_v2 }
 0x2a3   : > { %v2436_v22 = vadd.f32 %v2435_v29, %v2387_v26  ;;  %v2484_v38 = vpop.f32.mrf.mxu3  ;;  %v2340_v46 = vpop.f32.mrf.mxu0  ;;  %v4450_v29 = vor.u32 %v4707_v33, %v4447_v14  ;;  %v4671_v14 = vld [vmem:[%s4968_s7 + $0x4ac] sm:$0xf] }
 0x2a4   : > { %v2389_v23 = vpop.f32.mrf.mxu1  ;;  %v2341_v30 = vadd.f32 %v2340_v46, %v5670_v6 }
 0x2a5   : > { %v2485_v15 = vadd.f32 %v2484_v38, %v2436_v22  ;;  %v457_v22 = vld [vmem:[#allocation2 + $0x38] sm:$0xff]  ;;  %3032 = vmatpush.bf16.msrb.mxu3 %v4450_v29 }
 0x2a6   : > { %2535 = vmatmul.bf16.gmra.mxu0 %v6370_v1  ;;  %2584 = vmatmul.bf16.gmra.mxu1 %v6371_v50  ;;  %v2390_v40 = vadd.f32 %v2389_v23, %v2341_v30  ;;  %v4643_v23 = vld [vmem:[%s4968_s7 + $0x3cc] sm:$0xf]  ;;  %v4047_v29 = vld [vmem:[%s4968_s7 + $0x2b8] sm:$0xf0] }
 0x2a7   : > { %v3133_v43 = vadd.f32 %v2485_v15, %v453_v62  ;;  %2633 = vmatmul.bf16.gmra.mxu2 %v5325_v7  ;;  %v4191_v15 = vld [vmem:[%s4968_s7 + $0x3d8] sm:$0xf0] }
 0x2a8   : > { %2682 = vmatmul.bf16.gmra.mxu3 %v6353_v20  ;;  %v4194_v30 = vor.u32 %v4643_v23, %v4191_v15 }
 0x2a9   : > { %3197 = vst [vmem:[#allocation2 + $0x178] sm:$0xff] %v3133_v43 }
 0x2aa   : > { %v2438_v6 = vpop.f32.mrf.mxu2  ;;  %2934 = vmatpush.bf16.msrb.mxu1 %v4194_v30 }
 0x2ab   : > { %v2439_v25 = vadd.f32 %v2438_v6, %v2390_v40  ;;  %v2487_v19 = vpop.f32.mrf.mxu3  ;;  %v2342_v26 = vpop.f32.mrf.mxu0 }
 0x2ac   : > { %v2391_v38 = vpop.f32.mrf.mxu1  ;;  %v2343_v62 = vadd.f32 %v2342_v26, %v5675_v3 }
 0x2ad   : > { %v2488_v46 = vadd.f32 %v2487_v19, %v2439_v25  ;;  %v4303_v25 = vld [vmem:[%s4968_s7 + $0x4b8] sm:$0xf0]  ;;  %v4607_v19 = vld [vmem:[%s4968_s7 + $0x2ac] sm:$0xf] }
 0x2ae   : > { %v2392_v16 = vadd.f32 %v2391_v38, %v2343_v62  ;;  %v4306_v26 = vor.u32 %v4671_v14, %v4303_v25  ;;  %v4431_v62 = vld [vmem:[%s4968_s7 + $0x5b8] sm:$0xf0]  ;;  %v4667_v25 = vld [vmem:[%s4968_s7 + $0x48c] sm:$0xf] }
 0x2af   : > { %v3137_v43 = vadd.f32 %v2488_v46, %v457_v22  ;;  %v4703_v22 = vld [vmem:[%s4968_s7 + $0x5ac] sm:$0xf]  ;;  %v4050_v46 = vor.u32 %v4607_v19, %v4047_v29  ;;  %v4287_v19 = vld [vmem:[%s4968_s7 + $0x498] sm:$0xf0] }
 0x2b0   : > { %2984 = vmatpush.bf16.msrb.mxu2 %v4306_v26  ;;  %v4603_v26 = vld [vmem:[%s4968_s7 + $0x28c] sm:$0xf]  ;;  %v4290_v29 = vor.u32 %v4667_v25, %v4287_v19 }
 0x2b1   : > { %3201 = vst [vmem:[#allocation2 + $0x38] sm:$0xff] %v3137_v43  ;;  %v4434_v43 = vor.u32 %v4703_v22, %v4431_v62  ;;  %2886 = vmatpush.bf16.msrb.mxu0 %v4050_v46  ;;  %v4031_v22 = vld [vmem:[%s4968_s7 + $0x298] sm:$0xf0]  ;;  %v4663_v19 = vld [vmem:[%s4968_s7 + $0x46c] sm:$0xf] }
 0x2b2   : > { %v2440_v42 = vpop.f32.mrf.mxu2  ;;  %v4415_v46 = vld [vmem:[%s4968_s7 + $0x598] sm:$0xf0] }
 0x2b3   : > { %v2441_v39 = vadd.f32 %v2440_v42, %v2392_v16  ;;  %v2489_v40 = vpop.f32.mrf.mxu3  ;;  %v2501_v53 = vpop.f32.mrf.mxu0  ;;  %3033 = vmatpush.bf16.msrb.mxu3 %v4434_v43  ;;  %v4639_v42 = vld [vmem:[%s4968_s7 + $0x3ac] sm:$0xf] }
 0x2b4   : > { %v2550_v33 = vpop.f32.mrf.mxu1  ;;  %2985 = vmatpush.bf16.msrb.mxu2 %v4290_v29  ;;  %v4599_v29 = vld [vmem:[%s4968_s7 + $0x26c] sm:$0xf] }
 0x2b5   : > { %v2490_v3 = vadd.f32 %v2489_v40, %v2441_v39  ;;  %v2551_v6 = vadd.f32 %v2550_v33, %v2501_v53  ;;  %v4175_v39 = vld [vmem:[%s4968_s7 + $0x3b8] sm:$0xf0] }
 0x2b6   : > { %2696 = vmatmul.bf16.vlgmr.msra.gmra.mxu0 %v5345_v45  ;;  %2745 = vmatmul.bf16.vlgmr.msra.gmra.mxu1 %v5347_v47  ;;  %v4178_v40 = vor.u32 %v4639_v42, %v4175_v39  ;;  %v4635_v42 = vld [vmem:[%s4968_s7 + $0x38c] sm:$0xf]  ;;  %v4159_v39 = vld [vmem:[%s4968_s7 + $0x398] sm:$0xf0] }
 0x2b7   : > { %v3141_v2 = vadd.f32 %v2490_v3, %v461_v5  ;;  %2794 = vmatmul.bf16.vlgmr.msra.gmra.mxu2 %v6356_v56 }
 0x2b8   : > { %2843 = vmatmul.bf16.vlgmr.msra.gmra.mxu3 %v6357_v21  ;;  %2935 = vmatpush.bf16.msrb.mxu1 %v4178_v40  ;;  %v4162_v40 = vor.u32 %v4635_v42, %v4159_v39  ;;  %v4631_v42 = vld [vmem:[%s4968_s7 + $0x36c] sm:$0xf]  ;;  %v4143_v39 = vld [vmem:[%s4968_s7 + $0x378] sm:$0xf0] }
 0x2b9   : > { %3205 = vst [vmem:[#allocation2 + $0x10] sm:$0xff] %v3141_v2 }
 0x2ba   : > { %v2599_v38 = vpop.f32.mrf.mxu2 }
 0x2bb   : > { %v2600_v23 = vadd.f32 %v2599_v38, %v2551_v6  ;;  %v2648_v15 = vpop.f32.mrf.mxu3  ;;  %v2503_v30 = vpop.f32.mrf.mxu0  ;;  %v4699_v38 = vld [vmem:[%s4968_s7 + $0x58c] sm:$0xf] }
 0x2bc   : > { %v2552_v56 = vpop.f32.mrf.mxu1  ;;  %2936 = vmatpush.bf16.msrb.mxu1 %v4162_v40  ;;  %v4146_v40 = vor.u32 %v4631_v42, %v4143_v39  ;;  %v4627_v42 = vld [vmem:[%s4968_s7 + $0x34c] sm:$0xf]  ;;  %v4127_v39 = vld [vmem:[%s4968_s7 + $0x358] sm:$0xf0] }
 0x2bd   : > { %v5799_v21 = vadd.f32 %v2648_v15, %v2600_v23  ;;  %v2553_v16 = vadd.f32 %v2552_v56, %v2503_v30  ;;  %v4034_v23 = vor.u32 %v4603_v26, %v4031_v22  ;;  %v4418_v15 = vor.u32 %v4699_v38, %v4415_v46  ;;  %v4271_v26 = vld [vmem:[%s4968_s7 + $0x478] sm:$0xf0]  ;;  %v4695_v46 = vld [vmem:[%s4968_s7 + $0x56c] sm:$0xf] }
 0x2be   : > { %v4274_v22 = vor.u32 %v4663_v19, %v4271_v26  ;;  %v4015_v38 = vld [vmem:[%s4968_s7 + $0x278] sm:$0xf0]  ;;  %v4659_v26 = vld [vmem:[%s4968_s7 + $0x44c] sm:$0xf] }
 0x2bf   : > { %2887 = vmatpush.bf16.msrb.mxu0 %v4034_v23  ;;  %3034 = vmatpush.bf16.msrb.mxu3 %v4418_v15  ;;  %v4018_v15 = vor.u32 %v4599_v29, %v4015_v38  ;;  %v4255_v29 = vld [vmem:[%s4968_s7 + $0x458] sm:$0xf0] }
 0x2c0   : > { %2986 = vmatpush.bf16.msrb.mxu2 %v4274_v22  ;;  %2937 = vmatpush.bf16.msrb.mxu1 %v4146_v40  ;;  %v4595_v22 = vld [vmem:[%s4968_s7 + $0x24c] sm:$0xf]  ;;  %v4258_v38 = vor.u32 %v4659_v26, %v4255_v29  ;;  %v4130_v40 = vor.u32 %v4627_v42, %v4127_v39  ;;  %v4111_v39 = vld [vmem:[%s4968_s7 + $0x338] sm:$0xf0] }
 0x2c1   : > { %v4655_v29 = vld [vmem:[%s4968_s7 + $0x42c] sm:$0xf] }
 0x2c2   : > { %v2601_v53 = vpop.f32.mrf.mxu2  ;;  %v4623_v42 = vld [vmem:[%s4968_s7 + $0x32c] sm:$0xf] }
 0x2c3   : > { %v2602_v5 = vadd.f32 %v2601_v53, %v2553_v16  ;;  %v2650_v33 = vpop.f32.mrf.mxu3  ;;  %v2506_v3 = vpop.f32.mrf.mxu0  ;;  %2888 = vmatpush.bf16.msrb.mxu0 %v4018_v15 }
 0x2c4   : > { %v2555_v6 = vpop.f32.mrf.mxu1  ;;  %2987 = vmatpush.bf16.msrb.mxu2 %v4258_v38  ;;  %2938 = vmatpush.bf16.msrb.mxu1 %v4130_v40  ;;  %v4591_v38 = vld [vmem:[%s4968_s7 + $0x22c] sm:$0xf]  ;;  %v4114_v40 = vor.u32 %v4623_v42, %v4111_v39  ;;  %v4095_v39 = vld [vmem:[%s4968_s7 + $0x318] sm:$0xf0] }
 0x2c5   : > { %v5803_v2 = vadd.f32 %v2650_v33, %v2602_v5  ;;  %v2556_v14 = vadd.f32 %v2555_v6, %v2506_v3  ;;  %v4619_v42 = vld [vmem:[%s4968_s7 + $0x30c] sm:$0xf] }
 0x2c6   : > { %2701 = vmatmul.bf16.gmra.mxu0 %v5367_v41  ;;  %2750 = vmatmul.bf16.gmra.mxu1 %v5369_v48 }
 0x2c7   : > { %2799 = vmatmul.bf16.gmra.mxu2 %v6358_v9 }
 0x2c8   : > { %2848 = vmatmul.bf16.gmra.mxu3 %v6359_v34  ;;  %2939 = vmatpush.bf16.msrb.mxu1 %v4114_v40  ;;  %v4098_v40 = vor.u32 %v4619_v42, %v4095_v39 }
 0x2ca   : > { %v2604_v62 = vpop.f32.mrf.mxu2 }
 0x2cb   : > { %v2605_v30 = vadd.f32 %v2604_v62, %v2556_v14  ;;  %v2653_v43 = vpop.f32.mrf.mxu3  ;;  %v2508_v56 = vpop.f32.mrf.mxu0  ;;  %v4399_v62 = vld [vmem:[%s4968_s7 + $0x578] sm:$0xf0] }
 0x2cc   : > { %v2557_v16 = vpop.f32.mrf.mxu1  ;;  %2940 = vmatpush.bf16.msrb.mxu1 %v4098_v40  ;;  %v6374_v40 = vld [vmem:[#allocation26_spill] sm:$0xff] }
 0x2cd   : > { %v5815_v9 = vadd.f32 %v2653_v43, %v2605_v30  ;;  %v2558_v34 = vadd.f32 %v2557_v16, %v2508_v56  ;;  %v4402_v30 = vor.u32 %v4695_v46, %v4399_v62  ;;  %v3999_v46 = vld [vmem:[%s4968_s7 + $0x258] sm:$0xf0]  ;;  %v4691_v62 = vld [vmem:[%s4968_s7 + $0x54c] sm:$0xf] }
 0x2cf   : > { %3035 = vmatpush.bf16.msrb.mxu3 %v4402_v30  ;;  %v4002_v30 = vor.u32 %v4595_v22, %v3999_v46  ;;  %v4239_v22 = vld [vmem:[%s4968_s7 + $0x438] sm:$0xf0] }
 0x2d0   : > { %v4242_v46 = vor.u32 %v4655_v29, %v4239_v22  ;;  %v4651_v22 = vld [vmem:[%s4968_s7 + $0x40c] sm:$0xf] }
 0x2d1   : > { %2889 = vmatpush.bf16.msrb.mxu0 %v4002_v30 }
 0x2d2   : > { %v2606_v53 = vpop.f32.mrf.mxu2  ;;  %2988 = vmatpush.bf16.msrb.mxu2 %v4242_v46  ;;  %v4587_v46 = vld [vmem:[%s4968_s7 + $0x20c] sm:$0xf] }
 0x2d3   : > { %v2607_v5 = vadd.f32 %v2606_v53, %v2558_v34  ;;  %v2655_v33 = vpop.f32.mrf.mxu3  ;;  %v2511_v3 = vpop.f32.mrf.mxu0 }
 0x2d4   : > { %v2560_v6 = vpop.f32.mrf.mxu1 }
 0x2d5   : > { %v5819_v14 = vadd.f32 %v2655_v33, %v2607_v5  ;;  %v2561_v25 = vadd.f32 %v2560_v6, %v2511_v3 }
 0x2d6   : > { %2706 = vmatmul.bf16.gmra.mxu0 %v5391_v49  ;;  %2755 = vmatmul.bf16.gmra.mxu1 %v5393_v54 }
 0x2d7   : > { %2804 = vmatmul.bf16.gmra.mxu2 %v6360_v10 }
 0x2d8   : > { %2853 = vmatmul.bf16.gmra.mxu3 %v6361_v51 }
 0x2da   : > { %v2609_v23 = vpop.f32.mrf.mxu2 }
 0x2db   : > { %v2610_v43 = vadd.f32 %v2609_v23, %v2561_v25  ;;  %v2658_v56 = vpop.f32.mrf.mxu3  ;;  %v2513_v16 = vpop.f32.mrf.mxu0  ;;  %v4383_v23 = vld [vmem:[%s4968_s7 + $0x558] sm:$0xf0] }
 0x2dc   : > { %v2562_v34 = vpop.f32.mrf.mxu1 }
 0x2dd   : > { %v5831_v10 = vadd.f32 %v2658_v56, %v2610_v43  ;;  %v2563_v51 = vadd.f32 %v2562_v34, %v2513_v16  ;;  %v4386_v43 = vor.u32 %v4691_v62, %v4383_v23  ;;  %v3983_v62 = vld [vmem:[%s4968_s7 + $0x238] sm:$0xf0]  ;;  %v4687_v23 = vld [vmem:[%s4968_s7 + $0x52c] sm:$0xf] }
 0x2df   : > { %3036 = vmatpush.bf16.msrb.mxu3 %v4386_v43  ;;  %v3986_v43 = vor.u32 %v4591_v38, %v3983_v62  ;;  %v4223_v38 = vld [vmem:[%s4968_s7 + $0x418] sm:$0xf0] }
 0x2e0   : > { %v4226_v62 = vor.u32 %v4651_v22, %v4223_v38  ;;  %v6372_v38 = vld [vmem:[#allocation24_spill] sm:$0xff] }
 0x2e1   : > { %2890 = vmatpush.bf16.msrb.mxu0 %v3986_v43 }
 0x2e2   : > { %v2611_v53 = vpop.f32.mrf.mxu2  ;;  %2989 = vmatpush.bf16.msrb.mxu2 %v4226_v62 }
 0x2e3   : > { %v2612_v5 = vadd.f32 %v2611_v53, %v2563_v51  ;;  %v2660_v33 = vpop.f32.mrf.mxu3  ;;  %v2516_v3 = vpop.f32.mrf.mxu0 }
 0x2e4   : > { %v2565_v6 = vpop.f32.mrf.mxu1 }
 0x2e5   : > { %v5835_v25 = vadd.f32 %v2660_v33, %v2612_v5  ;;  %v2566_v19 = vadd.f32 %v2565_v6, %v2516_v3 }
 0x2e6   : > { %2711 = vmatmul.bf16.gmra.mxu0 %v5415_v4  ;;  %2760 = vmatmul.bf16.gmra.mxu1 %v5417_v17 }
 0x2e7   : > { %2809 = vmatmul.bf16.gmra.mxu2 %v6362_v57 }
 0x2e8   : > { %2858 = vmatmul.bf16.gmra.mxu3 %v6363_v12 }
 0x2ea   : > { %v2614_v15 = vpop.f32.mrf.mxu2 }
 0x2eb   : > { %v2615_v56 = vadd.f32 %v2614_v15, %v2566_v19  ;;  %v2663_v16 = vpop.f32.mrf.mxu3  ;;  %v2518_v34 = vpop.f32.mrf.mxu0  ;;  %v4367_v15 = vld [vmem:[%s4968_s7 + $0x538] sm:$0xf0] }
 0x2ec   : > { %v2567_v51 = vpop.f32.mrf.mxu1 }
 0x2ed   : > { %v5847_v57 = vadd.f32 %v2663_v16, %v2615_v56  ;;  %v2568_v12 = vadd.f32 %v2567_v51, %v2518_v34  ;;  %v4370_v56 = vor.u32 %v4687_v23, %v4367_v15  ;;  %v3967_v23 = vld [vmem:[%s4968_s7 + $0x218] sm:$0xf0]  ;;  %v4683_v15 = vld [vmem:[%s4968_s7 + $0x50c] sm:$0xf] }
 0x2ef   : > { %3037 = vmatpush.bf16.msrb.mxu3 %v4370_v56  ;;  %v3970_v56 = vor.u32 %v4587_v46, %v3967_v23  ;;  %v6373_v46 = vld [vmem:[#allocation25_spill] sm:$0xff] }
 0x2f1   : > { %2891 = vmatpush.bf16.msrb.mxu0 %v3970_v56 }
 0x2f2   : > { %v2616_v53 = vpop.f32.mrf.mxu2 }
 0x2f3   : > { %v2617_v5 = vadd.f32 %v2616_v53, %v2568_v12  ;;  %v2665_v33 = vpop.f32.mrf.mxu3  ;;  %v2521_v3 = vpop.f32.mrf.mxu0 }
 0x2f4   : > { %v2570_v6 = vpop.f32.mrf.mxu1 }
 0x2f5   : > { %v5851_v19 = vadd.f32 %v2665_v33, %v2617_v5  ;;  %v2571_v26 = vadd.f32 %v2570_v6, %v2521_v3 }
 0x2f6   : > { %2716 = vmatmul.bf16.gmra.mxu0 %v5439_v44  ;;  %2765 = vmatmul.bf16.gmra.mxu1 %v5441_v52 }
 0x2f7   : > { %2814 = vmatmul.bf16.gmra.mxu2 %v6364_v24 }
 0x2f8   : > { %2863 = vmatmul.bf16.gmra.mxu3 %v6365_v55 }
 0x2fa   : > { %v2619_v30 = vpop.f32.mrf.mxu2 }
 0x2fb   : > { %v2620_v16 = vadd.f32 %v2619_v30, %v2571_v26  ;;  %v2668_v34 = vpop.f32.mrf.mxu3  ;;  %v2523_v51 = vpop.f32.mrf.mxu0  ;;  %v4351_v30 = vld [vmem:[%s4968_s7 + $0x518] sm:$0xf0] }
 0x2fc   : > { %v2572_v12 = vpop.f32.mrf.mxu1 }
 0x2fd   : > { %v5863_v24 = vadd.f32 %v2668_v34, %v2620_v16  ;;  %v2573_v55 = vadd.f32 %v2572_v12, %v2523_v51  ;;  %v4354_v16 = vor.u32 %v4683_v15, %v4351_v30 }
 0x2ff   : > { %3038 = vmatpush.bf16.msrb.mxu3 %v4354_v16 }
 0x302   : > { %v2621_v53 = vpop.f32.mrf.mxu2 }
 0x303   : > { %v2622_v5 = vadd.f32 %v2621_v53, %v2573_v55  ;;  %v2670_v33 = vpop.f32.mrf.mxu3  ;;  %v2526_v3 = vpop.f32.mrf.mxu0 }
 0x304   : > { %v2575_v6 = vpop.f32.mrf.mxu1 }
 0x305   : > { %v5867_v26 = vadd.f32 %v2670_v33, %v2622_v5  ;;  %v2576_v29 = vadd.f32 %v2575_v6, %v2526_v3 }
 0x306   : > { %2721 = vmatmul.bf16.gmra.mxu0 %v5463_v13  ;;  %2770 = vmatmul.bf16.gmra.mxu1 %v5465_v18 }
 0x307   : > { %2819 = vmatmul.bf16.gmra.mxu2 %v6366_v58 }
 0x308   : > { %2868 = vmatmul.bf16.gmra.mxu3 %v6367_v61 }
 0x30a   : > { %v2624_v43 = vpop.f32.mrf.mxu2 }
 0x30b   : > { %v2625_v34 = vadd.f32 %v2624_v43, %v2576_v29  ;;  %v2673_v51 = vpop.f32.mrf.mxu3  ;;  %v2528_v12 = vpop.f32.mrf.mxu0 }
 0x30c   : > { %v2577_v55 = vpop.f32.mrf.mxu1 }
 0x30d   : > { %v5879_v58 = vadd.f32 %v2673_v51, %v2625_v34  ;;  %v2578_v61 = vadd.f32 %v2577_v55, %v2528_v12 }
 0x312   : > { %v2626_v53 = vpop.f32.mrf.mxu2 }
 0x313   : > { %v2627_v5 = vadd.f32 %v2626_v53, %v2578_v61  ;;  %v2675_v33 = vpop.f32.mrf.mxu3  ;;  %v2531_v3 = vpop.f32.mrf.mxu0 }
 0x314   : > { %v2580_v6 = vpop.f32.mrf.mxu1 }
 0x315   : > { %v5883_v22 = vadd.f32 %v2675_v33, %v2627_v5  ;;  %v2581_v29 = vadd.f32 %v2580_v6, %v2531_v3 }
 0x316   : > { %2726 = vmatmul.bf16.gmra.mxu0 %v6372_v38  ;;  %2775 = vmatmul.bf16.gmra.mxu1 %v6373_v46 }
 0x317   : > { %2824 = vmatmul.bf16.gmra.mxu2 %v6368_v8  ;;  %v6375_v8 = vld [vmem:[#allocation27_spill] sm:$0xff] }
 0x318   : > { %2873 = vmatmul.bf16.gmra.mxu3 %v6369_v35 }
 0x31a   : > { %v2629_v62 = vpop.f32.mrf.mxu2 }
 0x31b   : > { %v2630_v23 = vadd.f32 %v2629_v62, %v2581_v29  ;;  %v2678_v15 = vpop.f32.mrf.mxu3  ;;  %v2533_v30 = vpop.f32.mrf.mxu0 }
 0x31c   : > { %v2582_v43 = vpop.f32.mrf.mxu1 }
 0x31d   : > { %v5889_v56 = vadd.f32 %v2678_v15, %v2630_v23  ;;  %v2583_v16 = vadd.f32 %v2582_v43, %v2533_v30 }
 0x322   : > { %v2631_v34 = vpop.f32.mrf.mxu2 }
 0x323   : > { %v2632_v51 = vadd.f32 %v2631_v34, %v2583_v16  ;;  %v2680_v12 = vpop.f32.mrf.mxu3  ;;  %v2536_v55 = vpop.f32.mrf.mxu0 }
 0x324   : > { %v2585_v61 = vpop.f32.mrf.mxu1 }
 0x325   : > { %v5891_v42 = vadd.f32 %v2680_v12, %v2632_v51  ;;  %v2586_v39 = vadd.f32 %v2585_v61, %v2536_v55  ;;  %v6377_v12 = vld [vmem:[#allocation7_spill] sm:$0xff] }
 0x326   : > { %2731 = vmatmul.bf16.gmra.mxu0 %v6374_v40  ;;  %2780 = vmatmul.bf16.gmra.mxu1 %v6375_v8 }
 0x327   : > { %2829 = vmatmul.bf16.gmra.mxu2 %v6370_v1  ;;  %v402_v1 = vld [vmem:[#allocation2 + $0xd8] sm:$0xff] }
 0x328   : > { %2878 = vmatmul.bf16.gmra.mxu3 %v6371_v50  ;;  %v6376_v50 = vld [vmem:[#allocation6_spill] sm:$0xff] }
 0x32a   : > { %v2634_v35 = vpop.f32.mrf.mxu2 }
 0x32b   : > { %v2635_v53 = vadd.f32 %v2634_v35, %v2586_v39  ;;  %v2683_v5 = vpop.f32.mrf.mxu3  ;;  %v2538_v33 = vpop.f32.mrf.mxu0 }
 0x32c   : > { %v2587_v3 = vpop.f32.mrf.mxu1 }
 0x32d   : > { %v5897_v6 = vadd.f32 %v2683_v5, %v2635_v53  ;;  %v2588_v29 = vadd.f32 %v2587_v3, %v2538_v33  ;;  %v406_v33 = vld [vmem:[#allocation2 + $0x130] sm:$0xff] }
 0x332   : > { %v2636_v62 = vpop.f32.mrf.mxu2 }
 0x333   : > { %v2637_v23 = vadd.f32 %v2636_v62, %v2588_v29  ;;  %v2685_v15 = vpop.f32.mrf.mxu3  ;;  %v2697_v30 = vpop.f32.mrf.mxu0 }
 0x334   : > { %v2698_v43 = vadd.f32 %v2697_v30, %v5799_v21  ;;  %v2746_v16 = vpop.f32.mrf.mxu1 }
 0x335   : > { %v5900_v34 = vadd.f32 %v2685_v15, %v2637_v23 }
 0x336   : > { %v2747_v51 = vadd.f32 %v2746_v16, %v2698_v43  ;;  %2892 = vmatmul.bf16.vlgmr.msrb.gmra.mxu0 %v6376_v50  ;;  %2941 = vmatmul.bf16.vlgmr.msrb.gmra.mxu1 %v6377_v12  ;;  %v410_v43 = vld [vmem:[#allocation2 + $0x118] sm:$0xff] }
 0x337   : > { %2990 = vmatmul.bf16.vlgmr.msrb.gmra.mxu2 %v5345_v45 }
 0x338   : > { %v3082_v55 = vadd.f32 %v2747_v51, %v402_v1  ;;  %3039 = vmatmul.bf16.vlgmr.msrb.gmra.mxu3 %v5347_v47  ;;  %v6378_v1 = vld [vmem:[#allocation10_spill] sm:$0xff] }
 0x33a   : > { %3146 = vst [vmem:[#allocation2 + $0xd8] sm:$0xff] %v3082_v55  ;;  %v2795_v61 = vpop.f32.mrf.mxu2 }
 0x33b   : > { %v2844_v39 = vpop.f32.mrf.mxu3  ;;  %v2699_v35 = vpop.f32.mrf.mxu0 }
 0x33c   : > { %v5906_v53 = vadd.f32 %v2844_v39, %v2795_v61  ;;  %v2700_v21 = vadd.f32 %v2699_v35, %v5803_v2  ;;  %v2748_v5 = vpop.f32.mrf.mxu1  ;;  %v414_v39 = vld [vmem:[#allocation2 + $0x108] sm:$0xff] }
 0x33e   : > { %v2749_v3 = vadd.f32 %v2748_v5, %v2700_v21 }
 0x340   : > { %v3086_v29 = vadd.f32 %v2749_v3, %v406_v33 }
 0x342   : > { %3150 = vst [vmem:[#allocation2 + $0x130] sm:$0xff] %v3086_v29  ;;  %v2797_v62 = vpop.f32.mrf.mxu2  ;;  %v418_v29 = vld [vmem:[#allocation2 + $0x138] sm:$0xff] }
 0x343   : > { %v2846_v23 = vpop.f32.mrf.mxu3  ;;  %v2702_v15 = vpop.f32.mrf.mxu0 }
 0x344   : > { %v5909_v45 = vadd.f32 %v2846_v23, %v2797_v62  ;;  %v2703_v47 = vadd.f32 %v2702_v15, %v5815_v9  ;;  %v2751_v30 = vpop.f32.mrf.mxu1 }
 0x346   : > { %v2752_v16 = vadd.f32 %v2751_v30, %v2703_v47  ;;  %2897 = vmatmul.bf16.gmra.mxu0 %v5157_v11  ;;  %2946 = vmatmul.bf16.gmra.mxu1 %v6378_v1 }
 0x347   : > { %2995 = vmatmul.bf16.gmra.mxu2 %v5367_v41 }
 0x348   : > { %v3090_v2 = vadd.f32 %v2752_v16, %v410_v43  ;;  %3044 = vmatmul.bf16.gmra.mxu3 %v5369_v48  ;;  %v422_v16 = vld [vmem:[#allocation2 + $0x1b8] sm:$0xff] }
 0x34a   : > { %3154 = vst [vmem:[#allocation2 + $0x118] sm:$0xff] %v3090_v2  ;;  %v2800_v51 = vpop.f32.mrf.mxu2 }
 0x34b   : > { %v2849_v50 = vpop.f32.mrf.mxu3  ;;  %v2704_v12 = vpop.f32.mrf.mxu0 }
 0x34c   : > { %v5916_v55 = vadd.f32 %v2849_v50, %v2800_v51  ;;  %v2705_v9 = vadd.f32 %v2704_v12, %v5819_v14  ;;  %v2753_v61 = vpop.f32.mrf.mxu1  ;;  %v426_v12 = vld [vmem:[#allocation2 + $0x160] sm:$0xff] }
 0x34e   : > { %v2754_v35 = vadd.f32 %v2753_v61, %v2705_v9 }
 0x350   : > { %v3094_v21 = vadd.f32 %v2754_v35, %v414_v39 }
 0x352   : > { %3158 = vst [vmem:[#allocation2 + $0x108] sm:$0xff] %v3094_v21  ;;  %v2802_v11 = vpop.f32.mrf.mxu2 }
 0x353   : > { %v2851_v5 = vpop.f32.mrf.mxu3  ;;  %v2707_v33 = vpop.f32.mrf.mxu0 }
 0x354   : > { %v5919_v41 = vadd.f32 %v2851_v5, %v2802_v11  ;;  %v2708_v48 = vadd.f32 %v2707_v33, %v5831_v10  ;;  %v2756_v3 = vpop.f32.mrf.mxu1  ;;  %v430_v5 = vld [vmem:[#allocation2 + $0xf0] sm:$0xff] }
 0x356   : > { %v2757_v62 = vadd.f32 %v2756_v3, %v2708_v48  ;;  %2902 = vmatmul.bf16.gmra.mxu0 %v5185_v36  ;;  %2951 = vmatmul.bf16.gmra.mxu1 %v5187_v37 }
 0x357   : > { %3000 = vmatmul.bf16.gmra.mxu2 %v5391_v49 }
 0x358   : > { %v3098_v14 = vadd.f32 %v2757_v62, %v418_v29  ;;  %3049 = vmatmul.bf16.gmra.mxu3 %v5393_v54  ;;  %v434_v62 = vld [vmem:[#allocation2 + $0x100] sm:$0xff] }
 0x35a   : > { %3162 = vst [vmem:[#allocation2 + $0x138] sm:$0xff] %v3098_v14  ;;  %v2805_v23 = vpop.f32.mrf.mxu2 }
 0x35b   : > { %v2854_v15 = vpop.f32.mrf.mxu3  ;;  %v2709_v47 = vpop.f32.mrf.mxu0 }
 0x35c   : > { %v5926_v30 = vadd.f32 %v2854_v15, %v2805_v23  ;;  %v2710_v10 = vadd.f32 %v2709_v47, %v5835_v25  ;;  %v2758_v43 = vpop.f32.mrf.mxu1 }
 0x35e   : > { %v2759_v1 = vadd.f32 %v2758_v43, %v2710_v10 }
 0x360   : > { %v3102_v2 = vadd.f32 %v2759_v1, %v422_v16  ;;  %v438_v16 = vld [vmem:[#allocation2 + $0x20] sm:$0xff] }
 0x362   : > { %3166 = vst [vmem:[#allocation2 + $0x1b8] sm:$0xff] %v3102_v2  ;;  %v2807_v36 = vpop.f32.mrf.mxu2 }
 0x363   : > { %v2856_v37 = vpop.f32.mrf.mxu3  ;;  %v2712_v51 = vpop.f32.mrf.mxu0 }
 0x364   : > { %v5929_v49 = vadd.f32 %v2856_v37, %v2807_v36  ;;  %v2713_v54 = vadd.f32 %v2712_v51, %v5847_v57  ;;  %v2761_v50 = vpop.f32.mrf.mxu1  ;;  %v442_v51 = vld [vmem:[#allocation2 + $0xe8] sm:$0xff] }
 0x366   : > { %v2762_v9 = vadd.f32 %v2761_v50, %v2713_v54  ;;  %2907 = vmatmul.bf16.gmra.mxu0 %v5213_v63  ;;  %2956 = vmatmul.bf16.gmra.mxu1 %v5215_v0 }
 0x367   : > { %3005 = vmatmul.bf16.gmra.mxu2 %v5415_v4 }
 0x368   : > { %v3106_v25 = vadd.f32 %v2762_v9, %v426_v12  ;;  %3054 = vmatmul.bf16.gmra.mxu3 %v5417_v17 }
 0x36a   : > { %3170 = vst [vmem:[#allocation2 + $0x160] sm:$0xff] %v3106_v25  ;;  %v2810_v61 = vpop.f32.mrf.mxu2 }
 0x36b   : > { %v2859_v39 = vpop.f32.mrf.mxu3  ;;  %v2714_v35 = vpop.f32.mrf.mxu0 }
 0x36c   : > { %v5936_v21 = vadd.f32 %v2859_v39, %v2810_v61  ;;  %v2715_v57 = vadd.f32 %v2714_v35, %v5851_v19  ;;  %v2763_v11 = vpop.f32.mrf.mxu1  ;;  %v446_v39 = vld [vmem:[#allocation2 + $0x1d8] sm:$0xff] }
 0x36e   : > { %v2764_v33 = vadd.f32 %v2763_v11, %v2715_v57 }
 0x370   : > { %v3110_v48 = vadd.f32 %v2764_v33, %v430_v5  ;;  %v450_v33 = vld [vmem:[#allocation2 + $0xa8] sm:$0xff] }
 0x372   : > { %3174 = vst [vmem:[#allocation2 + $0xf0] sm:$0xff] %v3110_v48  ;;  %v2812_v63 = vpop.f32.mrf.mxu2 }
 0x373   : > { %v2861_v0 = vpop.f32.mrf.mxu3  ;;  %v2717_v3 = vpop.f32.mrf.mxu0 }
 0x374   : > { %v5939_v4 = vadd.f32 %v2861_v0, %v2812_v63  ;;  %v2718_v17 = vadd.f32 %v2717_v3, %v5863_v24  ;;  %v2766_v29 = vpop.f32.mrf.mxu1 }
 0x376   : > { %v2767_v14 = vadd.f32 %v2766_v29, %v2718_v17  ;;  %2912 = vmatmul.bf16.gmra.mxu0 %v5241_v27  ;;  %2961 = vmatmul.bf16.gmra.mxu1 %v5243_v28 }
 0x377   : > { %3010 = vmatmul.bf16.gmra.mxu2 %v5439_v44 }
 0x378   : > { %v3114_v19 = vadd.f32 %v2767_v14, %v434_v62  ;;  %3059 = vmatmul.bf16.gmra.mxu3 %v5441_v52  ;;  %v454_v62 = vld [vmem:[#allocation2 + $0x68] sm:$0xff] }
 0x37a   : > { %3178 = vst [vmem:[#allocation2 + $0x100] sm:$0xff] %v3114_v19  ;;  %v2815_v23 = vpop.f32.mrf.mxu2 }
 0x37b   : > { %v2864_v15 = vpop.f32.mrf.mxu3  ;;  %v2719_v47 = vpop.f32.mrf.mxu0 }
 0x37c   : > { %v5946_v10 = vadd.f32 %v2864_v15, %v2815_v23  ;;  %v2720_v24 = vadd.f32 %v2719_v47, %v5867_v26  ;;  %v2768_v43 = vpop.f32.mrf.mxu1  ;;  %v458_v47 = vld [vmem:[#allocation2 + $0xc0] sm:$0xff] }
 0x37e   : > { %v2769_v1 = vadd.f32 %v2768_v43, %v2720_v24 }
 0x380   : > { %v3118_v2 = vadd.f32 %v2769_v1, %v438_v16 }
 0x382   : > { %3182 = vst [vmem:[#allocation2 + $0x20] sm:$0xff] %v3118_v2  ;;  %v2817_v27 = vpop.f32.mrf.mxu2 }
 0x383   : > { %v2866_v28 = vpop.f32.mrf.mxu3  ;;  %v2722_v36 = vpop.f32.mrf.mxu0 }
 0x384   : > { %v5949_v44 = vadd.f32 %v2866_v28, %v2817_v27  ;;  %v2723_v52 = vadd.f32 %v2722_v36, %v5879_v58  ;;  %v2771_v37 = vpop.f32.mrf.mxu1  ;;  %v462_v28 = vld [vmem:[#allocation2 + $0x58] sm:$0xff] }
 0x386   : > { %v2772_v54 = vadd.f32 %v2771_v37, %v2723_v52  ;;  %2917 = vmatmul.bf16.gmra.mxu0 %v5269_v59  ;;  %2966 = vmatmul.bf16.gmra.mxu1 %v5271_v60 }
 0x387   : > { %3015 = vmatmul.bf16.gmra.mxu2 %v5463_v13 }
 0x388   : > { %v3122_v26 = vadd.f32 %v2772_v54, %v442_v51  ;;  %3064 = vmatmul.bf16.gmra.mxu3 %v5465_v18 }
 0x38a   : > { %3186 = vst [vmem:[#allocation2 + $0xe8] sm:$0xff] %v3122_v26  ;;  %v2820_v50 = vpop.f32.mrf.mxu2 }
 0x38b   : > { %v2869_v12 = vpop.f32.mrf.mxu3  ;;  %v2724_v9 = vpop.f32.mrf.mxu0 }
 0x38c   : > { %v5956_v25 = vadd.f32 %v2869_v12, %v2820_v50  ;;  %v2725_v58 = vadd.f32 %v2724_v9, %v5883_v22  ;;  %v2773_v61 = vpop.f32.mrf.mxu1 }
 0x38e   : > { %v2774_v35 = vadd.f32 %v2773_v61, %v2725_v58  ;;  %v403_v58 = vld [vmem:[#allocation2 + $0x18] sm:$0xff] }
 0x390   : > { %v3126_v57 = vadd.f32 %v2774_v35, %v446_v39 }
 0x392   : > { %3190 = vst [vmem:[#allocation2 + $0x1d8] sm:$0xff] %v3126_v57  ;;  %v2822_v59 = vpop.f32.mrf.mxu2 }
 0x393   : > { %v2871_v60 = vpop.f32.mrf.mxu3  ;;  %v2727_v11 = vpop.f32.mrf.mxu0 }
 0x394   : > { %v5959_v13 = vadd.f32 %v2871_v60, %v2822_v59  ;;  %v2728_v18 = vadd.f32 %v2727_v11, %v5889_v56  ;;  %v2776_v5 = vpop.f32.mrf.mxu1 }
 0x396   : > { %v2777_v48 = vadd.f32 %v2776_v5, %v2728_v18  ;;  %2922 = vmatmul.bf16.gmra.mxu0 %v5297_v31  ;;  %2971 = vmatmul.bf16.gmra.mxu1 %v5299_v32  ;;  %v407_v5 = vld [vmem:[#allocation2 + $0x48] sm:$0xff] }
 0x397   : > { %3020 = vmatmul.bf16.gmra.mxu2 %v6372_v38 }
 0x398   : > { %v3130_v22 = vadd.f32 %v2777_v48, %v450_v33  ;;  %3069 = vmatmul.bf16.gmra.mxu3 %v6373_v46 }
 0x39a   : > { %3194 = vst [vmem:[#allocation2 + $0xa8] sm:$0xff] %v3130_v22  ;;  %v2825_v63 = vpop.f32.mrf.mxu2 }
 0x39b   : > { %v2874_v0 = vpop.f32.mrf.mxu3  ;;  %v2729_v3 = vpop.f32.mrf.mxu0 }
 0x39c   : > { %v5966_v17 = vadd.f32 %v2874_v0, %v2825_v63  ;;  %v2730_v56 = vadd.f32 %v2729_v3, %v5891_v42  ;;  %v2778_v29 = vpop.f32.mrf.mxu1 }
 0x39e   : > { %v2779_v14 = vadd.f32 %v2778_v29, %v2730_v56 }
 0x3a0   : > { %v3134_v19 = vadd.f32 %v2779_v14, %v454_v62 }
 0x3a2   : > { %3198 = vst [vmem:[#allocation2 + $0x68] sm:$0xff] %v3134_v19  ;;  %v2827_v31 = vpop.f32.mrf.mxu2 }
 0x3a3   : > { %v2876_v32 = vpop.f32.mrf.mxu3  ;;  %v2732_v23 = vpop.f32.mrf.mxu0 }
 0x3a4   : > { %v5969_v38 = vadd.f32 %v2876_v32, %v2827_v31  ;;  %v2733_v46 = vadd.f32 %v2732_v23, %v5897_v6  ;;  %v2781_v15 = vpop.f32.mrf.mxu1 }
 0x3a6   : > { %v2782_v24 = vadd.f32 %v2781_v15, %v2733_v46  ;;  %2927 = vmatmul.bf16.gmra.mxu0 %v5325_v7  ;;  %2976 = vmatmul.bf16.gmra.mxu1 %v6353_v20 }
 0x3a7   : > { %3025 = vmatmul.bf16.gmra.mxu2 %v6374_v40 }
 0x3a8   : > { %v3138_v42 = vadd.f32 %v2782_v24, %v458_v47  ;;  %3074 = vmatmul.bf16.gmra.mxu3 %v6375_v8 }
 0x3aa   : > { %3202 = vst [vmem:[#allocation2 + $0xc0] sm:$0xff] %v3138_v42  ;;  %v2830_v43 = vpop.f32.mrf.mxu2 }
 0x3ab   : > { %v2879_v16 = vpop.f32.mrf.mxu3  ;;  %v2734_v1 = vpop.f32.mrf.mxu0 }
 0x3ac   : > { %v5976_v2 = vadd.f32 %v2879_v16, %v2830_v43  ;;  %v2735_v6 = vadd.f32 %v2734_v1, %v5900_v34  ;;  %v2783_v27 = vpop.f32.mrf.mxu1 }
 0x3ae   : > { %v2784_v36 = vadd.f32 %v2783_v27, %v2735_v6 }
 0x3b0   : > { %v3142_v52 = vadd.f32 %v2784_v36, %v462_v28 }
 0x3b2   : > { %3206 = vst [vmem:[#allocation2 + $0x58] sm:$0xff] %v3142_v52  ;;  %v2832_v7 = vpop.f32.mrf.mxu2 }
 0x3b3   : > { %v2881_v20 = vpop.f32.mrf.mxu3  ;;  %v2893_v37 = vpop.f32.mrf.mxu0 }
 0x3b4   : > { %v5979_v40 = vadd.f32 %v2881_v20, %v2832_v7  ;;  %v2942_v51 = vpop.f32.mrf.mxu1  ;;  %v2894_v8 = vadd.f32 %v2893_v37, %v5906_v53 }
 0x3b6   : > { %v2943_v54 = vadd.f32 %v2942_v51, %v2894_v8 }
 0x3ba   : > { %v2991_v26 = vpop.f32.mrf.mxu2 }
 0x3bb   : > { %v2992_v50 = vadd.f32 %v2991_v26, %v2943_v54  ;;  %v3040_v12 = vpop.f32.mrf.mxu3  ;;  %v2895_v9 = vpop.f32.mrf.mxu0 }
 0x3bc   : > { %v2944_v34 = vpop.f32.mrf.mxu1  ;;  %v2896_v39 = vadd.f32 %v2895_v9, %v5909_v45  ;;  %v411_v45 = vld [vmem:[#allocation2 + $0x98] sm:$0xff] }
 0x3bd   : > { %v3041_v61 = vadd.f32 %v3040_v12, %v2992_v50 }
 0x3be   : > { %v2945_v57 = vadd.f32 %v2944_v34, %v2896_v39 }
 0x3bf   : > { %v3083_v35 = vadd.f32 %v3041_v61, %v403_v58 }
 0x3c1   : > { %3147 = vst [vmem:[#allocation2 + $0x18] sm:$0xff] %v3083_v35 }
 0x3c2   : > { %v2993_v59 = vpop.f32.mrf.mxu2 }
 0x3c3   : > { %v2994_v60 = vadd.f32 %v2993_v59, %v2945_v57  ;;  %v3042_v11 = vpop.f32.mrf.mxu3  ;;  %v2898_v18 = vpop.f32.mrf.mxu0 }
 0x3c4   : > { %v2947_v33 = vpop.f32.mrf.mxu1  ;;  %v2899_v48 = vadd.f32 %v2898_v18, %v5916_v55  ;;  %v415_v55 = vld [vmem:[#allocation2 + $0x60] sm:$0xff] }
 0x3c5   : > { %v3043_v53 = vadd.f32 %v3042_v11, %v2994_v60 }
 0x3c6   : > { %v2948_v63 = vadd.f32 %v2947_v33, %v2899_v48 }
 0x3c7   : > { %v3087_v22 = vadd.f32 %v3043_v53, %v407_v5 }
 0x3c9   : > { %3151 = vst [vmem:[#allocation2 + $0x48] sm:$0xff] %v3087_v22 }
 0x3ca   : > { %v2996_v0 = vpop.f32.mrf.mxu2 }
 0x3cb   : > { %v2997_v3 = vadd.f32 %v2996_v0, %v2948_v63  ;;  %v3045_v56 = vpop.f32.mrf.mxu3  ;;  %v2900_v29 = vpop.f32.mrf.mxu0 }
 0x3cc   : > { %v2949_v62 = vpop.f32.mrf.mxu1  ;;  %v2901_v19 = vadd.f32 %v2900_v29, %v5919_v41  ;;  %v419_v41 = vld [vmem:[#allocation2 + $0x140] sm:$0xff] }
 0x3cd   : > { %v3046_v14 = vadd.f32 %v3045_v56, %v2997_v3 }
 0x3ce   : > { %v2950_v32 = vadd.f32 %v2949_v62, %v2901_v19 }
 0x3cf   : > { %v3091_v31 = vadd.f32 %v3046_v14, %v411_v45 }
 0x3d1   : > { %3155 = vst [vmem:[#allocation2 + $0x98] sm:$0xff] %v3091_v31 }
 0x3d2   : > { %v2998_v23 = vpop.f32.mrf.mxu2 }
 0x3d3   : > { %v2999_v46 = vadd.f32 %v2998_v23, %v2950_v32  ;;  %v3047_v15 = vpop.f32.mrf.mxu3  ;;  %v2903_v47 = vpop.f32.mrf.mxu0 }
 0x3d4   : > { %v2952_v24 = vpop.f32.mrf.mxu1  ;;  %v2904_v43 = vadd.f32 %v2903_v47, %v5926_v30  ;;  %v423_v30 = vld [vmem:[#allocation2 + $0x28] sm:$0xff] }
 0x3d5   : > { %v3048_v42 = vadd.f32 %v3047_v15, %v2999_v46 }
 0x3d6   : > { %v2953_v1 = vadd.f32 %v2952_v24, %v2904_v43 }
 0x3d7   : > { %v3095_v16 = vadd.f32 %v3048_v42, %v415_v55 }
 0x3d9   : > { %3159 = vst [vmem:[#allocation2 + $0x60] sm:$0xff] %v3095_v16 }
 0x3da   : > { %v3001_v6 = vpop.f32.mrf.mxu2 }
 0x3db   : > { %v3002_v27 = vadd.f32 %v3001_v6, %v2953_v1  ;;  %v3050_v28 = vpop.f32.mrf.mxu3  ;;  %v2905_v36 = vpop.f32.mrf.mxu0 }
 0x3dc   : > { %v2954_v52 = vpop.f32.mrf.mxu1  ;;  %v2906_v20 = vadd.f32 %v2905_v36, %v5929_v49  ;;  %v427_v49 = vld [vmem:[#allocation2 + $0x30] sm:$0xff] }
 0x3dd   : > { %v3051_v7 = vadd.f32 %v3050_v28, %v3002_v27 }
 0x3de   : > { %v2955_v51 = vadd.f32 %v2954_v52, %v2906_v20 }
 0x3df   : > { %v3099_v37 = vadd.f32 %v3051_v7, %v419_v41 }
 0x3e1   : > { %3163 = vst [vmem:[#allocation2 + $0x140] sm:$0xff] %v3099_v37 }
 0x3e2   : > { %v3003_v8 = vpop.f32.mrf.mxu2 }
 0x3e3   : > { %v3004_v54 = vadd.f32 %v3003_v8, %v2955_v51  ;;  %v3052_v26 = vpop.f32.mrf.mxu3  ;;  %v2908_v50 = vpop.f32.mrf.mxu0 }
 0x3e4   : > { %v2957_v12 = vpop.f32.mrf.mxu1  ;;  %v2909_v58 = vadd.f32 %v2908_v50, %v5936_v21  ;;  %v431_v21 = vld [vmem:[#allocation2 + $0x8] sm:$0xff] }
 0x3e5   : > { %v3053_v9 = vadd.f32 %v3052_v26, %v3004_v54 }
 0x3e6   : > { %v2958_v61 = vadd.f32 %v2957_v12, %v2909_v58 }
 0x3e7   : > { %v3103_v34 = vadd.f32 %v3053_v9, %v423_v30 }
 0x3e9   : > { %3167 = vst [vmem:[#allocation2 + $0x28] sm:$0xff] %v3103_v34 }
 0x3ea   : > { %v3006_v39 = vpop.f32.mrf.mxu2 }
 0x3eb   : > { %v3007_v35 = vadd.f32 %v3006_v39, %v2958_v61  ;;  %v3055_v57 = vpop.f32.mrf.mxu3  ;;  %v2910_v59 = vpop.f32.mrf.mxu0 }
 0x3ec   : > { %v2959_v60 = vpop.f32.mrf.mxu1  ;;  %v2911_v18 = vadd.f32 %v2910_v59, %v5939_v4  ;;  %v435_v4 = vld [vmem:[#allocation2 + $0xc8] sm:$0xff] }
 0x3ed   : > { %v3056_v11 = vadd.f32 %v3055_v57, %v3007_v35 }
 0x3ee   : > { %v2960_v33 = vadd.f32 %v2959_v60, %v2911_v18 }
 0x3ef   : > { %v3107_v5 = vadd.f32 %v3056_v11, %v427_v49 }
 0x3f1   : > { %3171 = vst [vmem:[#allocation2 + $0x30] sm:$0xff] %v3107_v5 }
 0x3f2   : > { %v3008_v53 = vpop.f32.mrf.mxu2 }
 0x3f3   : > { %v3009_v48 = vadd.f32 %v3008_v53, %v2960_v33  ;;  %v3057_v22 = vpop.f32.mrf.mxu3  ;;  %v2913_v63 = vpop.f32.mrf.mxu0 }
 0x3f4   : > { %v2962_v0 = vpop.f32.mrf.mxu1  ;;  %v2914_v56 = vadd.f32 %v2913_v63, %v5946_v10  ;;  %v439_v10 = vld [vmem:[#allocation2 + $0x128] sm:$0xff] }
 0x3f5   : > { %v3058_v3 = vadd.f32 %v3057_v22, %v3009_v48 }
 0x3f6   : > { %v2963_v45 = vadd.f32 %v2962_v0, %v2914_v56 }
 0x3f7   : > { %v3111_v29 = vadd.f32 %v3058_v3, %v431_v21 }
 0x3f9   : > { %3175 = vst [vmem:[#allocation2 + $0x8] sm:$0xff] %v3111_v29 }
 0x3fa   : > { %v3011_v62 = vpop.f32.mrf.mxu2 }
 0x3fb   : > { %v3012_v14 = vadd.f32 %v3011_v62, %v2963_v45  ;;  %v3060_v19 = vpop.f32.mrf.mxu3  ;;  %v2915_v31 = vpop.f32.mrf.mxu0 }
 0x3fc   : > { %v2964_v32 = vpop.f32.mrf.mxu1  ;;  %v2916_v46 = vadd.f32 %v2915_v31, %v5949_v44  ;;  %v443_v44 = vld [vmem:[#allocation2 + $0x78] sm:$0xff] }
 0x3fd   : > { %v3061_v23 = vadd.f32 %v3060_v19, %v3012_v14 }
 0x3fe   : > { %v2965_v47 = vadd.f32 %v2964_v32, %v2916_v46 }
 0x3ff   : > { %v3115_v15 = vadd.f32 %v3061_v23, %v435_v4 }
 0x401   : > { %3179 = vst [vmem:[#allocation2 + $0xc8] sm:$0xff] %v3115_v15 }
 0x402   : > { %v3013_v55 = vpop.f32.mrf.mxu2 }
 0x403   : > { %v3014_v24 = vadd.f32 %v3013_v55, %v2965_v47  ;;  %v3062_v42 = vpop.f32.mrf.mxu3  ;;  %v2918_v43 = vpop.f32.mrf.mxu0  ;;  %v463_v55 = vld [vmem:[#allocation2 + $0xa0] sm:$0xff] }
 0x404   : > { %v2967_v16 = vpop.f32.mrf.mxu1  ;;  %v2919_v6 = vadd.f32 %v2918_v43, %v5956_v25  ;;  %v447_v25 = vld [vmem:[#allocation2 + $0xd0] sm:$0xff] }
 0x405   : > { %v3063_v1 = vadd.f32 %v3062_v42, %v3014_v24 }
 0x406   : > { %v2968_v28 = vadd.f32 %v2967_v16, %v2919_v6 }
 0x407   : > { %v3119_v27 = vadd.f32 %v3063_v1, %v439_v10 }
 0x409   : > { %3183 = vst [vmem:[#allocation2 + $0x128] sm:$0xff] %v3119_v27 }
 0x40a   : > { %v3016_v36 = vpop.f32.mrf.mxu2 }
 0x40b   : > { %v3017_v41 = vadd.f32 %v3016_v36, %v2968_v28  ;;  %v3065_v52 = vpop.f32.mrf.mxu3  ;;  %v2920_v7 = vpop.f32.mrf.mxu0 }
 0x40c   : > { %v2969_v20 = vpop.f32.mrf.mxu1  ;;  %v2921_v51 = vadd.f32 %v2920_v7, %v5959_v13  ;;  %v451_v13 = vld [vmem:[#allocation2 + $0x1c8] sm:$0xff] }
 0x40d   : > { %v3066_v37 = vadd.f32 %v3065_v52, %v3017_v41 }
 0x40e   : > { %v2970_v54 = vadd.f32 %v2969_v20, %v2921_v51 }
 0x40f   : > { %v3123_v8 = vadd.f32 %v3066_v37, %v443_v44 }
 0x411   : > { %3187 = vst [vmem:[#allocation2 + $0x78] sm:$0xff] %v3123_v8 }
 0x412   : > { %v3018_v26 = vpop.f32.mrf.mxu2 }
 0x413   : > { %v3019_v50 = vadd.f32 %v3018_v26, %v2970_v54  ;;  %v3067_v30 = vpop.f32.mrf.mxu3  ;;  %v2923_v12 = vpop.f32.mrf.mxu0 }
 0x414   : > { %v2972_v9 = vpop.f32.mrf.mxu1  ;;  %v2924_v34 = vadd.f32 %v2923_v12, %v5966_v17  ;;  %v455_v17 = vld [vmem:[#allocation2 + $0x190] sm:$0xff] }
 0x415   : > { %v3068_v58 = vadd.f32 %v3067_v30, %v3019_v50 }
 0x416   : > { %v2973_v39 = vadd.f32 %v2972_v9, %v2924_v34 }
 0x417   : > { %v3127_v61 = vadd.f32 %v3068_v58, %v447_v25 }
 0x419   : > { %3191 = vst [vmem:[#allocation2 + $0xd0] sm:$0xff] %v3127_v61 }
 0x41a   : > { %v3021_v35 = vpop.f32.mrf.mxu2 }
 0x41b   : > { %v3022_v57 = vadd.f32 %v3021_v35, %v2973_v39  ;;  %v3070_v59 = vpop.f32.mrf.mxu3  ;;  %v2925_v49 = vpop.f32.mrf.mxu0 }
 0x41c   : > { %v2974_v60 = vpop.f32.mrf.mxu1  ;;  %v2926_v18 = vadd.f32 %v2925_v49, %v5969_v38  ;;  %v459_v38 = vld [vmem:[#allocation2 + $0x1c0] sm:$0xff] }
 0x41d   : > { %v3071_v11 = vadd.f32 %v3070_v59, %v3022_v57 }
 0x41e   : > { %v2975_v33 = vadd.f32 %v2974_v60, %v2926_v18 }
 0x41f   : > { %v3131_v5 = vadd.f32 %v3071_v11, %v451_v13 }
 0x421   : > { %3195 = vst [vmem:[#allocation2 + $0x1c8] sm:$0xff] %v3131_v5 }
 0x422   : > { %v3023_v53 = vpop.f32.mrf.mxu2 }
 0x423   : > { %v3024_v48 = vadd.f32 %v3023_v53, %v2975_v33  ;;  %v3072_v22 = vpop.f32.mrf.mxu3  ;;  %v2928_v63 = vpop.f32.mrf.mxu0 }
 0x424   : > { %v2929_v0 = vadd.f32 %v2928_v63, %v5976_v2  ;;  %v2977_v3 = vpop.f32.mrf.mxu1 }
 0x425   : > { %v3073_v21 = vadd.f32 %v3072_v22, %v3024_v48 }
 0x426   : > { %v2978_v29 = vadd.f32 %v2977_v3, %v2929_v0 }
 0x427   : > { %v3135_v56 = vadd.f32 %v3073_v21, %v455_v17 }
 0x429   : > { %3199 = vst [vmem:[#allocation2 + $0x190] sm:$0xff] %v3135_v56 }
 0x42a   : > { %v3026_v45 = vpop.f32.mrf.mxu2 }
 0x42b   : > { %v3027_v62 = vadd.f32 %v3026_v45, %v2978_v29  ;;  %v3075_v14 = vpop.f32.mrf.mxu3  ;;  %v2930_v19 = vpop.f32.mrf.mxu0 }
 0x42c   : > { %v2931_v4 = vadd.f32 %v2930_v19, %v5979_v40  ;;  %v2979_v23 = vpop.f32.mrf.mxu1 }
 0x42d   : > { %v3076_v31 = vadd.f32 %v3075_v14, %v3027_v62 }
 0x42e   : > { %v2980_v46 = vadd.f32 %v2979_v23, %v2931_v4 }
 0x42f   : > { %v3139_v32 = vadd.f32 %v3076_v31, %v459_v38 }
 0x431   : > { %3203 = vst [vmem:[#allocation2 + $0x1c0] sm:$0xff] %v3139_v32 }
 0x432   : > { %v3028_v15 = vpop.f32.mrf.mxu2 }
 0x433   : > { %v3029_v47 = vadd.f32 %v3028_v15, %v2980_v46  ;;  %v3077_v2 = vpop.f32.mrf.mxu3 }
 0x435   : > { %v3078_v24 = vadd.f32 %v3077_v2, %v3029_v47  ;;  %3211 = sbr.rel (%p4467_p11) target bundleno = 1151 (0x47f), region = 63 }
 0x437   : > { %v3143_v42 = vadd.f32 %v3078_v24, %v463_v55 }
 0x439   : > { %3207 = vst [vmem:[#allocation2 + $0xa0] sm:$0xff] %v3143_v42 }
 0x43a   : > { %v3212_v43 = vld [vmem:[#allocation2 + $0xb0] sm:$0xff]  ;;  %v3276_v10 = vld [vmem:[%s6282_s2] sm:$0xf]  ;;  %v3214_v6 = vld [vmem:[#allocation2 + $0xd8] sm:$0xff] }
 0x43b   : > { %v3213_v40 = vld [vmem:[#allocation2 + $0x1b0] sm:$0xff]  ;;  %v6001_v16 = vperm.slane %v3276_v10, 0  ;;  %v6003_v1 = vperm.slane %v3276_v10, 1  ;;  %v6005_v27 = vperm.slane %v3276_v10, 2  ;;  %v3215_v28 = vld [vmem:[#allocation2 + $0x18] sm:$0xff]  ;;  %v6007_v36 = vperm.slane %v3276_v10, 3 }
 0x43c   : > { %v3216_v41 = vld [vmem:[#allocation2 + $0x50] sm:$0xff]  ;;  %v3217_v20 = vld [vmem:[#allocation2 + $0x168] sm:$0xff]  ;;  %v3220_v50 = vld [vmem:[#allocation2 + $0x180] sm:$0xff] }
 0x43d   : > { %v3286_v52 = vadd.f32 %v6001_v16, %v3212_v43  ;;  %v3287_v7 = vadd.f32 %v6003_v1, %v3213_v40  ;;  %v3288_v44 = vadd.f32 %v6005_v27, %v3214_v6  ;;  %v3289_v37 = vadd.f32 %v6007_v36, %v3215_v28  ;;  %v3218_v51 = vld [vmem:[#allocation2 + $0x130] sm:$0xff]  ;;  %v3219_v54 = vld [vmem:[#allocation2 + $0x48] sm:$0xff]  ;;  %v3222_v9 = vld [vmem:[#allocation2 + $0x118] sm:$0xff] }
 0x43e   : > { %v3290_v8 = vadd.f32 %v6001_v16, %v3216_v41  ;;  %v3291_v26 = vadd.f32 %v6003_v1, %v3217_v20  ;;  %v3292_v30 = vadd.f32 %v6005_v27, %v3218_v51  ;;  %v3221_v12 = vld [vmem:[#allocation2 + $0x110] sm:$0xff]  ;;  %v3293_v25 = vadd.f32 %v6007_v36, %v3219_v54  ;;  %v3223_v34 = vld [vmem:[#allocation2 + $0x98] sm:$0xff]  ;;  %v3224_v39 = vld [vmem:[#allocation2 + $0x120] sm:$0xff] }
 0x43f   : > { %3350 = vst [vmem:[%s6283_s3] sm:$0xff] %v3286_v52  ;;  %v3294_v58 = vadd.f32 %v6001_v16, %v3220_v50  ;;  %v3295_v61 = vadd.f32 %v6003_v1, %v3221_v12  ;;  %v3296_v35 = vadd.f32 %v6005_v27, %v3222_v9  ;;  %v3225_v57 = vld [vmem:[#allocation2 + $0x150] sm:$0xff]  ;;  %v3297_v59 = vadd.f32 %v6007_v36, %v3223_v34  ;;  %v3226_v49 = vld [vmem:[#allocation2 + $0x108] sm:$0xff]  ;;  %v3227_v60 = vld [vmem:[#allocation2 + $0x60] sm:$0xff] }
 0x440   : > { %3351 = vst [vmem:[%s6283_s3 + $0x8] sm:$0xff] %v3287_v7  ;;  %v3298_v13 = vadd.f32 %v6001_v16, %v3224_v39  ;;  %v3299_v11 = vadd.f32 %v6003_v1, %v3225_v57  ;;  %v3228_v18 = vld [vmem:[#allocation2 + $0xe0] sm:$0xff]  ;;  %v3300_v5 = vadd.f32 %v6005_v27, %v3226_v49  ;;  %v3229_v33 = vld [vmem:[#allocation2 + $0x188] sm:$0xff]  ;;  %v3301_v53 = vadd.f32 %v6007_v36, %v3227_v60  ;;  %v3230_v48 = vld [vmem:[#allocation2 + $0x138] sm:$0xff] }
 0x441   : > { %3352 = vst [vmem:[%s6283_s3 + $0x10] sm:$0xff] %v3288_v44  ;;  %v3302_v22 = vadd.f32 %v6001_v16, %v3228_v18  ;;  %v3231_v63 = vld [vmem:[#allocation2 + $0x140] sm:$0xff]  ;;  %v3303_v17 = vadd.f32 %v6003_v1, %v3229_v33  ;;  %v3304_v0 = vadd.f32 %v6005_v27, %v3230_v48  ;;  %v3233_v3 = vld [vmem:[#allocation2 + $0x1a8] sm:$0xff]  ;;  %v3234_v29 = vld [vmem:[#allocation2 + $0x1b8] sm:$0xff] }
 0x442   : > { %3353 = vst [vmem:[%s6283_s3 + $0x18] sm:$0xff] %v3289_v37  ;;  %v3232_v21 = vld [vmem:[#allocation2 + $0x80] sm:$0xff]  ;;  %v3305_v56 = vadd.f32 %v6007_v36, %v3231_v63  ;;  %v3235_v62 = vld [vmem:[#allocation2 + $0x28] sm:$0xff]  ;;  %v3307_v14 = vadd.f32 %v6003_v1, %v3233_v3  ;;  %v3308_v38 = vadd.f32 %v6005_v27, %v3234_v29  ;;  %v3237_v31 = vld [vmem:[#allocation2 + $0xf8] sm:$0xff] }
 0x443   : > { %3354 = vst [vmem:[%s6283_s3 + $0x20] sm:$0xff] %v3290_v8  ;;  %v3306_v45 = vadd.f32 %v6001_v16, %v3232_v21  ;;  %v3236_v19 = vld [vmem:[#allocation2 + $0x1e8] sm:$0xff]  ;;  %v3309_v4 = vadd.f32 %v6007_v36, %v3235_v62  ;;  %v3238_v32 = vld [vmem:[#allocation2 + $0x160] sm:$0xff]  ;;  %v3239_v46 = vld [vmem:[#allocation2 + $0x30] sm:$0xff]  ;;  %v3311_v15 = vadd.f32 %v6003_v1, %v3237_v31 }
 0x444   : > { %3355 = vst [vmem:[%s6283_s3 + $0x28] sm:$0xff] %v3291_v26  ;;  %v3310_v23 = vadd.f32 %v6001_v16, %v3236_v19  ;;  %v3240_v47 = vld [vmem:[#allocation2 + $0x1e0] sm:$0xff]  ;;  %v3312_v55 = vadd.f32 %v6005_v27, %v3238_v32  ;;  %v3313_v24 = vadd.f32 %v6007_v36, %v3239_v46  ;;  %v3242_v42 = vld [vmem:[#allocation2 + $0xf0] sm:$0xff]  ;;  %v3243_v10 = vld [vmem:[#allocation2 + $0x8] sm:$0xff] }
 0x445   : > { %3356 = vst [vmem:[%s6283_s3 + $0x30] sm:$0xff] %v3292_v30  ;;  %v3241_v2 = vld [vmem:[#allocation2] sm:$0xff]  ;;  %v3314_v43 = vadd.f32 %v6001_v16, %v3240_v47  ;;  %v3244_v6 = vld [vmem:[#allocation2 + $0x148] sm:$0xff]  ;;  %v3316_v28 = vadd.f32 %v6005_v27, %v3242_v42  ;;  %v3245_v41 = vld [vmem:[#allocation2 + $0x1d0] sm:$0xff]  ;;  %v3317_v52 = vadd.f32 %v6007_v36, %v3243_v10 }
 0x446   : > { %3357 = vst [vmem:[%s6283_s3 + $0x38] sm:$0xff] %v3293_v25  ;;  %v3315_v40 = vadd.f32 %v6003_v1, %v3241_v2  ;;  %v3246_v7 = vld [vmem:[#allocation2 + $0x100] sm:$0xff]  ;;  %v3318_v44 = vadd.f32 %v6001_v16, %v3244_v6  ;;  %v3247_v20 = vld [vmem:[#allocation2 + $0xc8] sm:$0xff]  ;;  %v3319_v37 = vadd.f32 %v6003_v1, %v3245_v41  ;;  %v3249_v54 = vld [vmem:[#allocation2 + $0x1f8] sm:$0xff] }
 0x447   : > { %3358 = vst [vmem:[%s6283_s3 + $0x40] sm:$0xff] %v3294_v58  ;;  %v3248_v51 = vld [vmem:[#allocation2 + $0x40] sm:$0xff]  ;;  %v3320_v8 = vadd.f32 %v6005_v27, %v3246_v7  ;;  %v3321_v26 = vadd.f32 %v6007_v36, %v3247_v20  ;;  %v3251_v12 = vld [vmem:[#allocation2 + $0x128] sm:$0xff]  ;;  %v3323_v25 = vadd.f32 %v6003_v1, %v3249_v54  ;;  %v3253_v34 = vld [vmem:[#allocation2 + $0x1f0] sm:$0xff] }
 0x448   : > { %3359 = vst [vmem:[%s6283_s3 + $0x48] sm:$0xff] %v3295_v61  ;;  %v3250_v50 = vld [vmem:[#allocation2 + $0x20] sm:$0xff]  ;;  %v3322_v30 = vadd.f32 %v6001_v16, %v3248_v51  ;;  %v3325_v61 = vadd.f32 %v6007_v36, %v3251_v12  ;;  %v3254_v39 = vld [vmem:[#allocation2 + $0xe8] sm:$0xff]  ;;  %v3255_v57 = vld [vmem:[#allocation2 + $0x78] sm:$0xff] }
 0x449   : > { %3360 = vst [vmem:[%s6283_s3 + $0x50] sm:$0xff] %v3296_v35  ;;  %v3252_v9 = vld [vmem:[#allocation2 + $0x1a0] sm:$0xff]  ;;  %v3324_v58 = vadd.f32 %v6005_v27, %v3250_v50  ;;  %v3256_v49 = vld [vmem:[#allocation2 + $0x70] sm:$0xff]  ;;  %v3258_v18 = vld [vmem:[#allocation2 + $0x1d8] sm:$0xff] }
 0x44a   : > { %3361 = vst [vmem:[%s6283_s3 + $0x58] sm:$0xff] %v3297_v59  ;;  %v3326_v35 = vadd.f32 %v6001_v16, %v3252_v9  ;;  %v3327_v59 = vadd.f32 %v6003_v1, %v3253_v34  ;;  %v3257_v60 = vld [vmem:[#allocation2 + $0x90] sm:$0xff]  ;;  %v3260_v48 = vld [vmem:[#allocation2 + $0xb8] sm:$0xff]  ;;  %v3261_v63 = vld [vmem:[#allocation2 + $0x88] sm:$0xff] }
 0x44b   : > { %3362 = vst [vmem:[%s6283_s3 + $0x60] sm:$0xff] %v3298_v13  ;;  %v3328_v13 = vadd.f32 %v6005_v27, %v3254_v39  ;;  %v3259_v33 = vld [vmem:[#allocation2 + $0xd0] sm:$0xff]  ;;  %v3262_v21 = vld [vmem:[#allocation2 + $0xa8] sm:$0xff]  ;;  %v3265_v62 = vld [vmem:[#allocation2 + $0x178] sm:$0xff] }
 0x44c   : > { %3363 = vst [vmem:[%s6283_s3 + $0x68] sm:$0xff] %v3299_v11  ;;  %v3329_v11 = vadd.f32 %v6007_v36, %v3255_v57  ;;  %v3263_v3 = vld [vmem:[#allocation2 + $0x1c8] sm:$0xff]  ;;  %v3264_v29 = vld [vmem:[#allocation2 + $0x170] sm:$0xff]  ;;  %v3268_v32 = vld [vmem:[#allocation2 + $0x198] sm:$0xff] }
 0x44d   : > { %3364 = vst [vmem:[%s6283_s3 + $0x70] sm:$0xff] %v3300_v5  ;;  %v3330_v5 = vadd.f32 %v6001_v16, %v3256_v49  ;;  %v3266_v19 = vld [vmem:[#allocation2 + $0x68] sm:$0xff]  ;;  %v3267_v31 = vld [vmem:[#allocation2 + $0x190] sm:$0xff]  ;;  %v3269_v46 = vld [vmem:[#allocation2 + $0x38] sm:$0xff] }
 0x44e   : > { %3365 = vst [vmem:[%s6283_s3 + $0x78] sm:$0xff] %v3301_v53  ;;  %v3331_v53 = vadd.f32 %v6003_v1, %v3257_v60  ;;  %v3270_v47 = vld [vmem:[#allocation2 + $0xc0] sm:$0xff]  ;;  %v3272_v42 = vld [vmem:[#allocation2 + $0x158] sm:$0xff]  ;;  %v3273_v10 = vld [vmem:[#allocation2 + $0x10] sm:$0xff] }
 0x44f   : > { %3366 = vst [vmem:[%s6283_s3 + $0x80] sm:$0xff] %v3302_v22  ;;  %v3332_v22 = vadd.f32 %v6005_v27, %v3258_v18  ;;  %v3271_v2 = vld [vmem:[#allocation2 + $0x1c0] sm:$0xff]  ;;  %v3274_v6 = vld [vmem:[#allocation2 + $0x58] sm:$0xff] }
 0x450   : > { %3367 = vst [vmem:[%s6283_s3 + $0x88] sm:$0xff] %v3303_v17  ;;  %v3333_v17 = vadd.f32 %v6007_v36, %v3259_v33  ;;  %v3275_v41 = vld [vmem:[#allocation2 + $0xa0] sm:$0xff]  ;;  %v3348_v7 = vadd.f32 %v6005_v27, %v3274_v6 }
 0x451   : > { %3368 = vst [vmem:[%s6283_s3 + $0x90] sm:$0xff] %v3304_v0  ;;  %v3334_v0 = vadd.f32 %v6001_v16, %v3260_v48 }
 0x452   : > { %3369 = vst [vmem:[%s6283_s3 + $0x98] sm:$0xff] %v3305_v56  ;;  %v3335_v56 = vadd.f32 %v6003_v1, %v3261_v63 }
 0x453   : > { %3370 = vst [vmem:[%s6283_s3 + $0xa0] sm:$0xff] %v3306_v45  ;;  %v3336_v45 = vadd.f32 %v6005_v27, %v3262_v21 }
 0x454   : > { %3371 = vst [vmem:[%s6283_s3 + $0xa8] sm:$0xff] %v3307_v14  ;;  %v3337_v14 = vadd.f32 %v6007_v36, %v3263_v3 }
 0x455   : > { %3372 = vst [vmem:[%s6283_s3 + $0xb0] sm:$0xff] %v3308_v38  ;;  %v3338_v38 = vadd.f32 %v6001_v16, %v3264_v29 }
 0x456   : > { %3373 = vst [vmem:[%s6283_s3 + $0xb8] sm:$0xff] %v3309_v4  ;;  %v3339_v4 = vadd.f32 %v6003_v1, %v3265_v62 }
 0x457   : > { %3374 = vst [vmem:[%s6283_s3 + $0xc0] sm:$0xff] %v3310_v23  ;;  %v3340_v23 = vadd.f32 %v6005_v27, %v3266_v19 }
 0x458   : > { %3375 = vst [vmem:[%s6283_s3 + $0xc8] sm:$0xff] %v3311_v15  ;;  %v3341_v15 = vadd.f32 %v6007_v36, %v3267_v31 }
 0x459   : > { %3376 = vst [vmem:[%s6283_s3 + $0xd0] sm:$0xff] %v3312_v55  ;;  %v3342_v55 = vadd.f32 %v6001_v16, %v3268_v32 }
 0x45a   : > { %3377 = vst [vmem:[%s6283_s3 + $0xd8] sm:$0xff] %v3313_v24  ;;  %v3343_v24 = vadd.f32 %v6003_v1, %v3269_v46 }
 0x45b   : > { %3378 = vst [vmem:[%s6283_s3 + $0xe0] sm:$0xff] %v3314_v43  ;;  %v3344_v43 = vadd.f32 %v6005_v27, %v3270_v47 }
 0x45c   : > { %3379 = vst [vmem:[%s6283_s3 + $0xe8] sm:$0xff] %v3315_v40  ;;  %v3345_v40 = vadd.f32 %v6007_v36, %v3271_v2 }
 0x45d   : > { %3380 = vst [vmem:[%s6283_s3 + $0xf0] sm:$0xff] %v3316_v28  ;;  %v3346_v28 = vadd.f32 %v6001_v16, %v3272_v42 }
 0x45e   : > { %3381 = vst [vmem:[%s6283_s3 + $0xf8] sm:$0xff] %v3317_v52  ;;  %v3347_v52 = vadd.f32 %v6003_v1, %v3273_v10 }
 0x45f   : > { %3382 = vst [vmem:[%s6283_s3 + $0x100] sm:$0xff] %v3318_v44  ;;  %v3349_v44 = vadd.f32 %v6007_v36, %v3275_v41 }
 0x460   : > { %3383 = vst [vmem:[%s6283_s3 + $0x108] sm:$0xff] %v3319_v37 }
 0x461   : > { %3384 = vst [vmem:[%s6283_s3 + $0x110] sm:$0xff] %v3320_v8 }
 0x462   : > { %3385 = vst [vmem:[%s6283_s3 + $0x118] sm:$0xff] %v3321_v26 }
 0x463   : > { %3386 = vst [vmem:[%s6283_s3 + $0x120] sm:$0xff] %v3322_v30 }
 0x464   : > { %3387 = vst [vmem:[%s6283_s3 + $0x128] sm:$0xff] %v3323_v25 }
 0x465   : > { %3388 = vst [vmem:[%s6283_s3 + $0x130] sm:$0xff] %v3324_v58 }
 0x466   : > { %3389 = vst [vmem:[%s6283_s3 + $0x138] sm:$0xff] %v3325_v61 }
 0x467   : > { %3390 = vst [vmem:[%s6283_s3 + $0x140] sm:$0xff] %v3326_v35 }
 0x468   : > { %3391 = vst [vmem:[%s6283_s3 + $0x148] sm:$0xff] %v3327_v59 }
 0x469   : > { %3392 = vst [vmem:[%s6283_s3 + $0x150] sm:$0xff] %v3328_v13 }
 0x46a   : > { %3393 = vst [vmem:[%s6283_s3 + $0x158] sm:$0xff] %v3329_v11 }
 0x46b   : > { %3394 = vst [vmem:[%s6283_s3 + $0x160] sm:$0xff] %v3330_v5 }
 0x46c   : > { %3395 = vst [vmem:[%s6283_s3 + $0x168] sm:$0xff] %v3331_v53 }
 0x46d   : > { %3396 = vst [vmem:[%s6283_s3 + $0x170] sm:$0xff] %v3332_v22 }
 0x46e   : > { %3397 = vst [vmem:[%s6283_s3 + $0x178] sm:$0xff] %v3333_v17 }
 0x46f   : > { %3398 = vst [vmem:[%s6283_s3 + $0x180] sm:$0xff] %v3334_v0 }
 0x470   : > { %3399 = vst [vmem:[%s6283_s3 + $0x188] sm:$0xff] %v3335_v56 }
 0x471   : > { %3400 = vst [vmem:[%s6283_s3 + $0x190] sm:$0xff] %v3336_v45 }
 0x472   : > { %3401 = vst [vmem:[%s6283_s3 + $0x198] sm:$0xff] %v3337_v14 }
 0x473   : > { %3402 = vst [vmem:[%s6283_s3 + $0x1a0] sm:$0xff] %v3338_v38 }
 0x474   : > { %3403 = vst [vmem:[%s6283_s3 + $0x1a8] sm:$0xff] %v3339_v4 }
 0x475   : > { %3404 = vst [vmem:[%s6283_s3 + $0x1b0] sm:$0xff] %v3340_v23 }
 0x476   : > { %3405 = vst [vmem:[%s6283_s3 + $0x1b8] sm:$0xff] %v3341_v15 }
 0x477   : > { %3406 = vst [vmem:[%s6283_s3 + $0x1c0] sm:$0xff] %v3342_v55 }
 0x478   : > { %3407 = vst [vmem:[%s6283_s3 + $0x1c8] sm:$0xff] %v3343_v24 }
 0x479   : > { %3408 = vst [vmem:[%s6283_s3 + $0x1d0] sm:$0xff] %v3344_v43 }
 0x47a   : > { %3409 = vst [vmem:[%s6283_s3 + $0x1d8] sm:$0xff] %v3345_v40 }
 0x47b   : > { %3410 = vst [vmem:[%s6283_s3 + $0x1e0] sm:$0xff] %v3346_v28 }
 0x47c   : > { %3411 = vst [vmem:[%s6283_s3 + $0x1e8] sm:$0xff] %v3347_v52 }
 0x47d   : > { %3412 = vst [vmem:[%s6283_s3 + $0x1f0] sm:$0xff] %v3348_v7 }
 0x47e   : > { %3413 = vst [vmem:[%s6283_s3 + $0x1f8] sm:$0xff] %v3349_v44 }
 0x47f PF: > { %s13_s16 = sadd.s32 1, %s4795_s16   ;;  %s6379_s12 = smov %s4783_s13 }
 0x480   : > { %p10_p12 = scmp.ge.s32.totalorder %s13_s16, 5   ;;  %s6380_s13 = smov %s4853_s20 }
 0x481   : > { %s6381_s14 = smov %s4791_s15  ;;  %s6382_s15 = smov %s6384_s17 }
 0x482   :  { %12 = sbr.rel (!%p10_p12) target bundleno = 3 (0x3), region = 101 }

</bundles_post_ra>
